<compile_context>
chip_gen: v7x
topology: tpu7x:2x2x1
jax: 0.10.0
libtpu: 0.0.40
codegen_flags: <defaults>
</compile_context>

<pallas_src>
import functools

import jax
import jax.numpy as jnp
from jax.experimental import pallas as pl
from jax.experimental.pallas import tpu as pltpu


# ----------------------------------------------------------------------------
# Fused kernel: the whole 5-layer attention stack for one batch chunk.
# ----------------------------------------------------------------------------
def _fused_fusion_kernel(x_ref, query_ref,
                         wq_ref, bq_ref, wk_ref, bk_ref, wv_ref, bv_ref,
                         wo_ref, bo_ref, o_ref,
                         *, num_heads, cross_flags, batch_block):
    # x_ref    : (Bb, N, D)    input tokens for this batch chunk (f32)
    # query_ref: (Mq, D)       learnable query bank, shared across batch (bf16)
    # wq/wk/wv/wo : (L, D, D)  full-width per-layer weights (bf16, Wq pre-scaled)
    # bq/bk/bv/bo : (L, 1, D)  full-width biases (f32, bq pre-scaled)
    # o_ref    : (Bb, Mq, D)
    H = num_heads
    Bb = batch_block
    N0 = x_ref.shape[1]
    D = x_ref.shape[2]
    dh = D // H
    f32, bf16 = jnp.float32, jnp.bfloat16

    def split_heads(t, rows):
        # (Bb*rows, D) -> (H*Bb, rows, dh).  One relayout per tensor, built
        # from static lane slices + a leading-axis stack (cheap, supported on
        # all TPU generations); feeds a single heads-batched MXU contraction.
        th = jnp.stack([t[:, h * dh:(h + 1) * dh] for h in range(H)], axis=0)
        return th.reshape(H * Bb, rows, dh)

    def merge_heads(t, rows):
        # (H*Bb, rows, dh) -> (Bb*rows, D); head h ends up at lanes h*dh:(h+1)*dh.
        th = t.reshape(H, Bb * rows, dh)
        return jnp.concatenate([th[h] for h in range(H)], axis=-1)

    # Running activation, flattened (batch, tokens) -> rows; carried in f32.
    h_act = x_ref[...].reshape(Bb * N0, D)
    n_cur = N0
    query = query_ref[...]            # (Mq, D) bf16
    Mq = query.shape[0]

    for layer, is_cross in enumerate(cross_flags):      # static Python unroll
        wq = wq_ref[layer]            # (D, D) bf16  (scale folded into Wq)
        wk = wk_ref[layer]
        wv = wv_ref[layer]
        wo = wo_ref[layer]
        bq = bq_ref[layer]            # (1, D) f32   (scale folded into bq)
        bk = bk_ref[layer]
        bv = bv_ref[layer]
        bo = bo_ref[layer]

        kv_rows = h_act.astype(bf16)                       # (Bb*n_cur, D)
        if is_cross:
            if Bb == 1:
                q_rows = query                             # (Mq, D)
            else:
                q_rows = jnp.broadcast_to(
                    query[None], (Bb, Mq, D)).reshape(Bb * Mq, D)
            m_cur = Mq
        else:
            q_rows = kv_rows
            m_cur = n_cur

        # Full-width projections: one (rows, D) @ (D, D) MXU matmul each,
        # bf16 operands, f32 accumulation, f32 bias add on the VPU.
        q = jnp.dot(q_rows, wq, preferred_element_type=f32) + bq
        k = jnp.dot(kv_rows, wk, preferred_element_type=f32) + bk
        v = jnp.dot(kv_rows, wv, preferred_element_type=f32) + bv

        # Head split only for the score / P@V stage.
        qh = split_heads(q.astype(bf16), m_cur)            # (G, M, dh)
        kh = split_heads(k.astype(bf16), n_cur)            # (G, N, dh)
        vh = split_heads(v.astype(bf16), n_cur)            # (G, N, dh)

        s = jnp.einsum('gme,gne->gmn', qh, kh,
                       preferred_element_type=f32)         # (G, M, N) f32
        s = s - jnp.max(s, axis=-1, keepdims=True)
        p = jnp.exp(s)
        p = p * pl.reciprocal(jnp.sum(p, axis=-1, keepdims=True))  # exact
        o_h = jnp.einsum('gmn,gne->gme', p.astype(bf16), vh,
                         preferred_element_type=f32)       # (G, M, dh)

        # Merge heads and do one full-width output projection.
        o_rows = merge_heads(o_h, m_cur).astype(bf16)      # (Bb*M, D)
        h_act = jnp.dot(o_rows, wo, preferred_element_type=f32) + bo
        n_cur = m_cur

    o_ref[...] = h_act.reshape(Bb, Mq, D).astype(o_ref.dtype)


def _default_batch_chunks(B):
    """2 chunks on v7x (2 TensorCores/chip), otherwise fold the whole batch."""
    try:
        kind = jax.devices()[0].device_kind.lower()
    except Exception:
        kind = ""
    if ("v7" in kind or "7x" in kind) and B >= 2 and B % 2 == 0:
        return 2
    return 1


def fused_fusion(x, query_bf16, packed_params, num_heads, cross_flags,
                 *, batch_chunks=None):
    """Run the full 5-layer fusion stack in a single pallas_call."""
    B, N, D = x.shape
    Mq = query_bf16.shape[0]
    wq, bq, wk, bk, wv, bv, wo, bo = packed_params
    L = wq.shape[0]
    H = num_heads

    if batch_chunks is None:
        batch_chunks = _default_batch_chunks(B)
    if B % batch_chunks != 0:
        batch_chunks = 1
    Bb = B // batch_chunks

    kernel = functools.partial(_fused_fusion_kernel,
                               num_heads=num_heads,
                               cross_flags=tuple(cross_flags),
                               batch_block=Bb)

    # Advisory cost estimate (FLOPs / exp-count / bytes).
    flops = 0
    trans = 0
    n_tok = N
    for is_cross in cross_flags:
        m = Mq if is_cross else n_tok
        flops += B * 2 * D * D * (2 * m + 2 * n_tok)   # q,k,v,out projections
        flops += B * 4 * m * n_tok * D                 # scores + p@v
        trans += B * H * m * n_tok                     # exp
        n_tok = m
    operands = (x, query_bf16, wq, bq, wk, bk, wv, bv, wo, bo)
    bytes_accessed = sum(int(a.size) * a.dtype.itemsize for a in operands)
    bytes_accessed += B * Mq * D * x.dtype.itemsize

    const3 = lambda i: (0, 0, 0)
    const2 = lambda i: (0, 0)
    w_spec = pl.BlockSpec((L, D, D), const3)     # bf16 full-width weights
    b_spec = pl.BlockSpec((L, 1, D), const3)     # f32 full-width biases

    return pl.pallas_call(
        kernel,
        out_shape=jax.ShapeDtypeStruct((B, Mq, D), x.dtype),
        grid=(batch_chunks,),
        in_specs=[
            pl.BlockSpec((Bb, N, D), lambda i: (i, 0, 0)),   # x (batch chunk)
            pl.BlockSpec((Mq, D), const2),                   # query bank
            w_spec, b_spec,                                  # wq, bq
            w_spec, b_spec,                                  # wk, bk
            w_spec, b_spec,                                  # wv, bv
            w_spec, b_spec,                                  # wo, bo
        ],
        out_specs=pl.BlockSpec((Bb, Mq, D), lambda i: (i, 0, 0)),
        compiler_params=pltpu.CompilerParams(
            dimension_semantics=("parallel",)),
        cost_estimate=pl.CostEstimate(flops=flops, transcendentals=trans,
                                      bytes_accessed=bytes_accessed),
    )(x, query_bf16, wq, bq, wk, bk, wv, bv, wo, bo)


# ----------------------------------------------------------------------------
# Deterministic parameter construction + module wrapper
# ----------------------------------------------------------------------------
def _init_layer_params(key, d):
    ks = jax.random.split(key, 8)
    s = 1.0 / (d ** 0.5)
    wq = jax.random.normal(ks[0], (d, d), jnp.float32) * s
    bq = jax.random.normal(ks[1], (1, d), jnp.float32) * 0.01
    wk = jax.random.normal(ks[2], (d, d), jnp.float32) * s
    bk = jax.random.normal(ks[3], (1, d), jnp.float32) * 0.01
    wv = jax.random.normal(ks[4], (d, d), jnp.float32) * s
    bv = jax.random.normal(ks[5], (1, d), jnp.float32) * 0.01
    wo = jax.random.normal(ks[6], (d, d), jnp.float32) * s
    bo = jax.random.normal(ks[7], (1, d), jnp.float32) * 0.01
    return (wq, bq, wk, bk, wv, bv, wo, bo)


def _pack_params(layer_params, feat_dim, num_heads):
    """Stack per-layer params; fold 1/sqrt(dh) into Wq/bq; store weights bf16."""
    dh = feat_dim // num_heads
    scale = 1.0 / (dh ** 0.5)
    wq_l, bq_l, wk_l, bk_l, wv_l, bv_l, wo_l, bo_l = ([] for _ in range(8))
    for (wq, bq, wk, bk, wv, bv, wo, bo) in layer_params:
        wq_l.append((wq * scale).astype(jnp.bfloat16))
        bq_l.append((bq * scale).astype(jnp.float32))
        wk_l.append(wk.astype(jnp.bfloat16)); bk_l.append(bk)
        wv_l.append(wv.astype(jnp.bfloat16)); bv_l.append(bv)
        wo_l.append(wo.astype(jnp.bfloat16)); bo_l.append(bo)
    stack = lambda xs: jnp.stack(xs, axis=0)
    return (stack(wq_l), stack(bq_l), stack(wk_l), stack(bk_l),
            stack(wv_l), stack(bv_l), stack(wo_l), stack(bo_l))


class CrossAttentionFusionLearnableQueryPallas:
    # layers: self, self, cross(learnable query), self, self
    CROSS_FLAGS = (False, False, True, False, False)

    def __init__(self, feat_dim, max_tokens, num_heads=4, *, key):
        assert feat_dim % num_heads == 0
        self.feat_dim = feat_dim
        self.max_tokens = max_tokens
        self.num_heads = num_heads
        keys = jax.random.split(key, len(self.CROSS_FLAGS) + 1)
        self.layer_params = [_init_layer_params(k, feat_dim) for k in keys[:-1]]
        self.query = jax.random.normal(keys[-1], (max_tokens, feat_dim),
                                       jnp.float32) * 0.02
        self._query_bf16 = self.query.astype(jnp.bfloat16)
        self._packed = _pack_params(self.layer_params, feat_dim, num_heads)

    def __call__(self, x):
        return fused_fusion(x, self._query_bf16, self._packed,
                            self.num_heads, self.CROSS_FLAGS)

    # pure-JAX f32 reference for correctness checking
    def reference(self, x):
        def one_layer(q_src, kv, params):
            wq, bq, wk, bk, wv, bv, wo, bo = params
            q = q_src @ wq + bq
            k = kv @ wk + bk
            v = kv @ wv + bv
            B, M, D = q.shape
            N = k.shape[1]
            H = self.num_heads
            dh = D // H
            qh = q.reshape(B, M, H, dh).transpose(0, 2, 1, 3)
            kh = k.reshape(B, N, H, dh).transpose(0, 2, 1, 3)
            vh = v.reshape(B, N, H, dh).transpose(0, 2, 1, 3)
            s = jnp.einsum("bhmd,bhnd->bhmn", qh, kh) / (dh ** 0.5)
            p = jax.nn.softmax(s, axis=-1)
            o = jnp.einsum("bhmn,bhnd->bhmd", p, vh)
            o = o.transpose(0, 2, 1, 3).reshape(B, M, D)
            return o @ wo + bo

        for params, is_cross in zip(self.layer_params, self.CROSS_FLAGS):
            if is_cross:
                q_src = jnp.tile(self.query[None], (x.shape[0], 1, 1))
            else:
                q_src = x
            x = one_layer(q_src, x, params)
        return x


if __name__ == "__main__":
    B, N, FEAT_DIM, MAX_TOKENS, HEADS = 2, 16, 32, 8, 4

    key = jax.random.PRNGKey(0)
    k_x, k_params = jax.random.split(key)
    x = jax.random.normal(k_x, (B, N, FEAT_DIM), jnp.float32)

    model = CrossAttentionFusionLearnableQueryPallas(
        feat_dim=FEAT_DIM, max_tokens=MAX_TOKENS, num_heads=HEADS, key=k_params)

    out = jax.block_until_ready(model(x))
    assert out.shape == (B, MAX_TOKENS, FEAT_DIM), out.shape

    ref = jax.block_until_ready(model.reference(x))
    assert jnp.allclose(out, ref, atol=5e-2, rtol=5e-2), \
        float(jnp.max(jnp.abs(out - ref)))

    print("KERNEL_OK")
</pallas_src>

<mosaic_0001>
module attributes {stable_mosaic.version = 11 : i64} {
  func.func @_fused_fusion_kernel(%arg0: i32, %arg1: memref<2x16x32xf32, #tpu.memory_space<vmem>>, %arg2: memref<8x32xbf16, #tpu.memory_space<vmem>>, %arg3: memref<5x32x32xbf16, #tpu.memory_space<vmem>>, %arg4: memref<5x1x32xf32, #tpu.memory_space<vmem>>, %arg5: memref<5x32x32xbf16, #tpu.memory_space<vmem>>, %arg6: memref<5x1x32xf32, #tpu.memory_space<vmem>>, %arg7: memref<5x32x32xbf16, #tpu.memory_space<vmem>>, %arg8: memref<5x1x32xf32, #tpu.memory_space<vmem>>, %arg9: memref<5x32x32xbf16, #tpu.memory_space<vmem>>, %arg10: memref<5x1x32xf32, #tpu.memory_space<vmem>>, %arg11: memref<2x8x32xf32, #tpu.memory_space<vmem>>) attributes {dimension_semantics = [#tpu.dimension_semantics<parallel>], iteration_bounds = array<i64: 1>, scalar_prefetch = 0 : i64, scratch_operands = 0 : i64, tpu.core_type = #tpu.core_type<tc>, window_params = [{transform_indices = @transform_0, window_bounds = array<i64: 2, 16, 32>}, {pipeline_mode = #tpu.pipeline_mode<synchronous>, transform_indices = @transform_1, window_bounds = array<i64: 8, 32>}, {pipeline_mode = #tpu.pipeline_mode<synchronous>, transform_indices = @transform_2, window_bounds = array<i64: 5, 32, 32>}, {pipeline_mode = #tpu.pipeline_mode<synchronous>, transform_indices = @transform_3, window_bounds = array<i64: 5, 1, 32>}, {pipeline_mode = #tpu.pipeline_mode<synchronous>, transform_indices = @transform_4, window_bounds = array<i64: 5, 32, 32>}, {pipeline_mode = #tpu.pipeline_mode<synchronous>, transform_indices = @transform_5, window_bounds = array<i64: 5, 1, 32>}, {pipeline_mode = #tpu.pipeline_mode<synchronous>, transform_indices = @transform_6, window_bounds = array<i64: 5, 32, 32>}, {pipeline_mode = #tpu.pipeline_mode<synchronous>, transform_indices = @transform_7, window_bounds = array<i64: 5, 1, 32>}, {pipeline_mode = #tpu.pipeline_mode<synchronous>, transform_indices = @transform_8, window_bounds = array<i64: 5, 32, 32>}, {pipeline_mode = #tpu.pipeline_mode<synchronous>, transform_indices = @transform_9, window_bounds = array<i64: 5, 1, 32>}, {transform_indices = @transform_10, window_bounds = array<i64: 2, 8, 32>}]} {
    %c0 = arith.constant 0 : index
    %c0_0 = arith.constant 0 : index
    %c0_1 = arith.constant 0 : index
    %0 = vector.load %arg1[%c0, %c0_0, %c0_1] : memref<2x16x32xf32, #tpu.memory_space<vmem>>, vector<2x16x32xf32>
    %1 = vector.shape_cast %0 : vector<2x16x32xf32> to vector<32x32xf32>
    %c0_2 = arith.constant 0 : index
    %c0_3 = arith.constant 0 : index
    %2 = vector.load %arg2[%c0_2, %c0_3] : memref<8x32xbf16, #tpu.memory_space<vmem>>, vector<8x32xbf16>
    %c0_4 = arith.constant 0 : index
    %c0_5 = arith.constant 0 : index
    %c0_6 = arith.constant 0 : index
    %3 = vector.load %arg3[%c0_4, %c0_5, %c0_6] : memref<5x32x32xbf16, #tpu.memory_space<vmem>>, vector<1x32x32xbf16>
    %4 = vector.shape_cast %3 : vector<1x32x32xbf16> to vector<32x32xbf16>
    %c0_7 = arith.constant 0 : index
    %c0_8 = arith.constant 0 : index
    %c0_9 = arith.constant 0 : index
    %5 = vector.load %arg5[%c0_7, %c0_8, %c0_9] : memref<5x32x32xbf16, #tpu.memory_space<vmem>>, vector<1x32x32xbf16>
    %6 = vector.shape_cast %5 : vector<1x32x32xbf16> to vector<32x32xbf16>
    %c0_10 = arith.constant 0 : index
    %c0_11 = arith.constant 0 : index
    %c0_12 = arith.constant 0 : index
    %7 = vector.load %arg7[%c0_10, %c0_11, %c0_12] : memref<5x32x32xbf16, #tpu.memory_space<vmem>>, vector<1x32x32xbf16>
    %8 = vector.shape_cast %7 : vector<1x32x32xbf16> to vector<32x32xbf16>
    %c0_13 = arith.constant 0 : index
    %c0_14 = arith.constant 0 : index
    %c0_15 = arith.constant 0 : index
    %9 = vector.load %arg9[%c0_13, %c0_14, %c0_15] : memref<5x32x32xbf16, #tpu.memory_space<vmem>>, vector<1x32x32xbf16>
    %10 = vector.shape_cast %9 : vector<1x32x32xbf16> to vector<32x32xbf16>
    %c0_16 = arith.constant 0 : index
    %c0_17 = arith.constant 0 : index
    %c0_18 = arith.constant 0 : index
    %11 = vector.load %arg4[%c0_16, %c0_17, %c0_18] : memref<5x1x32xf32, #tpu.memory_space<vmem>>, vector<1x1x32xf32>
    %12 = vector.shape_cast %11 : vector<1x1x32xf32> to vector<1x32xf32>
    %c0_19 = arith.constant 0 : index
    %c0_20 = arith.constant 0 : index
    %c0_21 = arith.constant 0 : index
    %13 = vector.load %arg6[%c0_19, %c0_20, %c0_21] : memref<5x1x32xf32, #tpu.memory_space<vmem>>, vector<1x1x32xf32>
    %14 = vector.shape_cast %13 : vector<1x1x32xf32> to vector<1x32xf32>
    %c0_22 = arith.constant 0 : index
    %c0_23 = arith.constant 0 : index
    %c0_24 = arith.constant 0 : index
    %15 = vector.load %arg8[%c0_22, %c0_23, %c0_24] : memref<5x1x32xf32, #tpu.memory_space<vmem>>, vector<1x1x32xf32>
    %16 = vector.shape_cast %15 : vector<1x1x32xf32> to vector<1x32xf32>
    %c0_25 = arith.constant 0 : index
    %c0_26 = arith.constant 0 : index
    %c0_27 = arith.constant 0 : index
    %17 = vector.load %arg10[%c0_25, %c0_26, %c0_27] : memref<5x1x32xf32, #tpu.memory_space<vmem>>, vector<1x1x32xf32>
    %18 = vector.shape_cast %17 : vector<1x1x32xf32> to vector<1x32xf32>
    %19 = arith.truncf %1 : vector<32x32xf32> to vector<32x32xbf16>
    %cst = arith.constant dense<0.000000e+00> : vector<32x32xf32>
    %20 = tpu.matmul %19, %4, %cst {dimension_numbers = #tpu.dot_dimension_numbers<[1], [0], [0], [1], [0, 0, 1, 1], [], []>} : vector<32x32xbf16>, vector<32x32xbf16>, vector<32x32xf32> -> vector<32x32xf32>
    %21 = vector.broadcast %12 : vector<1x32xf32> to vector<32x32xf32>
    %22 = arith.addf %20, %21 : vector<32x32xf32>
    %cst_28 = arith.constant dense<0.000000e+00> : vector<32x32xf32>
    %23 = tpu.matmul %19, %6, %cst_28 {dimension_numbers = #tpu.dot_dimension_numbers<[1], [0], [0], [1], [0, 0, 1, 1], [], []>} : vector<32x32xbf16>, vector<32x32xbf16>, vector<32x32xf32> -> vector<32x32xf32>
    %24 = vector.broadcast %14 : vector<1x32xf32> to vector<32x32xf32>
    %25 = arith.addf %23, %24 : vector<32x32xf32>
    %cst_29 = arith.constant dense<0.000000e+00> : vector<32x32xf32>
    %26 = tpu.matmul %19, %8, %cst_29 {dimension_numbers = #tpu.dot_dimension_numbers<[1], [0], [0], [1], [0, 0, 1, 1], [], []>} : vector<32x32xbf16>, vector<32x32xbf16>, vector<32x32xf32> -> vector<32x32xf32>
    %27 = vector.broadcast %16 : vector<1x32xf32> to vector<32x32xf32>
    %28 = arith.addf %26, %27 : vector<32x32xf32>
    %29 = arith.truncf %22 : vector<32x32xf32> to vector<32x32xbf16>
    %30 = vector.extract_strided_slice %29 {offsets = [0, 0], sizes = [32, 8], strides = [1, 1]} : vector<32x32xbf16> to vector<32x8xbf16>
    %31 = vector.extract_strided_slice %29 {offsets = [0, 8], sizes = [32, 8], strides = [1, 1]} : vector<32x32xbf16> to vector<32x8xbf16>
    %32 = vector.extract_strided_slice %29 {offsets = [0, 16], sizes = [32, 8], strides = [1, 1]} : vector<32x32xbf16> to vector<32x8xbf16>
    %33 = vector.extract_strided_slice %29 {offsets = [0, 24], sizes = [32, 8], strides = [1, 1]} : vector<32x32xbf16> to vector<32x8xbf16>
    %34 = vector.shape_cast %30 : vector<32x8xbf16> to vector<1x32x8xbf16>
    %35 = vector.shape_cast %31 : vector<32x8xbf16> to vector<1x32x8xbf16>
    %36 = vector.shape_cast %32 : vector<32x8xbf16> to vector<1x32x8xbf16>
    %37 = vector.shape_cast %33 : vector<32x8xbf16> to vector<1x32x8xbf16>
    %38 = tpu.concatenate %34, %35, %36, %37 in 0 : vector<1x32x8xbf16>, vector<1x32x8xbf16>, vector<1x32x8xbf16>, vector<1x32x8xbf16> -> vector<4x32x8xbf16>
    %39 = vector.shape_cast %38 : vector<4x32x8xbf16> to vector<8x16x8xbf16>
    %40 = arith.truncf %25 : vector<32x32xf32> to vector<32x32xbf16>
    %41 = vector.extract_strided_slice %40 {offsets = [0, 0], sizes = [32, 8], strides = [1, 1]} : vector<32x32xbf16> to vector<32x8xbf16>
    %42 = vector.extract_strided_slice %40 {offsets = [0, 8], sizes = [32, 8], strides = [1, 1]} : vector<32x32xbf16> to vector<32x8xbf16>
    %43 = vector.extract_strided_slice %40 {offsets = [0, 16], sizes = [32, 8], strides = [1, 1]} : vector<32x32xbf16> to vector<32x8xbf16>
    %44 = vector.extract_strided_slice %40 {offsets = [0, 24], sizes = [32, 8], strides = [1, 1]} : vector<32x32xbf16> to vector<32x8xbf16>
    %45 = vector.shape_cast %41 : vector<32x8xbf16> to vector<1x32x8xbf16>
    %46 = vector.shape_cast %42 : vector<32x8xbf16> to vector<1x32x8xbf16>
    %47 = vector.shape_cast %43 : vector<32x8xbf16> to vector<1x32x8xbf16>
    %48 = vector.shape_cast %44 : vector<32x8xbf16> to vector<1x32x8xbf16>
    %49 = tpu.concatenate %45, %46, %47, %48 in 0 : vector<1x32x8xbf16>, vector<1x32x8xbf16>, vector<1x32x8xbf16>, vector<1x32x8xbf16> -> vector<4x32x8xbf16>
    %50 = vector.shape_cast %49 : vector<4x32x8xbf16> to vector<8x16x8xbf16>
    %51 = arith.truncf %28 : vector<32x32xf32> to vector<32x32xbf16>
    %52 = vector.extract_strided_slice %51 {offsets = [0, 0], sizes = [32, 8], strides = [1, 1]} : vector<32x32xbf16> to vector<32x8xbf16>
    %53 = vector.extract_strided_slice %51 {offsets = [0, 8], sizes = [32, 8], strides = [1, 1]} : vector<32x32xbf16> to vector<32x8xbf16>
    %54 = vector.extract_strided_slice %51 {offsets = [0, 16], sizes = [32, 8], strides = [1, 1]} : vector<32x32xbf16> to vector<32x8xbf16>
    %55 = vector.extract_strided_slice %51 {offsets = [0, 24], sizes = [32, 8], strides = [1, 1]} : vector<32x32xbf16> to vector<32x8xbf16>
    %56 = vector.shape_cast %52 : vector<32x8xbf16> to vector<1x32x8xbf16>
    %57 = vector.shape_cast %53 : vector<32x8xbf16> to vector<1x32x8xbf16>
    %58 = vector.shape_cast %54 : vector<32x8xbf16> to vector<1x32x8xbf16>
    %59 = vector.shape_cast %55 : vector<32x8xbf16> to vector<1x32x8xbf16>
    %60 = tpu.concatenate %56, %57, %58, %59 in 0 : vector<1x32x8xbf16>, vector<1x32x8xbf16>, vector<1x32x8xbf16>, vector<1x32x8xbf16> -> vector<4x32x8xbf16>
    %61 = vector.shape_cast %60 : vector<4x32x8xbf16> to vector<8x16x8xbf16>
    "tpu.trace_start"() <{level = 10 : i32, message = "gme,gne->gmn"}> : () -> ()
    %cst_30 = arith.constant dense<0.000000e+00> : vector<8x16x16xf32>
    %62 = tpu.matmul %39, %50, %cst_30 {dimension_numbers = #tpu.dot_dimension_numbers<[2], [2], [1], [1], [0, 0, 0, 1, 1, 1], [0], [0]>} : vector<8x16x8xbf16>, vector<8x16x8xbf16>, vector<8x16x16xf32> -> vector<8x16x16xf32>
    "tpu.trace_stop"() : () -> ()
    %cst_31 = arith.constant dense<0xFF800000> : vector<8x16xf32>
    %63 = vector.multi_reduction <maximumf>, %62, %cst_31 [2] : vector<8x16x16xf32> to vector<8x16xf32>
    %64 = vector.shape_cast %63 : vector<8x16xf32> to vector<8x16x1xf32>
    %65 = vector.broadcast %64 : vector<8x16x1xf32> to vector<8x16x16xf32>
    %66 = arith.subf %62, %65 : vector<8x16x16xf32>
    %67 = math.exp %66 : vector<8x16x16xf32>
    %cst_32 = arith.constant dense<0.000000e+00> : vector<8x16xf32>
    %68 = vector.multi_reduction <add>, %67, %cst_32 [2] : vector<8x16x16xf32> to vector<8x16xf32>
    %69 = vector.shape_cast %68 : vector<8x16xf32> to vector<8x16x1xf32>
    %70 = tpu.reciprocal %69 : vector<8x16x1xf32> -> vector<8x16x1xf32>
    %71 = vector.broadcast %70 : vector<8x16x1xf32> to vector<8x16x16xf32>
    %72 = arith.mulf %67, %71 : vector<8x16x16xf32>
    %73 = arith.truncf %72 : vector<8x16x16xf32> to vector<8x16x16xbf16>
    "tpu.trace_start"() <{level = 10 : i32, message = "gmn,gne->gme"}> : () -> ()
    %cst_33 = arith.constant dense<0.000000e+00> : vector<8x16x8xf32>
    %74 = tpu.matmul %73, %61, %cst_33 {dimension_numbers = #tpu.dot_dimension_numbers<[2], [1], [1], [2], [0, 0, 0, 1, 1, 2], [0], [0]>} : vector<8x16x16xbf16>, vector<8x16x8xbf16>, vector<8x16x8xf32> -> vector<8x16x8xf32>
    "tpu.trace_stop"() : () -> ()
    %75 = vector.shape_cast %74 : vector<8x16x8xf32> to vector<4x32x8xf32>
    %76 = vector.extract_strided_slice %75 {offsets = [0, 0, 0], sizes = [1, 32, 8], strides = [1, 1, 1]} : vector<4x32x8xf32> to vector<1x32x8xf32>
    %77 = vector.shape_cast %76 : vector<1x32x8xf32> to vector<32x8xf32>
    %78 = vector.extract_strided_slice %75 {offsets = [1, 0, 0], sizes = [1, 32, 8], strides = [1, 1, 1]} : vector<4x32x8xf32> to vector<1x32x8xf32>
    %79 = vector.shape_cast %78 : vector<1x32x8xf32> to vector<32x8xf32>
    %80 = vector.extract_strided_slice %75 {offsets = [2, 0, 0], sizes = [1, 32, 8], strides = [1, 1, 1]} : vector<4x32x8xf32> to vector<1x32x8xf32>
    %81 = vector.shape_cast %80 : vector<1x32x8xf32> to vector<32x8xf32>
    %82 = vector.extract_strided_slice %75 {offsets = [3, 0, 0], sizes = [1, 32, 8], strides = [1, 1, 1]} : vector<4x32x8xf32> to vector<1x32x8xf32>
    %83 = vector.shape_cast %82 : vector<1x32x8xf32> to vector<32x8xf32>
    %84 = tpu.concatenate %77, %79, %81, %83 in 1 : vector<32x8xf32>, vector<32x8xf32>, vector<32x8xf32>, vector<32x8xf32> -> vector<32x32xf32>
    %85 = arith.truncf %84 : vector<32x32xf32> to vector<32x32xbf16>
    %cst_34 = arith.constant dense<0.000000e+00> : vector<32x32xf32>
    %86 = tpu.matmul %85, %10, %cst_34 {dimension_numbers = #tpu.dot_dimension_numbers<[1], [0], [0], [1], [0, 0, 1, 1], [], []>} : vector<32x32xbf16>, vector<32x32xbf16>, vector<32x32xf32> -> vector<32x32xf32>
    %87 = vector.broadcast %18 : vector<1x32xf32> to vector<32x32xf32>
    %88 = arith.addf %86, %87 : vector<32x32xf32>
    %c1 = arith.constant 1 : index
    %c0_35 = arith.constant 0 : index
    %c0_36 = arith.constant 0 : index
    %89 = vector.load %arg3[%c1, %c0_35, %c0_36] : memref<5x32x32xbf16, #tpu.memory_space<vmem>>, vector<1x32x32xbf16>
    %90 = vector.shape_cast %89 : vector<1x32x32xbf16> to vector<32x32xbf16>
    %c1_37 = arith.constant 1 : index
    %c0_38 = arith.constant 0 : index
    %c0_39 = arith.constant 0 : index
    %91 = vector.load %arg5[%c1_37, %c0_38, %c0_39] : memref<5x32x32xbf16, #tpu.memory_space<vmem>>, vector<1x32x32xbf16>
    %92 = vector.shape_cast %91 : vector<1x32x32xbf16> to vector<32x32xbf16>
    %c1_40 = arith.constant 1 : index
    %c0_41 = arith.constant 0 : index
    %c0_42 = arith.constant 0 : index
    %93 = vector.load %arg7[%c1_40, %c0_41, %c0_42] : memref<5x32x32xbf16, #tpu.memory_space<vmem>>, vector<1x32x32xbf16>
    %94 = vector.shape_cast %93 : vector<1x32x32xbf16> to vector<32x32xbf16>
    %c1_43 = arith.constant 1 : index
    %c0_44 = arith.constant 0 : index
    %c0_45 = arith.constant 0 : index
    %95 = vector.load %arg9[%c1_43, %c0_44, %c0_45] : memref<5x32x32xbf16, #tpu.memory_space<vmem>>, vector<1x32x32xbf16>
    %96 = vector.shape_cast %95 : vector<1x32x32xbf16> to vector<32x32xbf16>
    %c1_46 = arith.constant 1 : index
    %c0_47 = arith.constant 0 : index
    %c0_48 = arith.constant 0 : index
    %97 = vector.load %arg4[%c1_46, %c0_47, %c0_48] : memref<5x1x32xf32, #tpu.memory_space<vmem>>, vector<1x1x32xf32>
    %98 = vector.shape_cast %97 : vector<1x1x32xf32> to vector<1x32xf32>
    %c1_49 = arith.constant 1 : index
    %c0_50 = arith.constant 0 : index
    %c0_51 = arith.constant 0 : index
    %99 = vector.load %arg6[%c1_49, %c0_50, %c0_51] : memref<5x1x32xf32, #tpu.memory_space<vmem>>, vector<1x1x32xf32>
    %100 = vector.shape_cast %99 : vector<1x1x32xf32> to vector<1x32xf32>
    %c1_52 = arith.constant 1 : index
    %c0_53 = arith.constant 0 : index
    %c0_54 = arith.constant 0 : index
    %101 = vector.load %arg8[%c1_52, %c0_53, %c0_54] : memref<5x1x32xf32, #tpu.memory_space<vmem>>, vector<1x1x32xf32>
    %102 = vector.shape_cast %101 : vector<1x1x32xf32> to vector<1x32xf32>
    %c1_55 = arith.constant 1 : index
    %c0_56 = arith.constant 0 : index
    %c0_57 = arith.constant 0 : index
    %103 = vector.load %arg10[%c1_55, %c0_56, %c0_57] : memref<5x1x32xf32, #tpu.memory_space<vmem>>, vector<1x1x32xf32>
    %104 = vector.shape_cast %103 : vector<1x1x32xf32> to vector<1x32xf32>
    %105 = arith.truncf %88 : vector<32x32xf32> to vector<32x32xbf16>
    %cst_58 = arith.constant dense<0.000000e+00> : vector<32x32xf32>
    %106 = tpu.matmul %105, %90, %cst_58 {dimension_numbers = #tpu.dot_dimension_numbers<[1], [0], [0], [1], [0, 0, 1, 1], [], []>} : vector<32x32xbf16>, vector<32x32xbf16>, vector<32x32xf32> -> vector<32x32xf32>
    %107 = vector.broadcast %98 : vector<1x32xf32> to vector<32x32xf32>
    %108 = arith.addf %106, %107 : vector<32x32xf32>
    %cst_59 = arith.constant dense<0.000000e+00> : vector<32x32xf32>
    %109 = tpu.matmul %105, %92, %cst_59 {dimension_numbers = #tpu.dot_dimension_numbers<[1], [0], [0], [1], [0, 0, 1, 1], [], []>} : vector<32x32xbf16>, vector<32x32xbf16>, vector<32x32xf32> -> vector<32x32xf32>
    %110 = vector.broadcast %100 : vector<1x32xf32> to vector<32x32xf32>
    %111 = arith.addf %109, %110 : vector<32x32xf32>
    %cst_60 = arith.constant dense<0.000000e+00> : vector<32x32xf32>
    %112 = tpu.matmul %105, %94, %cst_60 {dimension_numbers = #tpu.dot_dimension_numbers<[1], [0], [0], [1], [0, 0, 1, 1], [], []>} : vector<32x32xbf16>, vector<32x32xbf16>, vector<32x32xf32> -> vector<32x32xf32>
    %113 = vector.broadcast %102 : vector<1x32xf32> to vector<32x32xf32>
    %114 = arith.addf %112, %113 : vector<32x32xf32>
    %115 = arith.truncf %108 : vector<32x32xf32> to vector<32x32xbf16>
    %116 = vector.extract_strided_slice %115 {offsets = [0, 0], sizes = [32, 8], strides = [1, 1]} : vector<32x32xbf16> to vector<32x8xbf16>
    %117 = vector.extract_strided_slice %115 {offsets = [0, 8], sizes = [32, 8], strides = [1, 1]} : vector<32x32xbf16> to vector<32x8xbf16>
    %118 = vector.extract_strided_slice %115 {offsets = [0, 16], sizes = [32, 8], strides = [1, 1]} : vector<32x32xbf16> to vector<32x8xbf16>
    %119 = vector.extract_strided_slice %115 {offsets = [0, 24], sizes = [32, 8], strides = [1, 1]} : vector<32x32xbf16> to vector<32x8xbf16>
    %120 = vector.shape_cast %116 : vector<32x8xbf16> to vector<1x32x8xbf16>
    %121 = vector.shape_cast %117 : vector<32x8xbf16> to vector<1x32x8xbf16>
    %122 = vector.shape_cast %118 : vector<32x8xbf16> to vector<1x32x8xbf16>
    %123 = vector.shape_cast %119 : vector<32x8xbf16> to vector<1x32x8xbf16>
    %124 = tpu.concatenate %120, %121, %122, %123 in 0 : vector<1x32x8xbf16>, vector<1x32x8xbf16>, vector<1x32x8xbf16>, vector<1x32x8xbf16> -> vector<4x32x8xbf16>
    %125 = vector.shape_cast %124 : vector<4x32x8xbf16> to vector<8x16x8xbf16>
    %126 = arith.truncf %111 : vector<32x32xf32> to vector<32x32xbf16>
    %127 = vector.extract_strided_slice %126 {offsets = [0, 0], sizes = [32, 8], strides = [1, 1]} : vector<32x32xbf16> to vector<32x8xbf16>
    %128 = vector.extract_strided_slice %126 {offsets = [0, 8], sizes = [32, 8], strides = [1, 1]} : vector<32x32xbf16> to vector<32x8xbf16>
    %129 = vector.extract_strided_slice %126 {offsets = [0, 16], sizes = [32, 8], strides = [1, 1]} : vector<32x32xbf16> to vector<32x8xbf16>
    %130 = vector.extract_strided_slice %126 {offsets = [0, 24], sizes = [32, 8], strides = [1, 1]} : vector<32x32xbf16> to vector<32x8xbf16>
    %131 = vector.shape_cast %127 : vector<32x8xbf16> to vector<1x32x8xbf16>
    %132 = vector.shape_cast %128 : vector<32x8xbf16> to vector<1x32x8xbf16>
    %133 = vector.shape_cast %129 : vector<32x8xbf16> to vector<1x32x8xbf16>
    %134 = vector.shape_cast %130 : vector<32x8xbf16> to vector<1x32x8xbf16>
    %135 = tpu.concatenate %131, %132, %133, %134 in 0 : vector<1x32x8xbf16>, vector<1x32x8xbf16>, vector<1x32x8xbf16>, vector<1x32x8xbf16> -> vector<4x32x8xbf16>
    %136 = vector.shape_cast %135 : vector<4x32x8xbf16> to vector<8x16x8xbf16>
    %137 = arith.truncf %114 : vector<32x32xf32> to vector<32x32xbf16>
    %138 = vector.extract_strided_slice %137 {offsets = [0, 0], sizes = [32, 8], strides = [1, 1]} : vector<32x32xbf16> to vector<32x8xbf16>
    %139 = vector.extract_strided_slice %137 {offsets = [0, 8], sizes = [32, 8], strides = [1, 1]} : vector<32x32xbf16> to vector<32x8xbf16>
    %140 = vector.extract_strided_slice %137 {offsets = [0, 16], sizes = [32, 8], strides = [1, 1]} : vector<32x32xbf16> to vector<32x8xbf16>
    %141 = vector.extract_strided_slice %137 {offsets = [0, 24], sizes = [32, 8], strides = [1, 1]} : vector<32x32xbf16> to vector<32x8xbf16>
    %142 = vector.shape_cast %138 : vector<32x8xbf16> to vector<1x32x8xbf16>
    %143 = vector.shape_cast %139 : vector<32x8xbf16> to vector<1x32x8xbf16>
    %144 = vector.shape_cast %140 : vector<32x8xbf16> to vector<1x32x8xbf16>
    %145 = vector.shape_cast %141 : vector<32x8xbf16> to vector<1x32x8xbf16>
    %146 = tpu.concatenate %142, %143, %144, %145 in 0 : vector<1x32x8xbf16>, vector<1x32x8xbf16>, vector<1x32x8xbf16>, vector<1x32x8xbf16> -> vector<4x32x8xbf16>
    %147 = vector.shape_cast %146 : vector<4x32x8xbf16> to vector<8x16x8xbf16>
    "tpu.trace_start"() <{level = 10 : i32, message = "gme,gne->gmn"}> : () -> ()
    %cst_61 = arith.constant dense<0.000000e+00> : vector<8x16x16xf32>
    %148 = tpu.matmul %125, %136, %cst_61 {dimension_numbers = #tpu.dot_dimension_numbers<[2], [2], [1], [1], [0, 0, 0, 1, 1, 1], [0], [0]>} : vector<8x16x8xbf16>, vector<8x16x8xbf16>, vector<8x16x16xf32> -> vector<8x16x16xf32>
    "tpu.trace_stop"() : () -> ()
    %cst_62 = arith.constant dense<0xFF800000> : vector<8x16xf32>
    %149 = vector.multi_reduction <maximumf>, %148, %cst_62 [2] : vector<8x16x16xf32> to vector<8x16xf32>
    %150 = vector.shape_cast %149 : vector<8x16xf32> to vector<8x16x1xf32>
    %151 = vector.broadcast %150 : vector<8x16x1xf32> to vector<8x16x16xf32>
    %152 = arith.subf %148, %151 : vector<8x16x16xf32>
    %153 = math.exp %152 : vector<8x16x16xf32>
    %cst_63 = arith.constant dense<0.000000e+00> : vector<8x16xf32>
    %154 = vector.multi_reduction <add>, %153, %cst_63 [2] : vector<8x16x16xf32> to vector<8x16xf32>
    %155 = vector.shape_cast %154 : vector<8x16xf32> to vector<8x16x1xf32>
    %156 = tpu.reciprocal %155 : vector<8x16x1xf32> -> vector<8x16x1xf32>
    %157 = vector.broadcast %156 : vector<8x16x1xf32> to vector<8x16x16xf32>
    %158 = arith.mulf %153, %157 : vector<8x16x16xf32>
    %159 = arith.truncf %158 : vector<8x16x16xf32> to vector<8x16x16xbf16>
    "tpu.trace_start"() <{level = 10 : i32, message = "gmn,gne->gme"}> : () -> ()
    %cst_64 = arith.constant dense<0.000000e+00> : vector<8x16x8xf32>
    %160 = tpu.matmul %159, %147, %cst_64 {dimension_numbers = #tpu.dot_dimension_numbers<[2], [1], [1], [2], [0, 0, 0, 1, 1, 2], [0], [0]>} : vector<8x16x16xbf16>, vector<8x16x8xbf16>, vector<8x16x8xf32> -> vector<8x16x8xf32>
    "tpu.trace_stop"() : () -> ()
    %161 = vector.shape_cast %160 : vector<8x16x8xf32> to vector<4x32x8xf32>
    %162 = vector.extract_strided_slice %161 {offsets = [0, 0, 0], sizes = [1, 32, 8], strides = [1, 1, 1]} : vector<4x32x8xf32> to vector<1x32x8xf32>
    %163 = vector.shape_cast %162 : vector<1x32x8xf32> to vector<32x8xf32>
    %164 = vector.extract_strided_slice %161 {offsets = [1, 0, 0], sizes = [1, 32, 8], strides = [1, 1, 1]} : vector<4x32x8xf32> to vector<1x32x8xf32>
    %165 = vector.shape_cast %164 : vector<1x32x8xf32> to vector<32x8xf32>
    %166 = vector.extract_strided_slice %161 {offsets = [2, 0, 0], sizes = [1, 32, 8], strides = [1, 1, 1]} : vector<4x32x8xf32> to vector<1x32x8xf32>
    %167 = vector.shape_cast %166 : vector<1x32x8xf32> to vector<32x8xf32>
    %168 = vector.extract_strided_slice %161 {offsets = [3, 0, 0], sizes = [1, 32, 8], strides = [1, 1, 1]} : vector<4x32x8xf32> to vector<1x32x8xf32>
    %169 = vector.shape_cast %168 : vector<1x32x8xf32> to vector<32x8xf32>
    %170 = tpu.concatenate %163, %165, %167, %169 in 1 : vector<32x8xf32>, vector<32x8xf32>, vector<32x8xf32>, vector<32x8xf32> -> vector<32x32xf32>
    %171 = arith.truncf %170 : vector<32x32xf32> to vector<32x32xbf16>
    %cst_65 = arith.constant dense<0.000000e+00> : vector<32x32xf32>
    %172 = tpu.matmul %171, %96, %cst_65 {dimension_numbers = #tpu.dot_dimension_numbers<[1], [0], [0], [1], [0, 0, 1, 1], [], []>} : vector<32x32xbf16>, vector<32x32xbf16>, vector<32x32xf32> -> vector<32x32xf32>
    %173 = vector.broadcast %104 : vector<1x32xf32> to vector<32x32xf32>
    %174 = arith.addf %172, %173 : vector<32x32xf32>
    %c2 = arith.constant 2 : index
    %c0_66 = arith.constant 0 : index
    %c0_67 = arith.constant 0 : index
    %175 = vector.load %arg3[%c2, %c0_66, %c0_67] : memref<5x32x32xbf16, #tpu.memory_space<vmem>>, vector<1x32x32xbf16>
    %176 = vector.shape_cast %175 : vector<1x32x32xbf16> to vector<32x32xbf16>
    %c2_68 = arith.constant 2 : index
    %c0_69 = arith.constant 0 : index
    %c0_70 = arith.constant 0 : index
    %177 = vector.load %arg5[%c2_68, %c0_69, %c0_70] : memref<5x32x32xbf16, #tpu.memory_space<vmem>>, vector<1x32x32xbf16>
    %178 = vector.shape_cast %177 : vector<1x32x32xbf16> to vector<32x32xbf16>
    %c2_71 = arith.constant 2 : index
    %c0_72 = arith.constant 0 : index
    %c0_73 = arith.constant 0 : index
    %179 = vector.load %arg7[%c2_71, %c0_72, %c0_73] : memref<5x32x32xbf16, #tpu.memory_space<vmem>>, vector<1x32x32xbf16>
    %180 = vector.shape_cast %179 : vector<1x32x32xbf16> to vector<32x32xbf16>
    %c2_74 = arith.constant 2 : index
    %c0_75 = arith.constant 0 : index
    %c0_76 = arith.constant 0 : index
    %181 = vector.load %arg9[%c2_74, %c0_75, %c0_76] : memref<5x32x32xbf16, #tpu.memory_space<vmem>>, vector<1x32x32xbf16>
    %182 = vector.shape_cast %181 : vector<1x32x32xbf16> to vector<32x32xbf16>
    %c2_77 = arith.constant 2 : index
    %c0_78 = arith.constant 0 : index
    %c0_79 = arith.constant 0 : index
    %183 = vector.load %arg4[%c2_77, %c0_78, %c0_79] : memref<5x1x32xf32, #tpu.memory_space<vmem>>, vector<1x1x32xf32>
    %184 = vector.shape_cast %183 : vector<1x1x32xf32> to vector<1x32xf32>
    %c2_80 = arith.constant 2 : index
    %c0_81 = arith.constant 0 : index
    %c0_82 = arith.constant 0 : index
    %185 = vector.load %arg6[%c2_80, %c0_81, %c0_82] : memref<5x1x32xf32, #tpu.memory_space<vmem>>, vector<1x1x32xf32>
    %186 = vector.shape_cast %185 : vector<1x1x32xf32> to vector<1x32xf32>
    %c2_83 = arith.constant 2 : index
    %c0_84 = arith.constant 0 : index
    %c0_85 = arith.constant 0 : index
    %187 = vector.load %arg8[%c2_83, %c0_84, %c0_85] : memref<5x1x32xf32, #tpu.memory_space<vmem>>, vector<1x1x32xf32>
    %188 = vector.shape_cast %187 : vector<1x1x32xf32> to vector<1x32xf32>
    %c2_86 = arith.constant 2 : index
    %c0_87 = arith.constant 0 : index
    %c0_88 = arith.constant 0 : index
    %189 = vector.load %arg10[%c2_86, %c0_87, %c0_88] : memref<5x1x32xf32, #tpu.memory_space<vmem>>, vector<1x1x32xf32>
    %190 = vector.shape_cast %189 : vector<1x1x32xf32> to vector<1x32xf32>
    %191 = arith.truncf %174 : vector<32x32xf32> to vector<32x32xbf16>
    %192 = vector.shape_cast %2 : vector<8x32xbf16> to vector<1x8x32xbf16>
    %193 = vector.shape_cast %192 : vector<1x8x32xbf16> to vector<1x8x32xbf16>
    %194 = vector.broadcast %193 : vector<1x8x32xbf16> to vector<2x8x32xbf16>
    %195 = vector.shape_cast %194 : vector<2x8x32xbf16> to vector<16x32xbf16>
    %cst_89 = arith.constant dense<0.000000e+00> : vector<16x32xf32>
    %196 = tpu.matmul %195, %176, %cst_89 {dimension_numbers = #tpu.dot_dimension_numbers<[1], [0], [0], [1], [0, 0, 1, 1], [], []>} : vector<16x32xbf16>, vector<32x32xbf16>, vector<16x32xf32> -> vector<16x32xf32>
    %197 = vector.broadcast %184 : vector<1x32xf32> to vector<16x32xf32>
    %198 = arith.addf %196, %197 : vector<16x32xf32>
    %cst_90 = arith.constant dense<0.000000e+00> : vector<32x32xf32>
    %199 = tpu.matmul %191, %178, %cst_90 {dimension_numbers = #tpu.dot_dimension_numbers<[1], [0], [0], [1], [0, 0, 1, 1], [], []>} : vector<32x32xbf16>, vector<32x32xbf16>, vector<32x32xf32> -> vector<32x32xf32>
    %200 = vector.broadcast %186 : vector<1x32xf32> to vector<32x32xf32>
    %201 = arith.addf %199, %200 : vector<32x32xf32>
    %cst_91 = arith.constant dense<0.000000e+00> : vector<32x32xf32>
    %202 = tpu.matmul %191, %180, %cst_91 {dimension_numbers = #tpu.dot_dimension_numbers<[1], [0], [0], [1], [0, 0, 1, 1], [], []>} : vector<32x32xbf16>, vector<32x32xbf16>, vector<32x32xf32> -> vector<32x32xf32>
    %203 = vector.broadcast %188 : vector<1x32xf32> to vector<32x32xf32>
    %204 = arith.addf %202, %203 : vector<32x32xf32>
    %205 = arith.truncf %198 : vector<16x32xf32> to vector<16x32xbf16>
    %206 = vector.extract_strided_slice %205 {offsets = [0, 0], sizes = [16, 8], strides = [1, 1]} : vector<16x32xbf16> to vector<16x8xbf16>
    %207 = vector.extract_strided_slice %205 {offsets = [0, 8], sizes = [16, 8], strides = [1, 1]} : vector<16x32xbf16> to vector<16x8xbf16>
    %208 = vector.extract_strided_slice %205 {offsets = [0, 16], sizes = [16, 8], strides = [1, 1]} : vector<16x32xbf16> to vector<16x8xbf16>
    %209 = vector.extract_strided_slice %205 {offsets = [0, 24], sizes = [16, 8], strides = [1, 1]} : vector<16x32xbf16> to vector<16x8xbf16>
    %210 = vector.shape_cast %206 : vector<16x8xbf16> to vector<1x16x8xbf16>
    %211 = vector.shape_cast %207 : vector<16x8xbf16> to vector<1x16x8xbf16>
    %212 = vector.shape_cast %208 : vector<16x8xbf16> to vector<1x16x8xbf16>
    %213 = vector.shape_cast %209 : vector<16x8xbf16> to vector<1x16x8xbf16>
    %214 = tpu.concatenate %210, %211, %212, %213 in 0 : vector<1x16x8xbf16>, vector<1x16x8xbf16>, vector<1x16x8xbf16>, vector<1x16x8xbf16> -> vector<4x16x8xbf16>
    %215 = vector.shape_cast %214 : vector<4x16x8xbf16> to vector<8x8x8xbf16>
    %216 = arith.truncf %201 : vector<32x32xf32> to vector<32x32xbf16>
    %217 = vector.extract_strided_slice %216 {offsets = [0, 0], sizes = [32, 8], strides = [1, 1]} : vector<32x32xbf16> to vector<32x8xbf16>
    %218 = vector.extract_strided_slice %216 {offsets = [0, 8], sizes = [32, 8], strides = [1, 1]} : vector<32x32xbf16> to vector<32x8xbf16>
    %219 = vector.extract_strided_slice %216 {offsets = [0, 16], sizes = [32, 8], strides = [1, 1]} : vector<32x32xbf16> to vector<32x8xbf16>
    %220 = vector.extract_strided_slice %216 {offsets = [0, 24], sizes = [32, 8], strides = [1, 1]} : vector<32x32xbf16> to vector<32x8xbf16>
    %221 = vector.shape_cast %217 : vector<32x8xbf16> to vector<1x32x8xbf16>
    %222 = vector.shape_cast %218 : vector<32x8xbf16> to vector<1x32x8xbf16>
    %223 = vector.shape_cast %219 : vector<32x8xbf16> to vector<1x32x8xbf16>
    %224 = vector.shape_cast %220 : vector<32x8xbf16> to vector<1x32x8xbf16>
    %225 = tpu.concatenate %221, %222, %223, %224 in 0 : vector<1x32x8xbf16>, vector<1x32x8xbf16>, vector<1x32x8xbf16>, vector<1x32x8xbf16> -> vector<4x32x8xbf16>
    %226 = vector.shape_cast %225 : vector<4x32x8xbf16> to vector<8x16x8xbf16>
    %227 = arith.truncf %204 : vector<32x32xf32> to vector<32x32xbf16>
    %228 = vector.extract_strided_slice %227 {offsets = [0, 0], sizes = [32, 8], strides = [1, 1]} : vector<32x32xbf16> to vector<32x8xbf16>
    %229 = vector.extract_strided_slice %227 {offsets = [0, 8], sizes = [32, 8], strides = [1, 1]} : vector<32x32xbf16> to vector<32x8xbf16>
    %230 = vector.extract_strided_slice %227 {offsets = [0, 16], sizes = [32, 8], strides = [1, 1]} : vector<32x32xbf16> to vector<32x8xbf16>
    %231 = vector.extract_strided_slice %227 {offsets = [0, 24], sizes = [32, 8], strides = [1, 1]} : vector<32x32xbf16> to vector<32x8xbf16>
    %232 = vector.shape_cast %228 : vector<32x8xbf16> to vector<1x32x8xbf16>
    %233 = vector.shape_cast %229 : vector<32x8xbf16> to vector<1x32x8xbf16>
    %234 = vector.shape_cast %230 : vector<32x8xbf16> to vector<1x32x8xbf16>
    %235 = vector.shape_cast %231 : vector<32x8xbf16> to vector<1x32x8xbf16>
    %236 = tpu.concatenate %232, %233, %234, %235 in 0 : vector<1x32x8xbf16>, vector<1x32x8xbf16>, vector<1x32x8xbf16>, vector<1x32x8xbf16> -> vector<4x32x8xbf16>
    %237 = vector.shape_cast %236 : vector<4x32x8xbf16> to vector<8x16x8xbf16>
    "tpu.trace_start"() <{level = 10 : i32, message = "gme,gne->gmn"}> : () -> ()
    %cst_92 = arith.constant dense<0.000000e+00> : vector<8x8x16xf32>
    %238 = tpu.matmul %215, %226, %cst_92 {dimension_numbers = #tpu.dot_dimension_numbers<[2], [2], [1], [1], [0, 0, 0, 1, 1, 1], [0], [0]>} : vector<8x8x8xbf16>, vector<8x16x8xbf16>, vector<8x8x16xf32> -> vector<8x8x16xf32>
    "tpu.trace_stop"() : () -> ()
    %cst_93 = arith.constant dense<0xFF800000> : vector<8x8xf32>
    %239 = vector.multi_reduction <maximumf>, %238, %cst_93 [2] : vector<8x8x16xf32> to vector<8x8xf32>
    %240 = vector.shape_cast %239 : vector<8x8xf32> to vector<8x8x1xf32>
    %241 = vector.broadcast %240 : vector<8x8x1xf32> to vector<8x8x16xf32>
    %242 = arith.subf %238, %241 : vector<8x8x16xf32>
    %243 = math.exp %242 : vector<8x8x16xf32>
    %cst_94 = arith.constant dense<0.000000e+00> : vector<8x8xf32>
    %244 = vector.multi_reduction <add>, %243, %cst_94 [2] : vector<8x8x16xf32> to vector<8x8xf32>
    %245 = vector.shape_cast %244 : vector<8x8xf32> to vector<8x8x1xf32>
    %246 = tpu.reciprocal %245 : vector<8x8x1xf32> -> vector<8x8x1xf32>
    %247 = vector.broadcast %246 : vector<8x8x1xf32> to vector<8x8x16xf32>
    %248 = arith.mulf %243, %247 : vector<8x8x16xf32>
    %249 = arith.truncf %248 : vector<8x8x16xf32> to vector<8x8x16xbf16>
    "tpu.trace_start"() <{level = 10 : i32, message = "gmn,gne->gme"}> : () -> ()
    %cst_95 = arith.constant dense<0.000000e+00> : vector<8x8x8xf32>
    %250 = tpu.matmul %249, %237, %cst_95 {dimension_numbers = #tpu.dot_dimension_numbers<[2], [1], [1], [2], [0, 0, 0, 1, 1, 2], [0], [0]>} : vector<8x8x16xbf16>, vector<8x16x8xbf16>, vector<8x8x8xf32> -> vector<8x8x8xf32>
    "tpu.trace_stop"() : () -> ()
    %251 = vector.shape_cast %250 : vector<8x8x8xf32> to vector<4x16x8xf32>
    %252 = vector.extract_strided_slice %251 {offsets = [0, 0, 0], sizes = [1, 16, 8], strides = [1, 1, 1]} : vector<4x16x8xf32> to vector<1x16x8xf32>
    %253 = vector.shape_cast %252 : vector<1x16x8xf32> to vector<16x8xf32>
    %254 = vector.extract_strided_slice %251 {offsets = [1, 0, 0], sizes = [1, 16, 8], strides = [1, 1, 1]} : vector<4x16x8xf32> to vector<1x16x8xf32>
    %255 = vector.shape_cast %254 : vector<1x16x8xf32> to vector<16x8xf32>
    %256 = vector.extract_strided_slice %251 {offsets = [2, 0, 0], sizes = [1, 16, 8], strides = [1, 1, 1]} : vector<4x16x8xf32> to vector<1x16x8xf32>
    %257 = vector.shape_cast %256 : vector<1x16x8xf32> to vector<16x8xf32>
    %258 = vector.extract_strided_slice %251 {offsets = [3, 0, 0], sizes = [1, 16, 8], strides = [1, 1, 1]} : vector<4x16x8xf32> to vector<1x16x8xf32>
    %259 = vector.shape_cast %258 : vector<1x16x8xf32> to vector<16x8xf32>
    %260 = tpu.concatenate %253, %255, %257, %259 in 1 : vector<16x8xf32>, vector<16x8xf32>, vector<16x8xf32>, vector<16x8xf32> -> vector<16x32xf32>
    %261 = arith.truncf %260 : vector<16x32xf32> to vector<16x32xbf16>
    %cst_96 = arith.constant dense<0.000000e+00> : vector<16x32xf32>
    %262 = tpu.matmul %261, %182, %cst_96 {dimension_numbers = #tpu.dot_dimension_numbers<[1], [0], [0], [1], [0, 0, 1, 1], [], []>} : vector<16x32xbf16>, vector<32x32xbf16>, vector<16x32xf32> -> vector<16x32xf32>
    %263 = vector.broadcast %190 : vector<1x32xf32> to vector<16x32xf32>
    %264 = arith.addf %262, %263 : vector<16x32xf32>
    %c3 = arith.constant 3 : index
    %c0_97 = arith.constant 0 : index
    %c0_98 = arith.constant 0 : index
    %265 = vector.load %arg3[%c3, %c0_97, %c0_98] : memref<5x32x32xbf16, #tpu.memory_space<vmem>>, vector<1x32x32xbf16>
    %266 = vector.shape_cast %265 : vector<1x32x32xbf16> to vector<32x32xbf16>
    %c3_99 = arith.constant 3 : index
    %c0_100 = arith.constant 0 : index
    %c0_101 = arith.constant 0 : index
    %267 = vector.load %arg5[%c3_99, %c0_100, %c0_101] : memref<5x32x32xbf16, #tpu.memory_space<vmem>>, vector<1x32x32xbf16>
    %268 = vector.shape_cast %267 : vector<1x32x32xbf16> to vector<32x32xbf16>
    %c3_102 = arith.constant 3 : index
    %c0_103 = arith.constant 0 : index
    %c0_104 = arith.constant 0 : index
    %269 = vector.load %arg7[%c3_102, %c0_103, %c0_104] : memref<5x32x32xbf16, #tpu.memory_space<vmem>>, vector<1x32x32xbf16>
    %270 = vector.shape_cast %269 : vector<1x32x32xbf16> to vector<32x32xbf16>
    %c3_105 = arith.constant 3 : index
    %c0_106 = arith.constant 0 : index
    %c0_107 = arith.constant 0 : index
    %271 = vector.load %arg9[%c3_105, %c0_106, %c0_107] : memref<5x32x32xbf16, #tpu.memory_space<vmem>>, vector<1x32x32xbf16>
    %272 = vector.shape_cast %271 : vector<1x32x32xbf16> to vector<32x32xbf16>
    %c3_108 = arith.constant 3 : index
    %c0_109 = arith.constant 0 : index
    %c0_110 = arith.constant 0 : index
    %273 = vector.load %arg4[%c3_108, %c0_109, %c0_110] : memref<5x1x32xf32, #tpu.memory_space<vmem>>, vector<1x1x32xf32>
    %274 = vector.shape_cast %273 : vector<1x1x32xf32> to vector<1x32xf32>
    %c3_111 = arith.constant 3 : index
    %c0_112 = arith.constant 0 : index
    %c0_113 = arith.constant 0 : index
    %275 = vector.load %arg6[%c3_111, %c0_112, %c0_113] : memref<5x1x32xf32, #tpu.memory_space<vmem>>, vector<1x1x32xf32>
    %276 = vector.shape_cast %275 : vector<1x1x32xf32> to vector<1x32xf32>
    %c3_114 = arith.constant 3 : index
    %c0_115 = arith.constant 0 : index
    %c0_116 = arith.constant 0 : index
    %277 = vector.load %arg8[%c3_114, %c0_115, %c0_116] : memref<5x1x32xf32, #tpu.memory_space<vmem>>, vector<1x1x32xf32>
    %278 = vector.shape_cast %277 : vector<1x1x32xf32> to vector<1x32xf32>
    %c3_117 = arith.constant 3 : index
    %c0_118 = arith.constant 0 : index
    %c0_119 = arith.constant 0 : index
    %279 = vector.load %arg10[%c3_117, %c0_118, %c0_119] : memref<5x1x32xf32, #tpu.memory_space<vmem>>, vector<1x1x32xf32>
    %280 = vector.shape_cast %279 : vector<1x1x32xf32> to vector<1x32xf32>
    %281 = arith.truncf %264 : vector<16x32xf32> to vector<16x32xbf16>
    %cst_120 = arith.constant dense<0.000000e+00> : vector<16x32xf32>
    %282 = tpu.matmul %281, %266, %cst_120 {dimension_numbers = #tpu.dot_dimension_numbers<[1], [0], [0], [1], [0, 0, 1, 1], [], []>} : vector<16x32xbf16>, vector<32x32xbf16>, vector<16x32xf32> -> vector<16x32xf32>
    %283 = vector.broadcast %274 : vector<1x32xf32> to vector<16x32xf32>
    %284 = arith.addf %282, %283 : vector<16x32xf32>
    %cst_121 = arith.constant dense<0.000000e+00> : vector<16x32xf32>
    %285 = tpu.matmul %281, %268, %cst_121 {dimension_numbers = #tpu.dot_dimension_numbers<[1], [0], [0], [1], [0, 0, 1, 1], [], []>} : vector<16x32xbf16>, vector<32x32xbf16>, vector<16x32xf32> -> vector<16x32xf32>
    %286 = vector.broadcast %276 : vector<1x32xf32> to vector<16x32xf32>
    %287 = arith.addf %285, %286 : vector<16x32xf32>
    %cst_122 = arith.constant dense<0.000000e+00> : vector<16x32xf32>
    %288 = tpu.matmul %281, %270, %cst_122 {dimension_numbers = #tpu.dot_dimension_numbers<[1], [0], [0], [1], [0, 0, 1, 1], [], []>} : vector<16x32xbf16>, vector<32x32xbf16>, vector<16x32xf32> -> vector<16x32xf32>
    %289 = vector.broadcast %278 : vector<1x32xf32> to vector<16x32xf32>
    %290 = arith.addf %288, %289 : vector<16x32xf32>
    %291 = arith.truncf %284 : vector<16x32xf32> to vector<16x32xbf16>
    %292 = vector.extract_strided_slice %291 {offsets = [0, 0], sizes = [16, 8], strides = [1, 1]} : vector<16x32xbf16> to vector<16x8xbf16>
    %293 = vector.extract_strided_slice %291 {offsets = [0, 8], sizes = [16, 8], strides = [1, 1]} : vector<16x32xbf16> to vector<16x8xbf16>
    %294 = vector.extract_strided_slice %291 {offsets = [0, 16], sizes = [16, 8], strides = [1, 1]} : vector<16x32xbf16> to vector<16x8xbf16>
    %295 = vector.extract_strided_slice %291 {offsets = [0, 24], sizes = [16, 8], strides = [1, 1]} : vector<16x32xbf16> to vector<16x8xbf16>
    %296 = vector.shape_cast %292 : vector<16x8xbf16> to vector<1x16x8xbf16>
    %297 = vector.shape_cast %293 : vector<16x8xbf16> to vector<1x16x8xbf16>
    %298 = vector.shape_cast %294 : vector<16x8xbf16> to vector<1x16x8xbf16>
    %299 = vector.shape_cast %295 : vector<16x8xbf16> to vector<1x16x8xbf16>
    %300 = tpu.concatenate %296, %297, %298, %299 in 0 : vector<1x16x8xbf16>, vector<1x16x8xbf16>, vector<1x16x8xbf16>, vector<1x16x8xbf16> -> vector<4x16x8xbf16>
    %301 = vector.shape_cast %300 : vector<4x16x8xbf16> to vector<8x8x8xbf16>
    %302 = arith.truncf %287 : vector<16x32xf32> to vector<16x32xbf16>
    %303 = vector.extract_strided_slice %302 {offsets = [0, 0], sizes = [16, 8], strides = [1, 1]} : vector<16x32xbf16> to vector<16x8xbf16>
    %304 = vector.extract_strided_slice %302 {offsets = [0, 8], sizes = [16, 8], strides = [1, 1]} : vector<16x32xbf16> to vector<16x8xbf16>
    %305 = vector.extract_strided_slice %302 {offsets = [0, 16], sizes = [16, 8], strides = [1, 1]} : vector<16x32xbf16> to vector<16x8xbf16>
    %306 = vector.extract_strided_slice %302 {offsets = [0, 24], sizes = [16, 8], strides = [1, 1]} : vector<16x32xbf16> to vector<16x8xbf16>
    %307 = vector.shape_cast %303 : vector<16x8xbf16> to vector<1x16x8xbf16>
    %308 = vector.shape_cast %304 : vector<16x8xbf16> to vector<1x16x8xbf16>
    %309 = vector.shape_cast %305 : vector<16x8xbf16> to vector<1x16x8xbf16>
    %310 = vector.shape_cast %306 : vector<16x8xbf16> to vector<1x16x8xbf16>
    %311 = tpu.concatenate %307, %308, %309, %310 in 0 : vector<1x16x8xbf16>, vector<1x16x8xbf16>, vector<1x16x8xbf16>, vector<1x16x8xbf16> -> vector<4x16x8xbf16>
    %312 = vector.shape_cast %311 : vector<4x16x8xbf16> to vector<8x8x8xbf16>
    %313 = arith.truncf %290 : vector<16x32xf32> to vector<16x32xbf16>
    %314 = vector.extract_strided_slice %313 {offsets = [0, 0], sizes = [16, 8], strides = [1, 1]} : vector<16x32xbf16> to vector<16x8xbf16>
    %315 = vector.extract_strided_slice %313 {offsets = [0, 8], sizes = [16, 8], strides = [1, 1]} : vector<16x32xbf16> to vector<16x8xbf16>
    %316 = vector.extract_strided_slice %313 {offsets = [0, 16], sizes = [16, 8], strides = [1, 1]} : vector<16x32xbf16> to vector<16x8xbf16>
    %317 = vector.extract_strided_slice %313 {offsets = [0, 24], sizes = [16, 8], strides = [1, 1]} : vector<16x32xbf16> to vector<16x8xbf16>
    %318 = vector.shape_cast %314 : vector<16x8xbf16> to vector<1x16x8xbf16>
    %319 = vector.shape_cast %315 : vector<16x8xbf16> to vector<1x16x8xbf16>
    %320 = vector.shape_cast %316 : vector<16x8xbf16> to vector<1x16x8xbf16>
    %321 = vector.shape_cast %317 : vector<16x8xbf16> to vector<1x16x8xbf16>
    %322 = tpu.concatenate %318, %319, %320, %321 in 0 : vector<1x16x8xbf16>, vector<1x16x8xbf16>, vector<1x16x8xbf16>, vector<1x16x8xbf16> -> vector<4x16x8xbf16>
    %323 = vector.shape_cast %322 : vector<4x16x8xbf16> to vector<8x8x8xbf16>
    "tpu.trace_start"() <{level = 10 : i32, message = "gme,gne->gmn"}> : () -> ()
    %cst_123 = arith.constant dense<0.000000e+00> : vector<8x8x8xf32>
    %324 = tpu.matmul %301, %312, %cst_123 {dimension_numbers = #tpu.dot_dimension_numbers<[2], [2], [1], [1], [0, 0, 0, 1, 1, 1], [0], [0]>} : vector<8x8x8xbf16>, vector<8x8x8xbf16>, vector<8x8x8xf32> -> vector<8x8x8xf32>
    "tpu.trace_stop"() : () -> ()
    %cst_124 = arith.constant dense<0xFF800000> : vector<8x8xf32>
    %325 = vector.multi_reduction <maximumf>, %324, %cst_124 [2] : vector<8x8x8xf32> to vector<8x8xf32>
    %326 = vector.shape_cast %325 : vector<8x8xf32> to vector<8x8x1xf32>
    %327 = vector.broadcast %326 : vector<8x8x1xf32> to vector<8x8x8xf32>
    %328 = arith.subf %324, %327 : vector<8x8x8xf32>
    %329 = math.exp %328 : vector<8x8x8xf32>
    %cst_125 = arith.constant dense<0.000000e+00> : vector<8x8xf32>
    %330 = vector.multi_reduction <add>, %329, %cst_125 [2] : vector<8x8x8xf32> to vector<8x8xf32>
    %331 = vector.shape_cast %330 : vector<8x8xf32> to vector<8x8x1xf32>
    %332 = tpu.reciprocal %331 : vector<8x8x1xf32> -> vector<8x8x1xf32>
    %333 = vector.broadcast %332 : vector<8x8x1xf32> to vector<8x8x8xf32>
    %334 = arith.mulf %329, %333 : vector<8x8x8xf32>
    %335 = arith.truncf %334 : vector<8x8x8xf32> to vector<8x8x8xbf16>
    "tpu.trace_start"() <{level = 10 : i32, message = "gmn,gne->gme"}> : () -> ()
    %cst_126 = arith.constant dense<0.000000e+00> : vector<8x8x8xf32>
    %336 = tpu.matmul %335, %323, %cst_126 {dimension_numbers = #tpu.dot_dimension_numbers<[2], [1], [1], [2], [0, 0, 0, 1, 1, 2], [0], [0]>} : vector<8x8x8xbf16>, vector<8x8x8xbf16>, vector<8x8x8xf32> -> vector<8x8x8xf32>
    "tpu.trace_stop"() : () -> ()
    %337 = vector.shape_cast %336 : vector<8x8x8xf32> to vector<4x16x8xf32>
    %338 = vector.extract_strided_slice %337 {offsets = [0, 0, 0], sizes = [1, 16, 8], strides = [1, 1, 1]} : vector<4x16x8xf32> to vector<1x16x8xf32>
    %339 = vector.shape_cast %338 : vector<1x16x8xf32> to vector<16x8xf32>
    %340 = vector.extract_strided_slice %337 {offsets = [1, 0, 0], sizes = [1, 16, 8], strides = [1, 1, 1]} : vector<4x16x8xf32> to vector<1x16x8xf32>
    %341 = vector.shape_cast %340 : vector<1x16x8xf32> to vector<16x8xf32>
    %342 = vector.extract_strided_slice %337 {offsets = [2, 0, 0], sizes = [1, 16, 8], strides = [1, 1, 1]} : vector<4x16x8xf32> to vector<1x16x8xf32>
    %343 = vector.shape_cast %342 : vector<1x16x8xf32> to vector<16x8xf32>
    %344 = vector.extract_strided_slice %337 {offsets = [3, 0, 0], sizes = [1, 16, 8], strides = [1, 1, 1]} : vector<4x16x8xf32> to vector<1x16x8xf32>
    %345 = vector.shape_cast %344 : vector<1x16x8xf32> to vector<16x8xf32>
    %346 = tpu.concatenate %339, %341, %343, %345 in 1 : vector<16x8xf32>, vector<16x8xf32>, vector<16x8xf32>, vector<16x8xf32> -> vector<16x32xf32>
    %347 = arith.truncf %346 : vector<16x32xf32> to vector<16x32xbf16>
    %cst_127 = arith.constant dense<0.000000e+00> : vector<16x32xf32>
    %348 = tpu.matmul %347, %272, %cst_127 {dimension_numbers = #tpu.dot_dimension_numbers<[1], [0], [0], [1], [0, 0, 1, 1], [], []>} : vector<16x32xbf16>, vector<32x32xbf16>, vector<16x32xf32> -> vector<16x32xf32>
    %349 = vector.broadcast %280 : vector<1x32xf32> to vector<16x32xf32>
    %350 = arith.addf %348, %349 : vector<16x32xf32>
    %c4 = arith.constant 4 : index
    %c0_128 = arith.constant 0 : index
    %c0_129 = arith.constant 0 : index
    %351 = vector.load %arg3[%c4, %c0_128, %c0_129] : memref<5x32x32xbf16, #tpu.memory_space<vmem>>, vector<1x32x32xbf16>
    %352 = vector.shape_cast %351 : vector<1x32x32xbf16> to vector<32x32xbf16>
    %c4_130 = arith.constant 4 : index
    %c0_131 = arith.constant 0 : index
    %c0_132 = arith.constant 0 : index
    %353 = vector.load %arg5[%c4_130, %c0_131, %c0_132] : memref<5x32x32xbf16, #tpu.memory_space<vmem>>, vector<1x32x32xbf16>
    %354 = vector.shape_cast %353 : vector<1x32x32xbf16> to vector<32x32xbf16>
    %c4_133 = arith.constant 4 : index
    %c0_134 = arith.constant 0 : index
    %c0_135 = arith.constant 0 : index
    %355 = vector.load %arg7[%c4_133, %c0_134, %c0_135] : memref<5x32x32xbf16, #tpu.memory_space<vmem>>, vector<1x32x32xbf16>
    %356 = vector.shape_cast %355 : vector<1x32x32xbf16> to vector<32x32xbf16>
    %c4_136 = arith.constant 4 : index
    %c0_137 = arith.constant 0 : index
    %c0_138 = arith.constant 0 : index
    %357 = vector.load %arg9[%c4_136, %c0_137, %c0_138] : memref<5x32x32xbf16, #tpu.memory_space<vmem>>, vector<1x32x32xbf16>
    %358 = vector.shape_cast %357 : vector<1x32x32xbf16> to vector<32x32xbf16>
    %c4_139 = arith.constant 4 : index
    %c0_140 = arith.constant 0 : index
    %c0_141 = arith.constant 0 : index
    %359 = vector.load %arg4[%c4_139, %c0_140, %c0_141] : memref<5x1x32xf32, #tpu.memory_space<vmem>>, vector<1x1x32xf32>
    %360 = vector.shape_cast %359 : vector<1x1x32xf32> to vector<1x32xf32>
    %c4_142 = arith.constant 4 : index
    %c0_143 = arith.constant 0 : index
    %c0_144 = arith.constant 0 : index
    %361 = vector.load %arg6[%c4_142, %c0_143, %c0_144] : memref<5x1x32xf32, #tpu.memory_space<vmem>>, vector<1x1x32xf32>
    %362 = vector.shape_cast %361 : vector<1x1x32xf32> to vector<1x32xf32>
    %c4_145 = arith.constant 4 : index
    %c0_146 = arith.constant 0 : index
    %c0_147 = arith.constant 0 : index
    %363 = vector.load %arg8[%c4_145, %c0_146, %c0_147] : memref<5x1x32xf32, #tpu.memory_space<vmem>>, vector<1x1x32xf32>
    %364 = vector.shape_cast %363 : vector<1x1x32xf32> to vector<1x32xf32>
    %c4_148 = arith.constant 4 : index
    %c0_149 = arith.constant 0 : index
    %c0_150 = arith.constant 0 : index
    %365 = vector.load %arg10[%c4_148, %c0_149, %c0_150] : memref<5x1x32xf32, #tpu.memory_space<vmem>>, vector<1x1x32xf32>
    %366 = vector.shape_cast %365 : vector<1x1x32xf32> to vector<1x32xf32>
    %367 = arith.truncf %350 : vector<16x32xf32> to vector<16x32xbf16>
    %cst_151 = arith.constant dense<0.000000e+00> : vector<16x32xf32>
    %368 = tpu.matmul %367, %352, %cst_151 {dimension_numbers = #tpu.dot_dimension_numbers<[1], [0], [0], [1], [0, 0, 1, 1], [], []>} : vector<16x32xbf16>, vector<32x32xbf16>, vector<16x32xf32> -> vector<16x32xf32>
    %369 = vector.broadcast %360 : vector<1x32xf32> to vector<16x32xf32>
    %370 = arith.addf %368, %369 : vector<16x32xf32>
    %cst_152 = arith.constant dense<0.000000e+00> : vector<16x32xf32>
    %371 = tpu.matmul %367, %354, %cst_152 {dimension_numbers = #tpu.dot_dimension_numbers<[1], [0], [0], [1], [0, 0, 1, 1], [], []>} : vector<16x32xbf16>, vector<32x32xbf16>, vector<16x32xf32> -> vector<16x32xf32>
    %372 = vector.broadcast %362 : vector<1x32xf32> to vector<16x32xf32>
    %373 = arith.addf %371, %372 : vector<16x32xf32>
    %cst_153 = arith.constant dense<0.000000e+00> : vector<16x32xf32>
    %374 = tpu.matmul %367, %356, %cst_153 {dimension_numbers = #tpu.dot_dimension_numbers<[1], [0], [0], [1], [0, 0, 1, 1], [], []>} : vector<16x32xbf16>, vector<32x32xbf16>, vector<16x32xf32> -> vector<16x32xf32>
    %375 = vector.broadcast %364 : vector<1x32xf32> to vector<16x32xf32>
    %376 = arith.addf %374, %375 : vector<16x32xf32>
    %377 = arith.truncf %370 : vector<16x32xf32> to vector<16x32xbf16>
    %378 = vector.extract_strided_slice %377 {offsets = [0, 0], sizes = [16, 8], strides = [1, 1]} : vector<16x32xbf16> to vector<16x8xbf16>
    %379 = vector.extract_strided_slice %377 {offsets = [0, 8], sizes = [16, 8], strides = [1, 1]} : vector<16x32xbf16> to vector<16x8xbf16>
    %380 = vector.extract_strided_slice %377 {offsets = [0, 16], sizes = [16, 8], strides = [1, 1]} : vector<16x32xbf16> to vector<16x8xbf16>
    %381 = vector.extract_strided_slice %377 {offsets = [0, 24], sizes = [16, 8], strides = [1, 1]} : vector<16x32xbf16> to vector<16x8xbf16>
    %382 = vector.shape_cast %378 : vector<16x8xbf16> to vector<1x16x8xbf16>
    %383 = vector.shape_cast %379 : vector<16x8xbf16> to vector<1x16x8xbf16>
    %384 = vector.shape_cast %380 : vector<16x8xbf16> to vector<1x16x8xbf16>
    %385 = vector.shape_cast %381 : vector<16x8xbf16> to vector<1x16x8xbf16>
    %386 = tpu.concatenate %382, %383, %384, %385 in 0 : vector<1x16x8xbf16>, vector<1x16x8xbf16>, vector<1x16x8xbf16>, vector<1x16x8xbf16> -> vector<4x16x8xbf16>
    %387 = vector.shape_cast %386 : vector<4x16x8xbf16> to vector<8x8x8xbf16>
    %388 = arith.truncf %373 : vector<16x32xf32> to vector<16x32xbf16>
    %389 = vector.extract_strided_slice %388 {offsets = [0, 0], sizes = [16, 8], strides = [1, 1]} : vector<16x32xbf16> to vector<16x8xbf16>
    %390 = vector.extract_strided_slice %388 {offsets = [0, 8], sizes = [16, 8], strides = [1, 1]} : vector<16x32xbf16> to vector<16x8xbf16>
    %391 = vector.extract_strided_slice %388 {offsets = [0, 16], sizes = [16, 8], strides = [1, 1]} : vector<16x32xbf16> to vector<16x8xbf16>
    %392 = vector.extract_strided_slice %388 {offsets = [0, 24], sizes = [16, 8], strides = [1, 1]} : vector<16x32xbf16> to vector<16x8xbf16>
    %393 = vector.shape_cast %389 : vector<16x8xbf16> to vector<1x16x8xbf16>
    %394 = vector.shape_cast %390 : vector<16x8xbf16> to vector<1x16x8xbf16>
    %395 = vector.shape_cast %391 : vector<16x8xbf16> to vector<1x16x8xbf16>
    %396 = vector.shape_cast %392 : vector<16x8xbf16> to vector<1x16x8xbf16>
    %397 = tpu.concatenate %393, %394, %395, %396 in 0 : vector<1x16x8xbf16>, vector<1x16x8xbf16>, vector<1x16x8xbf16>, vector<1x16x8xbf16> -> vector<4x16x8xbf16>
    %398 = vector.shape_cast %397 : vector<4x16x8xbf16> to vector<8x8x8xbf16>
    %399 = arith.truncf %376 : vector<16x32xf32> to vector<16x32xbf16>
    %400 = vector.extract_strided_slice %399 {offsets = [0, 0], sizes = [16, 8], strides = [1, 1]} : vector<16x32xbf16> to vector<16x8xbf16>
    %401 = vector.extract_strided_slice %399 {offsets = [0, 8], sizes = [16, 8], strides = [1, 1]} : vector<16x32xbf16> to vector<16x8xbf16>
    %402 = vector.extract_strided_slice %399 {offsets = [0, 16], sizes = [16, 8], strides = [1, 1]} : vector<16x32xbf16> to vector<16x8xbf16>
    %403 = vector.extract_strided_slice %399 {offsets = [0, 24], sizes = [16, 8], strides = [1, 1]} : vector<16x32xbf16> to vector<16x8xbf16>
    %404 = vector.shape_cast %400 : vector<16x8xbf16> to vector<1x16x8xbf16>
    %405 = vector.shape_cast %401 : vector<16x8xbf16> to vector<1x16x8xbf16>
    %406 = vector.shape_cast %402 : vector<16x8xbf16> to vector<1x16x8xbf16>
    %407 = vector.shape_cast %403 : vector<16x8xbf16> to vector<1x16x8xbf16>
    %408 = tpu.concatenate %404, %405, %406, %407 in 0 : vector<1x16x8xbf16>, vector<1x16x8xbf16>, vector<1x16x8xbf16>, vector<1x16x8xbf16> -> vector<4x16x8xbf16>
    %409 = vector.shape_cast %408 : vector<4x16x8xbf16> to vector<8x8x8xbf16>
    "tpu.trace_start"() <{level = 10 : i32, message = "gme,gne->gmn"}> : () -> ()
    %cst_154 = arith.constant dense<0.000000e+00> : vector<8x8x8xf32>
    %410 = tpu.matmul %387, %398, %cst_154 {dimension_numbers = #tpu.dot_dimension_numbers<[2], [2], [1], [1], [0, 0, 0, 1, 1, 1], [0], [0]>} : vector<8x8x8xbf16>, vector<8x8x8xbf16>, vector<8x8x8xf32> -> vector<8x8x8xf32>
    "tpu.trace_stop"() : () -> ()
    %cst_155 = arith.constant dense<0xFF800000> : vector<8x8xf32>
    %411 = vector.multi_reduction <maximumf>, %410, %cst_155 [2] : vector<8x8x8xf32> to vector<8x8xf32>
    %412 = vector.shape_cast %411 : vector<8x8xf32> to vector<8x8x1xf32>
    %413 = vector.broadcast %412 : vector<8x8x1xf32> to vector<8x8x8xf32>
    %414 = arith.subf %410, %413 : vector<8x8x8xf32>
    %415 = math.exp %414 : vector<8x8x8xf32>
    %cst_156 = arith.constant dense<0.000000e+00> : vector<8x8xf32>
    %416 = vector.multi_reduction <add>, %415, %cst_156 [2] : vector<8x8x8xf32> to vector<8x8xf32>
    %417 = vector.shape_cast %416 : vector<8x8xf32> to vector<8x8x1xf32>
    %418 = tpu.reciprocal %417 : vector<8x8x1xf32> -> vector<8x8x1xf32>
    %419 = vector.broadcast %418 : vector<8x8x1xf32> to vector<8x8x8xf32>
    %420 = arith.mulf %415, %419 : vector<8x8x8xf32>
    %421 = arith.truncf %420 : vector<8x8x8xf32> to vector<8x8x8xbf16>
    "tpu.trace_start"() <{level = 10 : i32, message = "gmn,gne->gme"}> : () -> ()
    %cst_157 = arith.constant dense<0.000000e+00> : vector<8x8x8xf32>
    %422 = tpu.matmul %421, %409, %cst_157 {dimension_numbers = #tpu.dot_dimension_numbers<[2], [1], [1], [2], [0, 0, 0, 1, 1, 2], [0], [0]>} : vector<8x8x8xbf16>, vector<8x8x8xbf16>, vector<8x8x8xf32> -> vector<8x8x8xf32>
    "tpu.trace_stop"() : () -> ()
    %423 = vector.shape_cast %422 : vector<8x8x8xf32> to vector<4x16x8xf32>
    %424 = vector.extract_strided_slice %423 {offsets = [0, 0, 0], sizes = [1, 16, 8], strides = [1, 1, 1]} : vector<4x16x8xf32> to vector<1x16x8xf32>
    %425 = vector.shape_cast %424 : vector<1x16x8xf32> to vector<16x8xf32>
    %426 = vector.extract_strided_slice %423 {offsets = [1, 0, 0], sizes = [1, 16, 8], strides = [1, 1, 1]} : vector<4x16x8xf32> to vector<1x16x8xf32>
    %427 = vector.shape_cast %426 : vector<1x16x8xf32> to vector<16x8xf32>
    %428 = vector.extract_strided_slice %423 {offsets = [2, 0, 0], sizes = [1, 16, 8], strides = [1, 1, 1]} : vector<4x16x8xf32> to vector<1x16x8xf32>
    %429 = vector.shape_cast %428 : vector<1x16x8xf32> to vector<16x8xf32>
    %430 = vector.extract_strided_slice %423 {offsets = [3, 0, 0], sizes = [1, 16, 8], strides = [1, 1, 1]} : vector<4x16x8xf32> to vector<1x16x8xf32>
    %431 = vector.shape_cast %430 : vector<1x16x8xf32> to vector<16x8xf32>
    %432 = tpu.concatenate %425, %427, %429, %431 in 1 : vector<16x8xf32>, vector<16x8xf32>, vector<16x8xf32>, vector<16x8xf32> -> vector<16x32xf32>
    %433 = arith.truncf %432 : vector<16x32xf32> to vector<16x32xbf16>
    %cst_158 = arith.constant dense<0.000000e+00> : vector<16x32xf32>
    %434 = tpu.matmul %433, %358, %cst_158 {dimension_numbers = #tpu.dot_dimension_numbers<[1], [0], [0], [1], [0, 0, 1, 1], [], []>} : vector<16x32xbf16>, vector<32x32xbf16>, vector<16x32xf32> -> vector<16x32xf32>
    %435 = vector.broadcast %366 : vector<1x32xf32> to vector<16x32xf32>
    %436 = arith.addf %434, %435 : vector<16x32xf32>
    %437 = vector.shape_cast %436 : vector<16x32xf32> to vector<2x8x32xf32>
    %c0_159 = arith.constant 0 : index
    %c0_160 = arith.constant 0 : index
    %c0_161 = arith.constant 0 : index
    %438 = vector.load %arg11[%c0_159, %c0_160, %c0_161] : memref<2x8x32xf32, #tpu.memory_space<vmem>>, vector<2x8x32xf32>
    tpu.vector_store %arg11[%c0_159, %c0_160, %c0_161], %437 {strides = array<i32>} : memref<2x8x32xf32, #tpu.memory_space<vmem>>, vector<2x8x32xf32>,
    return
  }
  func.func @transform_0(%arg0: i32) -> (i32, i32, i32) {
    %c0_i32 = arith.constant 0 : i32
    %c0_i32_0 = arith.constant 0 : i32
    %c0_i32_1 = arith.constant 0 : i32
    return %arg0, %c0_i32, %c0_i32_0 : i32, i32, i32
  }
  func.func @transform_1(%arg0: i32) -> (i32, i32) {
    %c0_i32 = arith.constant 0 : i32
    %c0_i32_0 = arith.constant 0 : i32
    %c0_i32_1 = arith.constant 0 : i32
    return %c0_i32, %c0_i32_0 : i32, i32
  }
  func.func @transform_2(%arg0: i32) -> (i32, i32, i32) {
    %c0_i32 = arith.constant 0 : i32
    %c0_i32_0 = arith.constant 0 : i32
    %c0_i32_1 = arith.constant 0 : i32
    %c0_i32_2 = arith.constant 0 : i32
    return %c0_i32, %c0_i32_0, %c0_i32_1 : i32, i32, i32
  }
  func.func @transform_3(%arg0: i32) -> (i32, i32, i32) {
    %c0_i32 = arith.constant 0 : i32
    %c0_i32_0 = arith.constant 0 : i32
    %c0_i32_1 = arith.constant 0 : i32
    %c0_i32_2 = arith.constant 0 : i32
    return %c0_i32, %c0_i32_0, %c0_i32_1 : i32, i32, i32
  }
  func.func @transform_4(%arg0: i32) -> (i32, i32, i32) {
    %c0_i32 = arith.constant 0 : i32
    %c0_i32_0 = arith.constant 0 : i32
    %c0_i32_1 = arith.constant 0 : i32
    %c0_i32_2 = arith.constant 0 : i32
    return %c0_i32, %c0_i32_0, %c0_i32_1 : i32, i32, i32
  }
  func.func @transform_5(%arg0: i32) -> (i32, i32, i32) {
    %c0_i32 = arith.constant 0 : i32
    %c0_i32_0 = arith.constant 0 : i32
    %c0_i32_1 = arith.constant 0 : i32
    %c0_i32_2 = arith.constant 0 : i32
    return %c0_i32, %c0_i32_0, %c0_i32_1 : i32, i32, i32
  }
  func.func @transform_6(%arg0: i32) -> (i32, i32, i32) {
    %c0_i32 = arith.constant 0 : i32
    %c0_i32_0 = arith.constant 0 : i32
    %c0_i32_1 = arith.constant 0 : i32
    %c0_i32_2 = arith.constant 0 : i32
    return %c0_i32, %c0_i32_0, %c0_i32_1 : i32, i32, i32
  }
  func.func @transform_7(%arg0: i32) -> (i32, i32, i32) {
    %c0_i32 = arith.constant 0 : i32
    %c0_i32_0 = arith.constant 0 : i32
    %c0_i32_1 = arith.constant 0 : i32
    %c0_i32_2 = arith.constant 0 : i32
    return %c0_i32, %c0_i32_0, %c0_i32_1 : i32, i32, i32
  }
  func.func @transform_8(%arg0: i32) -> (i32, i32, i32) {
    %c0_i32 = arith.constant 0 : i32
    %c0_i32_0 = arith.constant 0 : i32
    %c0_i32_1 = arith.constant 0 : i32
    %c0_i32_2 = arith.constant 0 : i32
    return %c0_i32, %c0_i32_0, %c0_i32_1 : i32, i32, i32
  }
  func.func @transform_9(%arg0: i32) -> (i32, i32, i32) {
    %c0_i32 = arith.constant 0 : i32
    %c0_i32_0 = arith.constant 0 : i32
    %c0_i32_1 = arith.constant 0 : i32
    %c0_i32_2 = arith.constant 0 : i32
    return %c0_i32, %c0_i32_0, %c0_i32_1 : i32, i32, i32
  }
  func.func @transform_10(%arg0: i32) -> (i32, i32, i32) {
    %c0_i32 = arith.constant 0 : i32
    %c0_i32_0 = arith.constant 0 : i32
    %c0_i32_1 = arith.constant 0 : i32
    return %arg0, %c0_i32, %c0_i32_0 : i32, i32, i32
  }
}

</mosaic_0001>

<bundles_post_ra>
// kernel: tpu_custom_call.1
= control target key start
LH: loop header
LB: loop body
LE: loop exit
PB: predicated region body
PF: predicated region fallthrough
CT: control target
= control target key end

     0   :  { %15 = vsyncpa [#allocation3], 0  ;;  %s9432_s0 = inlined_call_operand.hbm [shape: f32[2,16,32], index: 0, kind: input, shape index: {}]   ;;  %s9433_s1 = inlined_call_operand.hbm [shape: bf16[8,32], index: 1, kind: input, shape index: {}]   ;;  %s9434_s2 = inlined_call_operand.hbm [shape: bf16[5,32,32], index: 2, kind: input, shape index: {}]   ;;  %s9435_s3 = inlined_call_operand.vmem [shape: f32[5,1,32], index: 3, kind: input, shape index: {}]   ;;  %s9436_s4 = inlined_call_operand.hbm [shape: bf16[5,32,32], index: 4, kind: input, shape index: {}]   ;;  %s9437_s5 = inlined_call_operand.vmem [shape: f32[5,1,32], index: 5, kind: input, shape index: {}]   ;;  %s9438_s6 = inlined_call_operand.hbm [shape: bf16[5,32,32], index: 6, kind: input, shape index: {}]   ;;  %s9439_s7 = inlined_call_operand.vmem [shape: f32[5,1,32], index: 7, kind: input, shape index: {}]   ;;  %s9440_s8 = inlined_call_operand.hbm [shape: bf16[5,32,32], index: 8, kind: input, shape index: {}]   ;;  %s9441_s9 = inlined_call_operand.vmem [shape: f32[5,1,32], index: 9, kind: input, shape index: {}]   ;;  %s9442_s10 = inlined_call_operand.hbm [shape: f32[2,8,32], index: 10, kind: output, shape index: {}]  }
   0x1   :  { %16 = vsyncpa [#allocation6], 0 }
   0x2   :  { %17 = vsyncpa [#allocation9], 0 }
   0x3   :  { %18 = vsyncpa [#allocation12], 0 }
   0x4   :  { %19 = vsyncpa [#allocation4], 0  ;;  %s8106_s13 = smov [#allocation5]   ;;  %s7942_s17 = scalar_lea.hbm %s9433_s1, 64 }
   0x5   :  { %s38_s14 = sshll.u32 %s8106_s13, 4  ;;  %p7943_p0 = scmp.ne.s32.totalorder %s9433_s1, %s7942_s17  ;;  %s39_s14 = int_to_ptr.vmem [resolvable:$true] %s38_s14 }
   0x6   :  { %p7946_p1 = scmp.lt.u32.totalorder %s7942_s17, %s9433_s1 }
   0x8   :  { %p7948_p2 = pnand %p7946_p1, %p7943_p0 }
   0xa   :  { %7951 = shalt.err (!%p7948_p2)
}
   0xb   :  { %s7952_s22 = scalar_lea.vmem %s39_s14, 64  ;;  %p7957_p4 = scmp.lt.s32.totalorder %s39_s14, %s39_s14 }
   0xc   :  { %p7953_p3 = scmp.ne.s32.totalorder %s39_s14, %s7952_s22  ;;  %p7958_p5 = scmp.lt.s32.totalorder %s7952_s22, %s7952_s22 }
   0xe   :  { %p7959_p6 = por %p7958_p5, %p7957_p4 }
  0x10   :  { %p7960_p7 = pnand %p7959_p6, %p7953_p3 }
  0x12   :  { %7963 = shalt.err (!%p7960_p7)
}
  0x13   :  { %41 = dma.hbm_to_vmem [thread:$0]  %s9433_s1, 64, %s39_s14, [#allocation6]  }
  0x14   :  { %s8107_s25 = smov [#allocation8]   ;;  %s8108_s27 = smov [#allocation2]  }
  0x15   :  { %s61_s26 = sshll.u32 %s8107_s25, 4  ;;  %s25_s28 = sshll.u32 %s8108_s27, 4  ;;  %s62_s26 = int_to_ptr.vmem [resolvable:$true] %s61_s26  ;;  %s26_s28 = int_to_ptr.vmem [resolvable:$true] %s25_s28 }
  0x16   :  { %s7964_s11 = scalar_lea.hbm %s9436_s4, 1280 }
  0x17   :  { %p7965_p8 = scmp.ne.s32.totalorder %s9436_s4, %s7964_s11  ;;  %p7968_p9 = scmp.lt.u32.totalorder %s7964_s11, %s9436_s4 }
  0x19   :  { %p7970_p10 = pnand %p7968_p9, %p7965_p8 }
  0x1b   :  { %7973 = shalt.err (!%p7970_p10)
}
  0x1c   :  { %s7974_s1 = scalar_lea.vmem %s62_s26, 1280  ;;  %p7979_p12 = scmp.lt.s32.totalorder %s62_s26, %s62_s26 }
  0x1d   :  { %p7975_p11 = scmp.ne.s32.totalorder %s62_s26, %s7974_s1  ;;  %p7980_p13 = scmp.lt.s32.totalorder %s7974_s1, %s7974_s1 }
  0x1f   :  { %p7981_p0 = por %p7980_p13, %p7979_p12 }
  0x21   :  { %p7982_p1 = pnand %p7981_p0, %p7975_p11 }
  0x23   :  { %7985 = shalt.err (!%p7982_p1)
}
  0x24   :  { %s8109_s14 = smov 64   ;;  %s8110_s17 = smov 4  }
  0x25   :  { %67 = dma.hbm_to_vmem [thread:$0]  %s9436_s4, 1280, %s62_s26, [#allocation9], %s8109_s14, %s8109_s14, %s8110_s17  }
  0x26   :  { %s7986_s22 = scalar_lea.hbm %s9432_s0, 512 }
  0x27   :  { %p7987_p2 = scmp.ne.s32.totalorder %s9432_s0, %s7986_s22  ;;  %p7990_p3 = scmp.lt.u32.totalorder %s7986_s22, %s9432_s0 }
  0x29   :  { %p7992_p4 = pnand %p7990_p3, %p7987_p2 }
  0x2b   :  { %7995 = shalt.err (!%p7992_p4)
}
  0x2c   :  { %s7996_s29 = scalar_lea.vmem %s26_s28, 512  ;;  %p8001_p6 = scmp.lt.s32.totalorder %s26_s28, %s26_s28 }
  0x2d   :  { %p7997_p5 = scmp.ne.s32.totalorder %s26_s28, %s7996_s29  ;;  %p8002_p7 = scmp.lt.s32.totalorder %s7996_s29, %s7996_s29 }
  0x2f   :  { %p8003_p8 = por %p8002_p7, %p8001_p6 }
  0x31   :  { %p8004_p9 = pnand %p8003_p8, %p7997_p5 }
  0x33   :  { %8007 = shalt.err (!%p8004_p9)
}
  0x34   :  { %s8111_s4 = smov 128   ;;  %s8112_s26 = smov 8  }
  0x35   :  { %31 = dma.hbm_to_vmem [thread:$0]  %s9432_s0, 512, %s26_s28, [#allocation3], %s8111_s4, %s8111_s4, %s8112_s26  }
  0x36   :  { %s8113_s12 = smov [#allocation7]   ;;  %s8114_s15 = smov [#allocation10]  }
  0x37   :  { %s47_s13 = sshll.u32 %s8113_s12, 4  ;;  %s75_s16 = sshll.u32 %s8114_s15, 4  ;;  %s48_s13 = int_to_ptr.vmem [resolvable:$true] %s47_s13  ;;  %s76_s16 = int_to_ptr.vmem [resolvable:$true] %s75_s16 }
  0x38   :  { %s8008_s19 = scalar_lea.hbm %s9434_s2, 1280 }
  0x39   :  { %p8009_p10 = scmp.ne.s32.totalorder %s9434_s2, %s8008_s19  ;;  %p8012_p11 = scmp.lt.u32.totalorder %s8008_s19, %s9434_s2 }
  0x3b   :  { %p8014_p12 = pnand %p8012_p11, %p8009_p10 }
  0x3d   :  { %8017 = shalt.err (!%p8014_p12)
}
  0x3e   :  { %s8018_s0 = scalar_lea.vmem %s48_s13, 1280  ;;  %p8023_p0 = scmp.lt.s32.totalorder %s48_s13, %s48_s13 }
  0x3f   :  { %p8019_p13 = scmp.ne.s32.totalorder %s48_s13, %s8018_s0  ;;  %p8024_p1 = scmp.lt.s32.totalorder %s8018_s0, %s8018_s0 }
  0x41   :  { %p8025_p2 = por %p8024_p1, %p8023_p0 }
  0x43   :  { %p8026_p3 = pnand %p8025_p2, %p8019_p13 }
  0x45   :  { %8029 = shalt.err (!%p8026_p3)
}
  0x46   :  { %53 = dma.hbm_to_vmem [thread:$0]  %s9434_s2, 1280, %s48_s13, [#allocation6], %s8109_s14, %s8109_s14, %s8110_s17  }
  0x47   :  { %s8030_s29 = scalar_lea.hbm %s9438_s6, 1280 }
  0x48   :  { %p8031_p4 = scmp.ne.s32.totalorder %s9438_s6, %s8030_s29  ;;  %p8034_p5 = scmp.lt.u32.totalorder %s8030_s29, %s9438_s6 }
  0x4a   :  { %p8036_p6 = pnand %p8034_p5, %p8031_p4 }
  0x4c   :  { %8039 = shalt.err (!%p8036_p6)
}
  0x4d   :  { %s8040_s1 = scalar_lea.vmem %s76_s16, 1280  ;;  %p8045_p8 = scmp.lt.s32.totalorder %s76_s16, %s76_s16 }
  0x4e   :  { %p8041_p7 = scmp.ne.s32.totalorder %s76_s16, %s8040_s1  ;;  %p8046_p9 = scmp.lt.s32.totalorder %s8040_s1, %s8040_s1 }
  0x50   :  { %p8047_p10 = por %p8046_p9, %p8045_p8 }
  0x52   :  { %p8048_p11 = pnand %p8047_p10, %p8041_p7 }
  0x54   :  { %8051 = shalt.err (!%p8048_p11)
}
  0x55   :  { %81 = dma.hbm_to_vmem [thread:$0]  %s9438_s6, 1280, %s76_s16, [#allocation9], %s8109_s14, %s8109_s14, %s8110_s17  }
  0x56   :  { %s8115_s18 = smov [#allocation11]   ;;  %s8052_s22 = scalar_lea.hbm %s9440_s8, 1280 }
  0x57   :  { %s89_s19 = sshll.u32 %s8115_s18, 4  ;;  %p8053_p12 = scmp.ne.s32.totalorder %s9440_s8, %s8052_s22  ;;  %s90_s19 = int_to_ptr.vmem [resolvable:$true] %s89_s19 }
  0x58   :  { %p8056_p13 = scmp.lt.u32.totalorder %s8052_s22, %s9440_s8 }
  0x5a   :  { %p8058_p0 = pnand %p8056_p13, %p8053_p12 }
  0x5c   :  { %8061 = shalt.err (!%p8058_p0)
}
  0x5d   :  { %s8062_s25 = scalar_lea.vmem %s90_s19, 1280  ;;  %p8067_p2 = scmp.lt.s32.totalorder %s90_s19, %s90_s19 }
  0x5e   :  { %p8063_p1 = scmp.ne.s32.totalorder %s90_s19, %s8062_s25  ;;  %p8068_p3 = scmp.lt.s32.totalorder %s8062_s25, %s8062_s25 }
  0x60   :  { %p8069_p4 = por %p8068_p3, %p8067_p2 }
  0x62   :  { %p8070_p5 = pnand %p8069_p4, %p8063_p1 }
  0x64   :  { %8073 = shalt.err (!%p8070_p5)
}
  0x65   :  { %95 = dma.hbm_to_vmem [thread:$0]  %s9440_s8, 1280, %s90_s19, [#allocation12], %s8109_s14, %s8109_s14, %s8110_s17  }
  0x66   :  { %8096 = dma.done.wait [#allocation3], 512  }
  0x67   :  { %8097 = vsyncadd [#allocation3], 4294966784 }
  0x68   :  { %8098 = dma.done.wait [#allocation6], 1344  }
  0x69   :  { %8099 = vsyncadd [#allocation6], 4294965952 }
  0x6a   :  { %8100 = dma.done.wait [#allocation9], 2560  }
  0x6b   :  { %8101 = vsyncadd [#allocation9], 4294964736 }
  0x6c   :  { %8102 = dma.done.wait [#allocation12], 1280  }
  0x6d   :  { %8103 = vsyncadd [#allocation12], 4294966016  ;;  %v7677_v0 = vld [vmem:[#allocation7] sm:$0xff]   ;;  %v7678_v1 = vld [vmem:[#allocation8] sm:$0xff]   ;;  %vm162_vm0 = vcmask 261120   ;;  %v8116_v12 = vmov 0.0  }
  0x6e   :  { %6914 = vmatprep.subr.bf16.mxu0 %v7677_v0  ;;  %v7679_v2 = vld [vmem:[#allocation7 + $0x8] sm:$0xff]   ;;  %6922 = vmatprep.subr.bf16.mxu1 %v7678_v1  ;;  %v7680_v3 = vld [vmem:[#allocation8 + $0x8] sm:$0xff]   ;;  %v7681_v10 = vld [vmem:[#allocation10] sm:$0xff]   ;;  %vm8117_vm1 = vmmov 0   ;;  %vm406_vm2 = vcmask 64512   ;;  %s8118_s29 = smov 120  }
  0x6f   :  { %6915 = vmatpush3.bf16.msra.mxu0 %v7677_v0  ;;  %6923 = vmatpush3.bf16.msra.mxu1 %v7678_v1  ;;  %v117_v4 = vld [vmem:[#allocation2] sm:$0xff]  ;;  %v118_v5 = vld [vmem:[#allocation2 + $0x8] sm:$0xff]  ;;  %v119_v6 = vld [vmem:[#allocation2 + $0x10] sm:$0xff]  ;;  %s8119_s30 = smov 112   ;;  %s8120_s11 = smov 104   ;;  %vm783_vm3 = vcmask 130048  }
  0x70   :  { %6916 = vmatprep.subr.bf16.mxu0 %v7679_v2  ;;  %6924 = vmatprep.subr.bf16.mxu1 %v7680_v3  ;;  %v142_v7 = vpack.c.bf16 %v118_v5, %v117_v4  ;;  %v120_v8 = vld [vmem:[#allocation2 + $0x18] sm:$0xff]  ;;  %v7682_v11 = vld [vmem:[#allocation10 + $0x8] sm:$0xff]   ;;  %v6427_v13 = vld [vmem:[%s9435_s3] ss:$0 sm:$0xff]  ;;  %s8121_s1 = smov 16   ;;  %s8122_s2 = smov 24  }
  0x71   :  { %v143_v9 = vpack.c.bf16 %v120_v8, %v119_v6  ;;  %v6432_v17 = vld [vmem:[%s9437_s5] ss:$0 sm:$0xff]  ;;  %vm1376_vm4 = vcmask 195584   ;;  %vm4740_vm5 = vcmask 1043456  }
  0x72   :  { %6918 = vmatprep.mubr.msk.bf16.mxu0 %vm162_vm0, %v142_v7  ;;  %6926 = vmatprep.mubr.msk.bf16.mxu1 %vm162_vm0, %v142_v7  ;;  %v6437_v38 = vld [vmem:[%s9439_s7] ss:$0 sm:$0xff] }
  0x73   :  { %6917 = vmatpush3.bf16.msra.mxu0 %v7679_v2  ;;  %6925 = vmatpush3.bf16.msra.mxu1 %v7680_v3 }
  0x74   :  { %6930 = vmatprep.subr.bf16.mxu0 %v7681_v10  ;;  %6938 = vmatprep.subr.bf16.mxu1 %v8116_v12 }
  0x76   :  { %6919 = vmatmul.mubr.msk.bf16.vlgmr.msra.gmra.mrb[0].mxu0 %vm162_vm0, %v143_v9  ;;  %6927 = vmatmul.mubr.msk.bf16.vlgmr.msra.gmra.mrb[0].mxu1 %vm162_vm0, %v143_v9 }
  0x77   :  { %6931 = vmatpush3.bf16.msra.mxu0 %v7681_v10  ;;  %6934 = vmatprep.mubr.msk.bf16.mxu0 %vm162_vm0, %v142_v7 }
  0x78   :  { %6932 = vmatprep.subr.bf16.mxu0 %v7682_v11  ;;  %6940 = vmatprep.mubr.msk.bf16.mxu1 %vm8117_vm1, %v8116_v12 }
  0x7b   :  { %6933 = vmatpush3.bf16.msra.mxu0 %v7682_v11 }
  0x7c   :  { %6944 = vmatprep.subr.bf16.mxu0 %v8116_v12 }
  0x7e   :  { %6935 = vmatmul.mubr.msk.bf16.vlgmr.msra.gmra.mrb[4].mxu0 %vm162_vm0, %v143_v9 }
  0x7f   :  { %6946 = vmatprep.mubr.msk.bf16.mxu0 %vm8117_vm1, %v8116_v12 }
 0x149   :  { %v6920_v14 = vpop.f32.mrb[0].mxu0  ;;  %v6928_v16 = vpop.f32.mrb[0].mxu1 }
 0x14a   :  { %v212_v15 = vadd.f32 %v6920_v14, %v6427_v13  ;;  %v203_v18 = vpop.f32.mrb[1].mxu0  ;;  %v270_v20 = vpop.f32.mrb[1].mxu1  ;;  %v279_v25 = vadd.f32 %v6928_v16, %v6432_v17 }
 0x14b   :  { %v204_v19 = vadd.f32 %v6427_v13, %v203_v18  ;;  %v6921_v21 = vpop.f32.mrb[2].mxu0  ;;  %v6929_v23 = vpop.f32.mrb[2].mxu1  ;;  %v271_v29 = vadd.f32 %v6432_v17, %v270_v20 }
 0x14c   :  { %v215_v22 = vadd.f32 %v6921_v21, %v6427_v13  ;;  %v206_v24 = vpop.f32.mrb[3].mxu0  ;;  %v282_v26 = vadd.f32 %v6929_v23, %v6432_v17  ;;  %v273_v28 = vpop.f32.mrb[3].mxu1 }
 0x14d   :  { %v207_v27 = vadd.f32 %v6427_v13, %v206_v24  ;;  %v274_v31 = vadd.f32 %v6432_v17, %v273_v28 }
 0x14e   :  { %v353_v30 = vpack.c.bf16 %v215_v22, %v212_v15  ;;  %v369_v32 = vpack.c.bf16 %v282_v26, %v279_v25 }
 0x14f   :  { %v352_v33 = vpack.c.bf16 %v207_v27, %v204_v19  ;;  %v368_v34 = vpack.c.bf16 %v274_v31, %v271_v29 }
 0x150   :  { %v458_v35 = vsel %vm406_vm2, %v369_v32, 0 }
 0x151   :  { %356 = vrot.lane.b32.xlu1 %v352_v33, %s8118_s29  ;;  %372 = vrot.lane.b32.xlu0 %v368_v34, %s8118_s29  ;;  %v411_v36 = vsel %vm406_vm2, %v368_v34, 0  ;;  %v6936_v37 = vpop.f32.mrb[4].mxu0 }
 0x152   :  { %6945 = vmatpush3.bf16.xpose.msra.mxu0 %v458_v35  ;;  %6939 = vmatpush3.bf16.xpose.msra.mxu1 %v411_v36  ;;  %v346_v39 = vadd.f32 %v6936_v37, %v6437_v38  ;;  %v337_v40 = vpop.f32.mrb[5].mxu0 }
 0x153   :  { %6956 = vmatprep.subr.bf16.mxu0 %v8116_v12  ;;  %6950 = vmatprep.subr.bf16.mxu1 %v8116_v12  ;;  %v338_v41 = vadd.f32 %v6437_v38, %v337_v40  ;;  %v6937_v42 = vpop.f32.mrb[6].mxu0 }
 0x154   :  { %v349_v43 = vadd.f32 %v6937_v42, %v6437_v38  ;;  %v340_v44 = vpop.f32.mrb[7].mxu0 }
 0x155   :  { %376 = vrot.lane.b32.xlu1 %v368_v34, %s8119_s30  ;;  %374 = vrot.lane.b32.xlu0 %v369_v32, %s8118_s29  ;;  %v341_v45 = vadd.f32 %v6437_v38, %v340_v44 }
 0x156   :  { %v8309_v46 = vpack.c.bf16 %v349_v43, %v346_v39 }
 0x157   :  { %v8311_v47 = vpack.c.bf16 %v341_v45, %v338_v41 }
 0x159   :  { %6947 = vmatmul.mubr.msk.bf16.vlgmr.msra.gmra.mrb[8].mxu0 %vm406_vm2, %v353_v30  ;;  %378 = vrot.lane.b32.xlu1 %v369_v32, %s8119_s30 }
 0x15a   :  { %358 = vrot.lane.b32.xlu0 %v353_v30, %s8118_s29  ;;  %6941 = vmatmul.mubr.msk.bf16.vlgmr.msra.gmra.mrb[4].mxu1 %vm406_vm2, %v352_v33 }
 0x15b   :  { %6952 = vmatprep.mubr.msk.bf16.mxu1 %vm8117_vm1, %v8116_v12  ;;  %6958 = vmatprep.mubr.msk.bf16.mxu0 %vm8117_vm1, %v8116_v12 }
 0x15d   :  { %380 = vrot.lane.b32.xlu1 %v368_v34, %s8120_s11 }
 0x15e   :  { %360 = vrot.lane.b32.xlu0 %v352_v33, %s8119_s30 }
 0x161   :  { %382 = vrot.lane.b32.xlu1 %v369_v32, %s8120_s11 }
 0x162   :  { %362 = vrot.lane.b32.xlu0 %v353_v30, %s8119_s30 }
 0x165   :  { %366 = vrot.lane.b32.xlu1 %v353_v30, %s8120_s11 }
 0x166   :  { %364 = vrot.lane.b32.xlu0 %v352_v33, %s8120_s11 }
 0x1c3   :  { %v357_v48 = vpop.permute.xlu1 %356  ;;  %v373_v49 = vpop.permute.xlu0 %372 }
 0x1c4   :  { %v505_v50 = vsel %vm406_vm2, %v373_v49, 0 }
 0x1c5   :  { %6951 = vmatpush3.bf16.xpose.msra.mxu1 %v505_v50 }
 0x1c6   :  { %6962 = vmatprep.subr.bf16.mxu1 %v8116_v12 }
 0x1c7   :  { %v377_v51 = vpop.permute.xlu1 %376  ;;  %v375_v52 = vpop.permute.xlu0 %374 }
 0x1c8   :  { %v552_v53 = vsel %vm406_vm2, %v375_v52, 0  ;;  %v599_v56 = vsel %vm406_vm2, %v377_v51, 0 }
 0x1c9   :  { %6957 = vmatpush3.bf16.xpose.msra.mxu0 %v552_v53 }
 0x1ca   :  { %6968 = vmatprep.subr.bf16.mxu0 %v8116_v12 }
 0x1cb   :  { %v379_v54 = vpop.permute.xlu1 %378 }
 0x1cc   :  { %v359_v55 = vpop.permute.xlu0 %358  ;;  %6953 = vmatmul.mubr.msk.bf16.vlgmr.msra.gmra.mrb[8].mxu1 %vm406_vm2, %v357_v48  ;;  %v646_v59 = vsel %vm406_vm2, %v379_v54, 0 }
 0x1cd   :  { %6963 = vmatpush3.bf16.xpose.msra.mxu1 %v599_v56  ;;  %6964 = vmatprep.mubr.msk.bf16.mxu1 %vm8117_vm1, %v8116_v12 }
 0x1ce   :  { %6974 = vmatprep.subr.bf16.mxu1 %v8116_v12 }
 0x1cf   :  { %v381_v58 = vpop.permute.xlu1 %380 }
 0x1d0   :  { %v361_v57 = vpop.permute.xlu0 %360  ;;  %6959 = vmatmul.mubr.msk.bf16.vlgmr.msra.gmra.mrb[12].mxu0 %vm406_vm2, %v359_v55  ;;  %v693_v60 = vsel %vm406_vm2, %v381_v58, 0 }
 0x1d1   :  { %6969 = vmatpush3.bf16.xpose.msra.mxu0 %v646_v59  ;;  %6970 = vmatprep.mubr.msk.bf16.mxu0 %vm8117_vm1, %v8116_v12 }
 0x1d2   :  { %6980 = vmatprep.subr.bf16.mxu0 %v8116_v12 }
 0x1d3   :  { %v383_v62 = vpop.permute.xlu1 %382 }
 0x1d4   :  { %6965 = vmatmul.mubr.msk.bf16.vlgmr.msra.gmra.mrb[12].mxu1 %vm406_vm2, %v361_v57  ;;  %v363_v61 = vpop.permute.xlu0 %362  ;;  %v740_v63 = vsel %vm406_vm2, %v383_v62, 0 }
 0x1d5   :  { %6975 = vmatpush3.bf16.xpose.msra.mxu1 %v693_v60  ;;  %6976 = vmatprep.mubr.msk.bf16.mxu1 %vm8117_vm1, %v8116_v12 }
 0x1d6   :  { %6986 = vmatprep.subr.bf16.mxu1 %v8116_v12 }
 0x1d7   :  { %v367_v1 = vpop.permute.xlu1 %366 }
 0x1d8   :  { %6971 = vmatmul.mubr.msk.bf16.vlgmr.msra.gmra.mrb[16].mxu0 %vm406_vm2, %v363_v61  ;;  %v365_v0 = vpop.permute.xlu0 %364 }
 0x1d9   :  { %6981 = vmatpush3.bf16.xpose.msra.mxu0 %v740_v63  ;;  %6982 = vmatprep.mubr.msk.bf16.mxu0 %vm8117_vm1, %v8116_v12 }
 0x1da   :  { %6992 = vmatprep.subr.bf16.mxu0 %v8116_v12 }
 0x1dc   :  { %6977 = vmatmul.mubr.msk.bf16.vlgmr.msra.gmra.mrb[16].mxu1 %vm406_vm2, %v365_v0 }
 0x1dd   :  { %6987 = vmatpush3.bf16.msra.mxu1 %v8311_v47  ;;  %6988 = vmatprep.mubr.msk.bf16.mxu1 %vm8117_vm1, %v8116_v12 }
 0x1de   :  { %6998 = vmatprep.subr.bf16.mxu1 %v8116_v12 }
 0x1e0   :  { %6983 = vmatmul.mubr.msk.bf16.vlgmr.msra.gmra.mrb[20].mxu0 %vm406_vm2, %v367_v1 }
 0x1e1   :  { %6993 = vmatpush3.bf16.msra.mxu0 %v8309_v46  ;;  %6994 = vmatprep.mubr.msk.bf16.mxu0 %vm8117_vm1, %v8116_v12 }
 0x1e2   :  { %7004 = vmatprep.subr.bf16.mxu0 %v8116_v12 }
 0x22c   :  { %v8347_v2 = vpop.f32.mrb[8].mxu0 }
 0x22d   :  { %v8349_v3 = vpop.f32.mrb[4].mxu1  ;;  %v6948_v4 = vpop.f32.mrb[9].mxu0  ;;  %v790_v5 = vsel %vm783_vm3, %v8347_v2, -inf }
 0x22e   :  { %v8353_v6 = vpop.f32.mrb[10].mxu0  ;;  %791 = vmax.xlane.f32.xlu0 %v790_v5  ;;  %v6942_v7 = vpop.f32.mrb[5].mxu1  ;;  %v784_v13 = vsel %vm783_vm3, %v8349_v3, -inf }
 0x22f   :  { %v8355_v8 = vpop.f32.mrb[6].mxu1  ;;  %v6949_v9 = vpop.f32.mrb[11].mxu0  ;;  %v793_v14 = vsel %vm783_vm3, %v8353_v6, -inf }
 0x230   :  { %v6943_v10 = vpop.f32.mrb[7].mxu1  ;;  %v787_v11 = vsel %vm783_vm3, %v8355_v8, -inf }
 0x231   :  { %788 = vmax.xlane.f32.xlu1 %v787_v11 }
 0x232   :  { %785 = vmax.xlane.f32.xlu0 %v784_v13 }
 0x236   :  { %794 = vmax.xlane.f32.xlu0 %v793_v14 }
 0x29f   :  { %v8363_v15 = vpop.f32.mrb[8].mxu1 }
 0x2a0   :  { %v6954_v16 = vpop.f32.mrb[9].mxu1  ;;  %v796_v28 = vsel %vm783_vm3, %v8363_v15, -inf }
 0x2a1   :  { %v8365_v17 = vpop.f32.mrb[10].mxu1 }
 0x2a2   :  { %v6955_v18 = vpop.f32.mrb[11].mxu1  ;;  %v799_v19 = vsel %vm783_vm3, %v8365_v17, -inf }
 0x2a3   :  { %v8369_v20 = vpop.f32.mrb[12].mxu0  ;;  %800 = vmax.xlane.f32.xlu0 %v799_v19 }
 0x2a4   :  { %v6960_v21 = vpop.f32.mrb[13].mxu0  ;;  %v802_v22 = vsel %vm783_vm3, %v8369_v20, -inf }
 0x2a5   :  { %v8373_v23 = vpop.f32.mrb[14].mxu0  ;;  %803 = vmax.xlane.f32.xlu1 %v802_v22 }
 0x2a6   :  { %v6961_v24 = vpop.f32.mrb[15].mxu0  ;;  %v805_v25 = vsel %vm783_vm3, %v8373_v23, -inf }
 0x2a7   :  { %806 = vmax.xlane.f32.xlu0 %v805_v25  ;;  %v8377_v26 = vpop.f32.mrb[12].mxu1 }
 0x2a8   :  { %v6966_v27 = vpop.f32.mrb[13].mxu1  ;;  %v808_v40 = vsel %vm783_vm3, %v8377_v26, -inf }
 0x2a9   :  { %797 = vmax.xlane.f32.xlu1 %v796_v28  ;;  %v8381_v29 = vpop.f32.mrb[14].mxu1 }
 0x2aa   :  { %v6967_v30 = vpop.f32.mrb[15].mxu1  ;;  %v811_v31 = vsel %vm783_vm3, %v8381_v29, -inf }
 0x2ab   :  { %v8385_v32 = vpop.f32.mrb[16].mxu0  ;;  %812 = vmax.xlane.f32.xlu0 %v811_v31 }
 0x2ac   :  { %v6972_v33 = vpop.f32.mrb[17].mxu0  ;;  %v814_v34 = vsel %vm783_vm3, %v8385_v32, -inf }
 0x2ad   :  { %v8389_v35 = vpop.f32.mrb[18].mxu0  ;;  %815 = vmax.xlane.f32.xlu1 %v814_v34 }
 0x2ae   :  { %v6973_v36 = vpop.f32.mrb[19].mxu0  ;;  %v817_v37 = vsel %vm783_vm3, %v8389_v35, -inf }
 0x2af   :  { %818 = vmax.xlane.f32.xlu0 %v817_v37  ;;  %v8393_v38 = vpop.f32.mrb[16].mxu1 }
 0x2b0   :  { %v6978_v39 = vpop.f32.mrb[17].mxu1  ;;  %v820_v52 = vsel %vm783_vm3, %v8393_v38, -inf }
 0x2b1   :  { %809 = vmax.xlane.f32.xlu1 %v808_v40  ;;  %v8397_v41 = vpop.f32.mrb[18].mxu1 }
 0x2b2   :  { %v6979_v42 = vpop.f32.mrb[19].mxu1  ;;  %v823_v43 = vsel %vm783_vm3, %v8397_v41, -inf }
 0x2b3   :  { %v8401_v44 = vpop.f32.mrb[20].mxu0  ;;  %824 = vmax.xlane.f32.xlu0 %v823_v43 }
 0x2b4   :  { %v6984_v45 = vpop.f32.mrb[21].mxu0  ;;  %v826_v48 = vsel %vm783_vm3, %v8401_v44, -inf }
 0x2b5   :  { %v8405_v49 = vpop.f32.mrb[22].mxu0  ;;  %827 = vmax.xlane.f32.xlu1 %v826_v48 }
 0x2b6   :  { %v6985_v50 = vpop.f32.mrb[23].mxu0  ;;  %v829_v51 = vsel %vm783_vm3, %v8405_v49, -inf }
 0x2b7   :  { %830 = vmax.xlane.f32.xlu0 %v829_v51 }
 0x2b9   :  { %821 = vmax.xlane.f32.xlu1 %v820_v52 }
 0x2bb   :  { %v792_v53 = vpop.xlane.xlu0 %791 }
 0x2bc   :  { %v834_v61 = vsub.f32 %v8347_v2, %v792_v53 }
 0x2be   :  { %v789_v57 = vpop.xlane.xlu1 %788  ;;  %v852_v62 = vmul.f32 1.442695, %v834_v61 }
 0x2bf   :  { %v786_v54 = vpop.xlane.xlu0 %785  ;;  %v833_v58 = vsub.f32 %v8355_v8, %v789_v57 }
 0x2c0   :  { %v832_v63 = vsub.f32 %v8349_v3, %v786_v54 }
 0x2c1   :  { %v850_v60 = vmul.f32 1.442695, %v833_v58 }
 0x2c2   :  { %v848_v1 = vmul.f32 1.442695, %v832_v63 }
 0x2c3   :  { %v795_v55 = vpop.xlane.xlu0 %794 }
 0x2c4   :  { %v835_v56 = vsub.f32 %v8353_v6, %v795_v55 }
 0x2c6   :  { %v854_v59 = vmul.f32 1.442695, %v835_v56 }
 0x2c8   :  { %7718 = vpow2.f32 %v854_v59 }
 0x2c9   :  { %7720 = vpow2.f32 %v850_v60 }
 0x2ca   :  { %388 = vrot.lane.b32.xlu1 %v8311_v47, %s8118_s29  ;;  %7722 = vpow2.f32 %v852_v62 }
 0x2cb   :  { %7724 = vpow2.f32 %v848_v1 }
 0x2cd   :  { %390 = vrot.lane.b32.xlu0 %v8309_v46, %s8118_s29 }
 0x2ce   :  { %394 = vrot.lane.b32.xlu1 %v8311_v47, %s8119_s30 }
 0x2d2   :  { %396 = vrot.lane.b32.xlu1 %v8309_v46, %s8119_s30  ;;  %v8423_v0 = vpop.eup %7718 }
 0x2d3   :  { %v889_v4 = vsel %vm783_vm3, %v8423_v0, 0.0  ;;  %v8427_v5 = vpop.eup %7720 }
 0x2d4   :  { %v883_v6 = vsel %vm783_vm3, %v8427_v5, 0.0  ;;  %v8431_v2 = vpop.eup %7722 }
 0x2d5   :  { %v886_v3 = vsel %vm783_vm3, %v8431_v2, 0.0  ;;  %v8435_v7 = vpop.eup %7724 }
 0x2d6   :  { %v880_v8 = vsel %vm783_vm3, %v8435_v7, 0.0 }
 0x2ec   :  { %890 = vadd.xlane.f32.xlu0 %v889_v4 }
 0x2f0   :  { %884 = vadd.xlane.f32.xlu0 %v883_v6 }
 0x2f6   :  { %887 = vadd.xlane.f32.xlu1 %v886_v3 }
 0x2fa   :  { %881 = vadd.xlane.f32.xlu1 %v880_v8 }
 0x330   :  { %v801_v9 = vpop.xlane.xlu0 %800 }
 0x331   :  { %v837_v10 = vsub.f32 %v8365_v17, %v801_v9 }
 0x332   :  { %v804_v11 = vpop.xlane.xlu1 %803 }
 0x333   :  { %v838_v13 = vsub.f32 %v8369_v20, %v804_v11  ;;  %v858_v19 = vmul.f32 1.442695, %v837_v10 }
 0x334   :  { %v807_v14 = vpop.xlane.xlu0 %806 }
 0x335   :  { %v860_v16 = vmul.f32 1.442695, %v838_v13  ;;  %v839_v18 = vsub.f32 %v8373_v23, %v807_v14 }
 0x336   :  { %v798_v21 = vpop.xlane.xlu1 %797 }
 0x337   :  { %7726 = vpow2.f32 %v860_v16  ;;  %v862_v22 = vmul.f32 1.442695, %v839_v18  ;;  %v836_v24 = vsub.f32 %v8363_v15, %v798_v21 }
 0x338   :  { %v813_v25 = vpop.xlane.xlu0 %812 }
 0x339   :  { %7728 = vpow2.f32 %v862_v22  ;;  %v856_v27 = vmul.f32 1.442695, %v836_v24  ;;  %v841_v28 = vsub.f32 %v8381_v29, %v813_v25 }
 0x33a   :  { %7730 = vpow2.f32 %v858_v19  ;;  %v816_v17 = vpop.xlane.xlu1 %815 }
 0x33b   :  { %7732 = vpow2.f32 %v856_v27  ;;  %v842_v20 = vsub.f32 %v8385_v32, %v816_v17  ;;  %v866_v33 = vmul.f32 1.442695, %v841_v28 }
 0x33c   :  { %v819_v30 = vpop.xlane.xlu0 %818 }
 0x33d   :  { %v868_v31 = vmul.f32 1.442695, %v842_v20  ;;  %v843_v23 = vsub.f32 %v8389_v35, %v819_v30 }
 0x33e   :  { %v810_v34 = vpop.xlane.xlu1 %809 }
 0x33f   :  { %7734 = vpow2.f32 %v868_v31  ;;  %v870_v36 = vmul.f32 1.442695, %v843_v23  ;;  %v840_v15 = vsub.f32 %v8377_v26, %v810_v34 }
 0x340   :  { %v825_v37 = vpop.xlane.xlu0 %824 }
 0x341   :  { %v8447_v39 = vpop.eup %7726  ;;  %7736 = vpow2.f32 %v870_v36  ;;  %v864_v40 = vmul.f32 1.442695, %v840_v15  ;;  %v845_v29 = vsub.f32 %v8397_v41, %v825_v37 }
 0x342   :  { %7738 = vpow2.f32 %v866_v33  ;;  %v828_v42 = vpop.xlane.xlu1 %827  ;;  %v898_v32 = vsel %vm783_vm3, %v8447_v39, 0.0 }
 0x343   :  { %v8452_v43 = vpop.eup %7728  ;;  %7740 = vpow2.f32 %v864_v40  ;;  %v846_v35 = vsub.f32 %v8401_v44, %v828_v42  ;;  %899 = vadd.xlane.f32.xlu1 %v898_v32  ;;  %v874_v52 = vmul.f32 1.442695, %v845_v29 }
 0x344   :  { %v8455_v45 = vpop.eup %7730  ;;  %v831_v26 = vpop.xlane.xlu0 %830  ;;  %v901_v48 = vsel %vm783_vm3, %v8452_v43, 0.0 }
 0x345   :  { %v8459_v50 = vpop.eup %7732  ;;  %v876_v51 = vmul.f32 1.442695, %v846_v35  ;;  %v847_v41 = vsub.f32 %v8405_v49, %v831_v26  ;;  %902 = vadd.xlane.f32.xlu0 %v901_v48  ;;  %v895_v56 = vsel %vm783_vm3, %v8455_v45, 0.0 }
 0x346   :  { %v822_v53 = vpop.xlane.xlu1 %821  ;;  %v892_v54 = vsel %vm783_vm3, %v8459_v50, 0.0 }
 0x347   :  { %7742 = vpow2.f32 %v876_v51  ;;  %v878_v44 = vmul.f32 1.442695, %v847_v41  ;;  %v844_v55 = vsub.f32 %v8393_v38, %v822_v53  ;;  %893 = vadd.xlane.f32.xlu1 %v892_v54 }
 0x348   :  { %v391_v14 = vpop.permute.xlu0 %390 }
 0x349   :  { %v8467_v57 = vpop.eup %7734  ;;  %7744 = vpow2.f32 %v878_v44  ;;  %v872_v58 = vmul.f32 1.442695, %v844_v55  ;;  %896 = vadd.xlane.f32.xlu0 %v895_v56 }
 0x34a   :  { %7746 = vpow2.f32 %v874_v52  ;;  %v910_v49 = vsel %vm783_vm3, %v8467_v57, 0.0  ;;  %v389_v13 = vpop.permute.xlu1 %388 }
 0x34b   :  { %v8471_v59 = vpop.eup %7736  ;;  %7748 = vpow2.f32 %v872_v58  ;;  %911 = vadd.xlane.f32.xlu1 %v910_v49 }
 0x34c   :  { %v8473_v60 = vpop.eup %7738  ;;  %v913_v38 = vsel %vm783_vm3, %v8471_v59, 0.0 }
 0x34d   :  { %v8477_v61 = vpop.eup %7740  ;;  %914 = vadd.xlane.f32.xlu0 %v913_v38  ;;  %v907_v63 = vsel %vm783_vm3, %v8473_v60, 0.0 }
 0x34e   :  { %v904_v62 = vsel %vm783_vm3, %v8477_v61, 0.0  ;;  %v8503_v16 = vpop.permute.xlu1 %394 }
 0x34f   :  { %905 = vadd.xlane.f32.xlu1 %v904_v62 }
 0x351   :  { %v8483_v1 = vpop.eup %7742  ;;  %908 = vadd.xlane.f32.xlu0 %v907_v63 }
 0x352   :  { %v922_v4 = vsel %vm783_vm3, %v8483_v1, 0.0  ;;  %v397_v19 = vpop.permute.xlu1 %396 }
 0x353   :  { %v8487_v6 = vpop.eup %7744  ;;  %923 = vadd.xlane.f32.xlu1 %v922_v4 }
 0x354   :  { %v8489_v3 = vpop.eup %7746  ;;  %v925_v8 = vsel %vm783_vm3, %v8487_v6, 0.0 }
 0x355   :  { %v8493_v9 = vpop.eup %7748  ;;  %926 = vadd.xlane.f32.xlu0 %v925_v8  ;;  %v919_v11 = vsel %vm783_vm3, %v8489_v3, 0.0 }
 0x356   :  { %v916_v10 = vsel %vm783_vm3, %v8493_v9, 0.0 }
 0x357   :  { %917 = vadd.xlane.f32.xlu1 %v916_v10 }
 0x359   :  { %920 = vadd.xlane.f32.xlu0 %v919_v11 }
 0x368   :  { %402 = vrot.lane.b32.xlu1 %v8309_v46, %s8120_s11 }
 0x36f   :  { %400 = vrot.lane.b32.xlu0 %v8311_v47, %s8120_s11 }
 0x379   :  { %v891_v18 = vpop.xlane.xlu0 %890 }
 0x37a   :  { %7750 = vrcp.f32 %v891_v18 }
 0x37d   :  { %v885_v21 = vpop.xlane.xlu0 %884 }
 0x383   :  { %v888_v22 = vpop.xlane.xlu1 %887 }
 0x384   :  { %7752 = vrcp.f32 %v888_v22  ;;  %v7751_v25 = vpop.eup %7750 }
 0x385   :  { %7754 = vrcp.f32 %v885_v21  ;;  %v947_v46 = vmul.f32 %v7751_v25, %v8423_v0 }
 0x387   :  { %v882_v24 = vpop.xlane.xlu1 %881 }
 0x388   :  { %7756 = vrcp.f32 %v882_v24 }
 0x38e   :  { %v7753_v27 = vpop.eup %7752 }
 0x38f   :  { %v946_v28 = vmul.f32 %v7753_v27, %v8431_v2  ;;  %v7755_v47 = vpop.eup %7754 }
 0x390   :  { %v945_v30 = vmul.f32 %v7755_v47, %v8427_v5 }
 0x391   :  { %v961_v17 = vpack.c.bf16 %v947_v46, %v946_v28 }
 0x392   :  { %v7757_v20 = vpop.eup %7756 }
 0x393   :  { %v944_v31 = vmul.f32 %v7757_v20, %v8435_v7  ;;  %6995 = vmatmul.mubr.msk.bf16.vlgmr.msra.gmra.mrb[24].mxu0 %vm783_vm3, %v961_v17 }
 0x394   :  { %7005 = vmatpush3.bf16.msra.mxu0 %v391_v14  ;;  %7006 = vmatprep.mubr.msk.bf16.mxu0 %vm8117_vm1, %v8116_v12 }
 0x395   :  { %v960_v23 = vpack.c.bf16 %v945_v30, %v944_v31  ;;  %7016 = vmatprep.subr.bf16.mxu0 %v8116_v12 }
 0x397   :  { %6989 = vmatmul.mubr.msk.bf16.vlgmr.msra.gmra.mrb[20].mxu1 %vm783_vm3, %v960_v23 }
 0x398   :  { %6999 = vmatpush3.bf16.msra.mxu1 %v389_v13  ;;  %7000 = vmatprep.mubr.msk.bf16.mxu1 %vm8117_vm1, %v8116_v12 }
 0x399   :  { %7010 = vmatprep.subr.bf16.mxu1 %v8116_v12 }
 0x3d0   :  { %v900_v0 = vpop.xlane.xlu1 %899 }
 0x3d1   :  { %7758 = vrcp.f32 %v900_v0 }
 0x3d2   :  { %v903_v5 = vpop.xlane.xlu0 %902 }
 0x3d3   :  { %7760 = vrcp.f32 %v903_v5  ;;  %v7683_v5 = vld [vmem:[#allocation11] sm:$0xff]  }
 0x3d4   :  { %v894_v2 = vpop.xlane.xlu1 %893 }
 0x3d5   :  { %7762 = vrcp.f32 %v894_v2 }
 0x3d6   :  { %v897_v7 = vpop.xlane.xlu0 %896 }
 0x3d7   :  { %7764 = vrcp.f32 %v897_v7 }
 0x3d8   :  { %v912_v33 = vpop.xlane.xlu1 %911 }
 0x3d9   :  { %7766 = vrcp.f32 %v912_v33 }
 0x3da   :  { %v915_v34 = vpop.xlane.xlu0 %914 }
 0x3db   :  { %v7759_v36 = vpop.eup %7758  ;;  %7768 = vrcp.f32 %v915_v34 }
 0x3dc   :  { %v906_v15 = vpop.xlane.xlu1 %905  ;;  %v950_v40 = vmul.f32 %v7759_v36, %v8447_v39 }
 0x3dd   :  { %v7761_v37 = vpop.eup %7760  ;;  %7770 = vrcp.f32 %v906_v15  ;;  %v7684_v15 = vld [vmem:[#allocation11 + $0x8] sm:$0xff]  }
 0x3de   :  { %v951_v29 = vmul.f32 %v7761_v37, %v8452_v43  ;;  %v909_v42 = vpop.xlane.xlu0 %908 }
 0x3df   :  { %v7763_v32 = vpop.eup %7762  ;;  %7772 = vrcp.f32 %v909_v42 }
 0x3e0   :  { %v924_v35 = vpop.xlane.xlu1 %923  ;;  %v963_v26 = vpack.c.bf16 %v951_v29, %v950_v40  ;;  %v948_v51 = vmul.f32 %v7763_v32, %v8459_v50 }
 0x3e1   :  { %v7765_v48 = vpop.eup %7764  ;;  %7774 = vrcp.f32 %v924_v35 }
 0x3e2   :  { %v949_v41 = vmul.f32 %v7765_v48, %v8455_v45  ;;  %7007 = vmatmul.mubr.msk.bf16.vlgmr.msra.gmra.mrb[28].mxu0 %vm783_vm3, %v963_v26  ;;  %v927_v52 = vpop.xlane.xlu0 %926 }
 0x3e3   :  { %v7767_v53 = vpop.eup %7766  ;;  %7017 = vmatpush3.bf16.msra.mxu0 %v397_v19  ;;  %7776 = vrcp.f32 %v927_v52  ;;  %7018 = vmatprep.mubr.msk.bf16.mxu0 %vm8117_vm1, %v8116_v12 }
 0x3e4   :  { %v918_v39 = vpop.xlane.xlu1 %917  ;;  %v962_v43 = vpack.c.bf16 %v949_v41, %v948_v51  ;;  %7028 = vmatprep.subr.bf16.mxu0 %v8116_v12  ;;  %v954_v44 = vmul.f32 %v7767_v53, %v8467_v57 }
 0x3e5   :  { %v7769_v54 = vpop.eup %7768  ;;  %7778 = vrcp.f32 %v918_v39 }
 0x3e6   :  { %v955_v50 = vmul.f32 %v7769_v54, %v8471_v59  ;;  %7001 = vmatmul.mubr.msk.bf16.vlgmr.msra.gmra.mrb[24].mxu1 %vm783_vm3, %v962_v43  ;;  %v921_v45 = vpop.xlane.xlu0 %920 }
 0x3e7   :  { %v7771_v55 = vpop.eup %7770  ;;  %7011 = vmatpush3.bf16.msra.mxu1 %v8503_v16  ;;  %7780 = vrcp.f32 %v921_v45  ;;  %7012 = vmatprep.mubr.msk.bf16.mxu1 %vm8117_vm1, %v8116_v12 }
 0x3e8   :  { %v403_v56 = vpop.permute.xlu1 %402  ;;  %v965_v58 = vpack.c.bf16 %v955_v50, %v954_v44  ;;  %7022 = vmatprep.subr.bf16.mxu1 %v8116_v12  ;;  %v952_v38 = vmul.f32 %v7771_v55, %v8477_v61 }
 0x3e9   :  { %v7773_v49 = vpop.eup %7772 }
 0x3ea   :  { %v953_v57 = vmul.f32 %v7773_v49, %v8473_v60  ;;  %7019 = vmatmul.mubr.msk.bf16.vlgmr.msra.gmra.mrb[32].mxu0 %vm783_vm3, %v965_v58  ;;  %v401_v10 = vpop.permute.xlu0 %400 }
 0x3eb   :  { %v7775_v59 = vpop.eup %7774  ;;  %7029 = vmatpush3.bf16.msra.mxu0 %v403_v56  ;;  %7030 = vmatprep.mubr.msk.bf16.mxu0 %vm8117_vm1, %v8116_v12 }
 0x3ec   :  { %v964_v62 = vpack.c.bf16 %v953_v57, %v952_v38  ;;  %v958_v4 = vmul.f32 %v7775_v59, %v8483_v1 }
 0x3ed   :  { %v7777_v63 = vpop.eup %7776 }
 0x3ee   :  { %v959_v8 = vmul.f32 %v7777_v63, %v8487_v6  ;;  %7013 = vmatmul.mubr.msk.bf16.vlgmr.msra.gmra.mrb[28].mxu1 %vm783_vm3, %v964_v62 }
 0x3ef   :  { %v7779_v11 = vpop.eup %7778  ;;  %7023 = vmatpush3.bf16.msra.mxu1 %v401_v10  ;;  %7024 = vmatprep.mubr.msk.bf16.mxu1 %vm8117_vm1, %v8116_v12 }
 0x3f0   :  { %v967_v60 = vpack.c.bf16 %v959_v8, %v958_v4  ;;  %v956_v13 = vmul.f32 %v7779_v11, %v8493_v9  ;;  %7034 = vmatprep.subr.bf16.mxu1 %v7683_v5 }
 0x3f1   :  { %v7781_v61 = vpop.eup %7780 }
 0x3f2   :  { %v957_v14 = vmul.f32 %v7781_v61, %v8489_v3  ;;  %7031 = vmatmul.mubr.msk.bf16.vlgmr.msra.gmra.mrb[36].mxu0 %vm783_vm3, %v967_v60 }
 0x3f4   :  { %v966_v16 = vpack.c.bf16 %v957_v14, %v956_v13 }
 0x3f6   :  { %7025 = vmatmul.mubr.msk.bf16.vlgmr.msra.gmra.mrb[32].mxu1 %vm783_vm3, %v966_v16 }
 0x3f7   :  { %7035 = vmatpush3.bf16.msra.mxu1 %v7683_v5 }
 0x3f8   :  { %7036 = vmatprep.subr.bf16.mxu1 %v7684_v15 }
 0x3fb   :  { %7037 = vmatpush3.bf16.msra.mxu1 %v7684_v15 }
 0x466   :  { %v1049_v1 = vpop.f32.mrb[24].mxu0 }
 0x467   :  { %v6996_v6 = vpop.f32.mrb[25].mxu0 }
 0x468   :  { %v1052_v18 = vpop.f32.mrb[26].mxu0 }
 0x469   :  { %v6997_v19 = vpop.f32.mrb[27].mxu0 }
 0x46a   :  { %v8546_v21 = vpop.f32.mrb[20].mxu1 }
 0x46b   :  { %v6990_v22 = vpop.f32.mrb[21].mxu1 }
 0x46c   :  { %v8548_v24 = vpop.f32.mrb[22].mxu1 }
 0x46d   :  { %v6991_v25 = vpop.f32.mrb[23].mxu1 }
 0x4b5   :  { %v1137_v27 = vpop.f32.mrb[28].mxu0 }
 0x4b6   :  { %v7008_v46 = vpop.f32.mrb[29].mxu0 }
 0x4b7   :  { %v1140_v9 = vpop.f32.mrb[30].mxu0 }
 0x4b8   :  { %v7572_v28 = vpack.i.bf16 %v1140_v9, %v1137_v27  ;;  %v7009_v3 = vpop.f32.mrb[31].mxu0 }
 0x4b9   :  { %v1093_v47 = vpop.f32.mrb[24].mxu1  ;;  %v7688_v3 = vld [vmem:[#allocation8 + $0x18] sm:$0xff]  }
 0x4ba   :  { %7573 = vrot.lane.b32.xlu1 %v7572_v28, %s8112_s26  ;;  %v7002_v17 = vpop.f32.mrb[25].mxu1  ;;  %v7685_v28 = vld [vmem:[#allocation7 + $0x10] sm:$0xff]  }
 0x4bb   :  { %v1096_v20 = vpop.f32.mrb[26].mxu1  ;;  %7042 = vmatprep.subr.bf16.mxu0 %v7685_v28 }
 0x4bc   :  { %v7577_v30 = vpack.i.bf16 %v1096_v20, %v1093_v47  ;;  %v7003_v31 = vpop.f32.mrb[27].mxu1  ;;  %7043 = vmatpush3.bf16.msra.mxu0 %v7685_v28  ;;  %v7689_v47 = vld [vmem:[#allocation10 + $0x10] sm:$0xff]   ;;  %v6458_v20 = vld [vmem:[%s9441_s9] ss:$0 sm:$0xff] }
 0x4bd   :  { %v1225_v23 = vpop.f32.mrb[32].mxu0 }
 0x4be   :  { %v7020_v0 = vpop.f32.mrb[33].mxu0  ;;  %7578 = vrot.lane.b32.xlu0 %v7577_v30, %s8112_s26 }
 0x4bf   :  { %v1228_v2 = vpop.f32.mrb[34].mxu0 }
 0x4c0   :  { %v7582_v7 = vpack.i.bf16 %v1228_v2, %v1225_v23  ;;  %v7021_v33 = vpop.f32.mrb[35].mxu0 }
 0x4c1   :  { %v1181_v34 = vpop.f32.mrb[28].mxu1 }
 0x4c2   :  { %7583 = vrot.lane.b32.xlu1 %v7582_v7, %s8121_s1  ;;  %v7014_v36 = vpop.f32.mrb[29].mxu1 }
 0x4c3   :  { %v1184_v37 = vpop.f32.mrb[30].mxu1  ;;  %v7690_v36 = vld [vmem:[#allocation10 + $0x18] sm:$0xff]  }
 0x4c4   :  { %v7587_v40 = vpack.i.bf16 %v1184_v37, %v1181_v34  ;;  %v7015_v29 = vpop.f32.mrb[31].mxu1  ;;  %v6467_v37 = vld [vmem:[%s9435_s3 + $0x1] ss:$0 sm:$0xff] }
 0x4c5   :  { %v1313_v42 = vpop.f32.mrb[36].mxu0  ;;  %v6472_v29 = vld [vmem:[%s9437_s5 + $0x1] ss:$0 sm:$0xff] }
 0x4c6   :  { %v7032_v32 = vpop.f32.mrb[37].mxu0  ;;  %7588 = vrot.lane.b32.xlu0 %v7587_v40, %s8121_s1 }
 0x4c7   :  { %v1316_v35 = vpop.f32.mrb[38].mxu0 }
 0x4c8   :  { %v7597_v26 = vpack.i.bf16 %v1316_v35, %v1313_v42  ;;  %v7033_v48 = vpop.f32.mrb[39].mxu0 }
 0x4c9   :  { %v1269_v51 = vpop.f32.mrb[32].mxu1 }
 0x4ca   :  { %7598 = vrot.lane.b32.xlu1 %v7597_v26, %s8122_s2  ;;  %v7026_v41 = vpop.f32.mrb[33].mxu1 }
 0x4cb   :  { %v1272_v52 = vpop.f32.mrb[34].mxu1 }
 0x4cc   :  { %v7592_v53 = vpack.i.bf16 %v1272_v52, %v1269_v51  ;;  %v7027_v39 = vpop.f32.mrb[35].mxu1 }
 0x4ce   :  { %7593 = vrot.lane.b32.xlu0 %v7592_v53, %s8122_s2 }
 0x52c   :  { %v7574_v43 = vpop.permute.xlu1 %7573 }
 0x52d   :  { %v7576_v50 = vunpack.i.h.bf16 %v7574_v43  ;;  %v7575_v45 = vunpack.i.l.bf16 %v7574_v43 }
 0x52f   :  { %v1371_v49 = vsel %vm406_vm2, %v1052_v18, %v7576_v50  ;;  %v1370_v38 = vsel %vm406_vm2, %v1049_v1, %v7575_v45 }
 0x530   :  { %v7579_v54 = vpop.permute.xlu0 %7578 }
 0x531   :  { %v7581_v59 = vunpack.i.h.bf16 %v7579_v54  ;;  %v7580_v62 = vunpack.i.l.bf16 %v7579_v54 }
 0x533   :  { %v1369_v1 = vsel %vm406_vm2, %v8548_v24, %v7581_v59  ;;  %v1368_v6 = vsel %vm406_vm2, %v8546_v21, %v7580_v62  ;;  %v7686_v24 = vld [vmem:[#allocation8 + $0x10] sm:$0xff]   ;;  %v7687_v21 = vld [vmem:[#allocation7 + $0x18] sm:$0xff]  }
 0x534   :  { %v7584_v44 = vpop.permute.xlu1 %7583  ;;  %7050 = vmatprep.subr.bf16.mxu1 %v7686_v24  ;;  %7044 = vmatprep.subr.bf16.mxu0 %v7687_v21 }
 0x535   :  { %v7586_v55 = vunpack.i.h.bf16 %v7584_v44  ;;  %v7585_v56 = vunpack.i.l.bf16 %v7584_v44  ;;  %7045 = vmatpush3.bf16.msra.mxu0 %v7687_v21 }
 0x536   :  { %7058 = vmatprep.subr.bf16.mxu0 %v7689_v47 }
 0x537   :  { %v1375_v8 = vsel %vm783_vm3, %v1371_v49, %v7586_v55  ;;  %v1374_v10 = vsel %vm783_vm3, %v1370_v38, %v7585_v56 }
 0x538   :  { %v7589_v58 = vpop.permute.xlu0 %7588 }
 0x539   :  { %v7591_v11 = vunpack.i.h.bf16 %v7589_v58  ;;  %v7590_v60 = vunpack.i.l.bf16 %v7589_v58 }
 0x53b   :  { %v1373_v22 = vsel %vm783_vm3, %v1369_v1, %v7591_v11  ;;  %v1372_v25 = vsel %vm783_vm3, %v1368_v6, %v7590_v60 }
 0x53c   :  { %v7599_v57 = vpop.permute.xlu1 %7598 }
 0x53d   :  { %v7601_v63 = vunpack.i.h.bf16 %v7599_v57  ;;  %v7600_v4 = vunpack.i.l.bf16 %v7599_v57  ;;  %v6477_v57 = vld [vmem:[%s9439_s7 + $0x1] ss:$0 sm:$0xff] }
 0x53f   :  { %v1380_v61 = vsel %vm1376_vm4, %v1375_v8, %v7601_v63  ;;  %v1379_v13 = vsel %vm1376_vm4, %v1374_v10, %v7600_v4 }
 0x540   :  { %v1382_v14 = vpack.c.bf16 %v1380_v61, %v1379_v13  ;;  %v7594_v16 = vpop.permute.xlu0 %7593 }
 0x541   :  { %v7596_v18 = vunpack.i.h.bf16 %v7594_v16  ;;  %v7595_v19 = vunpack.i.l.bf16 %v7594_v16 }
 0x543   :  { %v1378_v27 = vsel %vm1376_vm4, %v1373_v22, %v7596_v18  ;;  %v1377_v46 = vsel %vm1376_vm4, %v1372_v25, %v7595_v19 }
 0x544   :  { %v1381_v9 = vpack.c.bf16 %v1378_v27, %v1377_v46 }
 0x546   :  { %7038 = vmatprep.mubr.msk.bf16.mxu1 %vm162_vm0, %v1381_v9 }
 0x547   :  { %7039 = vmatmul.mubr.msk.bf16.vlgmr.msra.gmra.mrb[36].mxu1 %vm162_vm0, %v1382_v14 }
 0x548   :  { %7051 = vmatpush3.bf16.msra.mxu1 %v7686_v24 }
 0x549   :  { %7052 = vmatprep.subr.bf16.mxu1 %v7688_v3 }
 0x54c   :  { %7053 = vmatpush3.bf16.msra.mxu1 %v7688_v3 }
 0x54d   :  { %7066 = vmatprep.subr.bf16.mxu1 %v8116_v12 }
 0x61a   :  { %v7040_v17 = vpop.f32.mrb[36].mxu1 }
 0x61b   :  { %v1441_v30 = vpop.f32.mrb[37].mxu1  ;;  %v1450_v23 = vadd.f32 %v7040_v17, %v6458_v20 }
 0x61c   :  { %v7041_v31 = vpop.f32.mrb[38].mxu1  ;;  %v1442_v2 = vadd.f32 %v6458_v20, %v1441_v30 }
 0x61d   :  { %v1453_v0 = vadd.f32 %v7041_v31, %v6458_v20  ;;  %v1444_v5 = vpop.f32.mrb[39].mxu1 }
 0x61e   :  { %v1445_v7 = vadd.f32 %v6458_v20, %v1444_v5 }
 0x61f   :  { %v1485_v33 = vpack.c.bf16 %v1453_v0, %v1450_v23 }
 0x620   :  { %v1484_v34 = vpack.c.bf16 %v1445_v7, %v1442_v2 }
 0x622   :  { %7046 = vmatprep.mubr.msk.bf16.mxu0 %vm162_vm0, %v1484_v34  ;;  %7054 = vmatprep.mubr.msk.bf16.mxu1 %vm162_vm0, %v1484_v34 }
 0x623   :  { %7047 = vmatmul.mubr.msk.bf16.vlgmr.msra.gmra.mrb[40].mxu0 %vm162_vm0, %v1485_v33  ;;  %7055 = vmatmul.mubr.msk.bf16.vlgmr.msra.gmra.mrb[40].mxu1 %vm162_vm0, %v1485_v33 }
 0x624   :  { %7059 = vmatpush3.bf16.msra.mxu0 %v7689_v47  ;;  %7062 = vmatprep.mubr.msk.bf16.mxu0 %vm162_vm0, %v1484_v34 }
 0x625   :  { %7060 = vmatprep.subr.bf16.mxu0 %v7690_v36  ;;  %7068 = vmatprep.mubr.msk.bf16.mxu1 %vm8117_vm1, %v8116_v12 }
 0x628   :  { %7061 = vmatpush3.bf16.msra.mxu0 %v7690_v36 }
 0x629   :  { %7072 = vmatprep.subr.bf16.mxu0 %v8116_v12 }
 0x62b   :  { %7063 = vmatmul.mubr.msk.bf16.vlgmr.msra.gmra.mrb[44].mxu0 %vm162_vm0, %v1485_v33 }
 0x62c   :  { %7074 = vmatprep.mubr.msk.bf16.mxu0 %vm8117_vm1, %v8116_v12 }
 0x6f6   :  { %v7048_v15 = vpop.f32.mrb[40].mxu0  ;;  %v7056_v40 = vpop.f32.mrb[40].mxu1 }
 0x6f7   :  { %v1544_v42 = vpop.f32.mrb[41].mxu0  ;;  %v1611_v32 = vpop.f32.mrb[41].mxu1  ;;  %v1553_v48 = vadd.f32 %v7048_v15, %v6467_v37  ;;  %v1620_v51 = vadd.f32 %v7056_v40, %v6472_v29 }
 0x6f8   :  { %v7049_v35 = vpop.f32.mrb[42].mxu0  ;;  %v7057_v26 = vpop.f32.mrb[42].mxu1  ;;  %v1545_v43 = vadd.f32 %v6467_v37, %v1544_v42  ;;  %v1612_v54 = vadd.f32 %v6472_v29, %v1611_v32 }
 0x6f9   :  { %v1556_v41 = vadd.f32 %v7049_v35, %v6467_v37  ;;  %v1623_v52 = vadd.f32 %v7057_v26, %v6472_v29  ;;  %v1547_v53 = vpop.f32.mrb[43].mxu0  ;;  %v1614_v39 = vpop.f32.mrb[43].mxu1 }
 0x6fa   :  { %v1548_v44 = vadd.f32 %v6467_v37, %v1547_v53  ;;  %v1615_v50 = vadd.f32 %v6472_v29, %v1614_v39 }
 0x6fb   :  { %v1694_v45 = vpack.c.bf16 %v1556_v41, %v1553_v48  ;;  %v1710_v55 = vpack.c.bf16 %v1623_v52, %v1620_v51 }
 0x6fc   :  { %v1693_v56 = vpack.c.bf16 %v1548_v44, %v1545_v43  ;;  %v1709_v58 = vpack.c.bf16 %v1615_v50, %v1612_v54 }
 0x6fd   :  { %1715 = vrot.lane.b32.xlu1 %v1710_v55, %s8118_s29  ;;  %v1798_v49 = vsel %vm406_vm2, %v1710_v55, 0 }
 0x6fe   :  { %1713 = vrot.lane.b32.xlu0 %v1709_v58, %s8118_s29  ;;  %v7064_v38 = vpop.f32.mrb[44].mxu0  ;;  %7073 = vmatpush3.bf16.xpose.msra.mxu0 %v1798_v49  ;;  %v1751_v59 = vsel %vm406_vm2, %v1709_v58, 0 }
 0x6ff   :  { %v1678_v62 = vpop.f32.mrb[45].mxu0  ;;  %7067 = vmatpush3.bf16.xpose.msra.mxu1 %v1751_v59  ;;  %7084 = vmatprep.subr.bf16.mxu0 %v8116_v12  ;;  %v1687_v4 = vadd.f32 %v7064_v38, %v6477_v57 }
 0x700   :  { %v7065_v63 = vpop.f32.mrb[46].mxu0  ;;  %7078 = vmatprep.subr.bf16.mxu1 %v8116_v12  ;;  %v1679_v11 = vadd.f32 %v6477_v57, %v1678_v62 }
 0x701   :  { %v1690_v8 = vadd.f32 %v7065_v63, %v6477_v57  ;;  %1717 = vrot.lane.b32.xlu1 %v1709_v58, %s8119_s30  ;;  %v1681_v10 = vpop.f32.mrb[47].mxu0 }
 0x702   :  { %v1682_v60 = vadd.f32 %v6477_v57, %v1681_v10  ;;  %1697 = vrot.lane.b32.xlu0 %v1693_v56, %s8118_s29 }
 0x703   :  { %v8604_v61 = vpack.c.bf16 %v1690_v8, %v1687_v4 }
 0x704   :  { %v8606_v13 = vpack.c.bf16 %v1682_v60, %v1679_v11 }
 0x705   :  { %1719 = vrot.lane.b32.xlu1 %v1710_v55, %s8119_s30  ;;  %7075 = vmatmul.mubr.msk.bf16.vlgmr.msra.gmra.mrb[48].mxu0 %vm406_vm2, %v1694_v45 }
 0x706   :  { %1699 = vrot.lane.b32.xlu0 %v1694_v45, %s8118_s29  ;;  %7069 = vmatmul.mubr.msk.bf16.vlgmr.msra.gmra.mrb[44].mxu1 %vm406_vm2, %v1693_v56 }
 0x707   :  { %7086 = vmatprep.mubr.msk.bf16.mxu0 %vm8117_vm1, %v8116_v12  ;;  %7080 = vmatprep.mubr.msk.bf16.mxu1 %vm8117_vm1, %v8116_v12 }
 0x709   :  { %1721 = vrot.lane.b32.xlu1 %v1709_v58, %s8120_s11 }
 0x70a   :  { %1701 = vrot.lane.b32.xlu0 %v1693_v56, %s8119_s30 }
 0x70d   :  { %1723 = vrot.lane.b32.xlu1 %v1710_v55, %s8120_s11 }
 0x70e   :  { %1703 = vrot.lane.b32.xlu0 %v1694_v45, %s8119_s30 }
 0x711   :  { %1707 = vrot.lane.b32.xlu1 %v1694_v45, %s8120_s11 }
 0x712   :  { %1705 = vrot.lane.b32.xlu0 %v1693_v56, %s8120_s11 }
 0x76f   :  { %v1716_v14 = vpop.permute.xlu1 %1715 }
 0x770   :  { %v1892_v16 = vsel %vm406_vm2, %v1716_v14, 0  ;;  %v1714_v1 = vpop.permute.xlu0 %1713 }
 0x771   :  { %v1845_v6 = vsel %vm406_vm2, %v1714_v1, 0  ;;  %7085 = vmatpush3.bf16.xpose.msra.mxu0 %v1892_v16 }
 0x772   :  { %7079 = vmatpush3.bf16.xpose.msra.mxu1 %v1845_v6  ;;  %7096 = vmatprep.subr.bf16.mxu0 %v8116_v12 }
 0x773   :  { %v1718_v18 = vpop.permute.xlu1 %1717  ;;  %7090 = vmatprep.subr.bf16.mxu1 %v8116_v12 }
 0x774   :  { %v1698_v19 = vpop.permute.xlu0 %1697  ;;  %v1939_v46 = vsel %vm406_vm2, %v1718_v18, 0 }
 0x777   :  { %v1720_v22 = vpop.permute.xlu1 %1719 }
 0x778   :  { %v1986_v25 = vsel %vm406_vm2, %v1720_v22, 0  ;;  %v1700_v27 = vpop.permute.xlu0 %1699 }
 0x779   :  { %7081 = vmatmul.mubr.msk.bf16.vlgmr.msra.gmra.mrb[48].mxu1 %vm406_vm2, %v1698_v19  ;;  %7087 = vmatmul.mubr.msk.bf16.vlgmr.msra.gmra.mrb[52].mxu0 %vm406_vm2, %v1700_v27 }
 0x77a   :  { %7097 = vmatpush3.bf16.xpose.msra.mxu0 %v1986_v25  ;;  %7091 = vmatpush3.bf16.xpose.msra.mxu1 %v1939_v46 }
 0x77b   :  { %v1722_v9 = vpop.permute.xlu1 %1721  ;;  %7098 = vmatprep.mubr.msk.bf16.mxu0 %vm8117_vm1, %v8116_v12  ;;  %7108 = vmatprep.subr.bf16.mxu0 %v8116_v12 }
 0x77c   :  { %v1702_v28 = vpop.permute.xlu0 %1701  ;;  %7092 = vmatprep.mubr.msk.bf16.mxu1 %vm8117_vm1, %v8116_v12  ;;  %7102 = vmatprep.subr.bf16.mxu1 %v8116_v12  ;;  %v2033_v47 = vsel %vm406_vm2, %v1722_v9, 0 }
 0x77f   :  { %v1724_v24 = vpop.permute.xlu1 %1723 }
 0x780   :  { %v2080_v21 = vsel %vm406_vm2, %v1724_v24, 0  ;;  %v1704_v3 = vpop.permute.xlu0 %1703 }
 0x781   :  { %7093 = vmatmul.mubr.msk.bf16.vlgmr.msra.gmra.mrb[52].mxu1 %vm406_vm2, %v1702_v28  ;;  %7099 = vmatmul.mubr.msk.bf16.vlgmr.msra.gmra.mrb[56].mxu0 %vm406_vm2, %v1704_v3 }
 0x782   :  { %7109 = vmatpush3.bf16.xpose.msra.mxu0 %v2080_v21  ;;  %7103 = vmatpush3.bf16.xpose.msra.mxu1 %v2033_v47 }
 0x783   :  { %7104 = vmatprep.mubr.msk.bf16.mxu1 %vm8117_vm1, %v8116_v12  ;;  %7110 = vmatprep.mubr.msk.bf16.mxu0 %vm8117_vm1, %v8116_v12  ;;  %v1708_v17 = vpop.permute.xlu1 %1707 }
 0x784   :  { %7120 = vmatprep.subr.bf16.mxu0 %v8116_v12  ;;  %7114 = vmatprep.subr.bf16.mxu1 %v8116_v12  ;;  %v1706_v20 = vpop.permute.xlu0 %1705 }
 0x789   :  { %7105 = vmatmul.mubr.msk.bf16.vlgmr.msra.gmra.mrb[56].mxu1 %vm406_vm2, %v1706_v20  ;;  %7111 = vmatmul.mubr.msk.bf16.vlgmr.msra.gmra.mrb[60].mxu0 %vm406_vm2, %v1708_v17 }
 0x78a   :  { %7121 = vmatpush3.bf16.msra.mxu0 %v8604_v61  ;;  %7115 = vmatpush3.bf16.msra.mxu1 %v8606_v13 }
 0x78b   :  { %7122 = vmatprep.mubr.msk.bf16.mxu0 %vm8117_vm1, %v8116_v12  ;;  %7132 = vmatprep.subr.bf16.mxu0 %v8116_v12 }
 0x78c   :  { %7116 = vmatprep.mubr.msk.bf16.mxu1 %vm8117_vm1, %v8116_v12  ;;  %7126 = vmatprep.subr.bf16.mxu1 %v8116_v12 }
 0x7d8   :  { %v8656_v30 = vpop.f32.mrb[48].mxu0 }
 0x7d9   :  { %v8658_v31 = vpop.f32.mrb[44].mxu1  ;;  %v7076_v23 = vpop.f32.mrb[49].mxu0  ;;  %v2129_v0 = vsel %vm783_vm3, %v8656_v30, -inf }
 0x7da   :  { %v8662_v5 = vpop.f32.mrb[50].mxu0  ;;  %2130 = vmax.xlane.f32.xlu0 %v2129_v0  ;;  %v7070_v2 = vpop.f32.mrb[45].mxu1  ;;  %v2123_v15 = vsel %vm783_vm3, %v8658_v31, -inf }
 0x7db   :  { %v8664_v7 = vpop.f32.mrb[46].mxu1  ;;  %v7077_v33 = vpop.f32.mrb[51].mxu0  ;;  %v2132_v37 = vsel %vm783_vm3, %v8662_v5, -inf }
 0x7dc   :  { %v7071_v34 = vpop.f32.mrb[47].mxu1  ;;  %v2126_v36 = vsel %vm783_vm3, %v8664_v7, -inf }
 0x7dd   :  { %2127 = vmax.xlane.f32.xlu1 %v2126_v36 }
 0x7de   :  { %2124 = vmax.xlane.f32.xlu0 %v2123_v15 }
 0x7e2   :  { %2133 = vmax.xlane.f32.xlu0 %v2132_v37 }
 0x84c   :  { %v8672_v40 = vpop.f32.mrb[48].mxu1  ;;  %v8674_v29 = vpop.f32.mrb[52].mxu0 }
 0x84d   :  { %v7082_v42 = vpop.f32.mrb[49].mxu1  ;;  %v7088_v32 = vpop.f32.mrb[53].mxu0  ;;  %v2141_v35 = vsel %vm783_vm3, %v8674_v29, -inf  ;;  %v2135_v53 = vsel %vm783_vm3, %v8672_v40, -inf }
 0x84e   :  { %v8678_v26 = vpop.f32.mrb[54].mxu0  ;;  %2142 = vmax.xlane.f32.xlu1 %v2141_v35  ;;  %v8680_v48 = vpop.f32.mrb[50].mxu1 }
 0x84f   :  { %v7083_v51 = vpop.f32.mrb[51].mxu1  ;;  %v7089_v41 = vpop.f32.mrb[55].mxu0  ;;  %v2138_v52 = vsel %vm783_vm3, %v8680_v48, -inf  ;;  %v2144_v39 = vsel %vm783_vm3, %v8678_v26, -inf }
 0x850   :  { %2139 = vmax.xlane.f32.xlu0 %v2138_v52 }
 0x852   :  { %2136 = vmax.xlane.f32.xlu1 %v2135_v53 }
 0x854   :  { %v8688_v43 = vpop.f32.mrb[56].mxu0  ;;  %2145 = vmax.xlane.f32.xlu0 %v2144_v39  ;;  %v8690_v54 = vpop.f32.mrb[52].mxu1 }
 0x855   :  { %v7094_v44 = vpop.f32.mrb[53].mxu1  ;;  %v7100_v50 = vpop.f32.mrb[57].mxu0  ;;  %v2153_v45 = vsel %vm783_vm3, %v8688_v43, -inf  ;;  %v2147_v57 = vsel %vm783_vm3, %v8690_v54, -inf }
 0x856   :  { %v8694_v55 = vpop.f32.mrb[58].mxu0  ;;  %2154 = vmax.xlane.f32.xlu1 %v2153_v45  ;;  %v8696_v56 = vpop.f32.mrb[54].mxu1 }
 0x857   :  { %v7095_v58 = vpop.f32.mrb[55].mxu1  ;;  %v7101_v49 = vpop.f32.mrb[59].mxu0  ;;  %v2150_v38 = vsel %vm783_vm3, %v8696_v56, -inf  ;;  %v2156_v59 = vsel %vm783_vm3, %v8694_v55, -inf }
 0x858   :  { %2151 = vmax.xlane.f32.xlu0 %v2150_v38 }
 0x85a   :  { %2148 = vmax.xlane.f32.xlu1 %v2147_v57 }
 0x85c   :  { %v8704_v62 = vpop.f32.mrb[60].mxu0  ;;  %2157 = vmax.xlane.f32.xlu0 %v2156_v59  ;;  %v8706_v63 = vpop.f32.mrb[56].mxu1 }
 0x85d   :  { %v7106_v4 = vpop.f32.mrb[57].mxu1  ;;  %v7112_v8 = vpop.f32.mrb[61].mxu0  ;;  %v2165_v10 = vsel %vm783_vm3, %v8704_v62, -inf  ;;  %v2159_v6 = vsel %vm783_vm3, %v8706_v63, -inf }
 0x85e   :  { %v8710_v11 = vpop.f32.mrb[62].mxu0  ;;  %2166 = vmax.xlane.f32.xlu1 %v2165_v10  ;;  %v8712_v60 = vpop.f32.mrb[58].mxu1 }
 0x85f   :  { %v7107_v14 = vpop.f32.mrb[59].mxu1  ;;  %v7113_v16 = vpop.f32.mrb[63].mxu0  ;;  %v2162_v1 = vsel %vm783_vm3, %v8712_v60, -inf  ;;  %v2168_v18 = vsel %vm783_vm3, %v8710_v11, -inf }
 0x860   :  { %2163 = vmax.xlane.f32.xlu0 %v2162_v1 }
 0x862   :  { %2160 = vmax.xlane.f32.xlu1 %v2159_v6 }
 0x864   :  { %2169 = vmax.xlane.f32.xlu0 %v2168_v18 }
 0x867   :  { %v2131_v19 = vpop.xlane.xlu0 %2130 }
 0x868   :  { %v2173_v24 = vsub.f32 %v8656_v30, %v2131_v19 }
 0x86a   :  { %v2128_v46 = vpop.xlane.xlu1 %2127  ;;  %v2191_v3 = vmul.f32 1.442695, %v2173_v24 }
 0x86b   :  { %v2125_v22 = vpop.xlane.xlu0 %2124  ;;  %v2172_v9 = vsub.f32 %v8664_v7, %v2128_v46 }
 0x86c   :  { %v2171_v47 = vsub.f32 %v8658_v31, %v2125_v22 }
 0x86d   :  { %v2189_v21 = vmul.f32 1.442695, %v2172_v9 }
 0x86e   :  { %v2187_v17 = vmul.f32 1.442695, %v2171_v47 }
 0x86f   :  { %v2134_v25 = vpop.xlane.xlu0 %2133 }
 0x870   :  { %v2174_v27 = vsub.f32 %v8662_v5, %v2134_v25 }
 0x872   :  { %v2193_v28 = vmul.f32 1.442695, %v2174_v27 }
 0x873   :  { %1729 = vrot.lane.b32.xlu1 %v8606_v13, %s8118_s29 }
 0x874   :  { %7782 = vpow2.f32 %v2193_v28 }
 0x875   :  { %7784 = vpow2.f32 %v2189_v21 }
 0x876   :  { %7786 = vpow2.f32 %v2191_v3 }
 0x877   :  { %1735 = vrot.lane.b32.xlu1 %v8606_v13, %s8119_s30  ;;  %7788 = vpow2.f32 %v2187_v17 }
 0x87a   :  { %1731 = vrot.lane.b32.xlu0 %v8604_v61, %s8118_s29 }
 0x87b   :  { %1737 = vrot.lane.b32.xlu1 %v8604_v61, %s8119_s30 }
 0x87e   :  { %v8732_v20 = vpop.eup %7782 }
 0x87f   :  { %v2228_v23 = vsel %vm783_vm3, %v8732_v20, 0.0  ;;  %v8736_v0 = vpop.eup %7784 }
 0x880   :  { %v8738_v5 = vpop.eup %7786  ;;  %v2222_v30 = vsel %vm783_vm3, %v8736_v0, 0.0 }
 0x881   :  { %v2225_v31 = vsel %vm783_vm3, %v8738_v5, 0.0  ;;  %v8744_v2 = vpop.eup %7788 }
 0x882   :  { %v2219_v7 = vsel %vm783_vm3, %v8744_v2, 0.0 }
 0x899   :  { %2229 = vadd.xlane.f32.xlu0 %v2228_v23 }
 0x89d   :  { %2223 = vadd.xlane.f32.xlu0 %v2222_v30 }
 0x89f   :  { %2226 = vadd.xlane.f32.xlu1 %v2225_v31 }
 0x8a3   :  { %2220 = vadd.xlane.f32.xlu1 %v2219_v7 }
 0x8db   :  { %v2143_v33 = vpop.xlane.xlu1 %2142 }
 0x8dc   :  { %v2177_v34 = vsub.f32 %v8674_v29, %v2143_v33 }
 0x8dd   :  { %v2140_v36 = vpop.xlane.xlu0 %2139 }
 0x8de   :  { %v2199_v15 = vmul.f32 1.442695, %v2177_v34  ;;  %v2176_v37 = vsub.f32 %v8680_v48, %v2140_v36 }
 0x8df   :  { %v2137_v42 = vpop.xlane.xlu1 %2136 }
 0x8e0   :  { %7790 = vpow2.f32 %v2199_v15  ;;  %v2175_v32 = vsub.f32 %v8672_v40, %v2137_v42  ;;  %v2197_v52 = vmul.f32 1.442695, %v2176_v37 }
 0x8e1   :  { %v2146_v35 = vpop.xlane.xlu0 %2145 }
 0x8e2   :  { %v2195_v51 = vmul.f32 1.442695, %v2175_v32  ;;  %v2178_v41 = vsub.f32 %v8678_v26, %v2146_v35 }
 0x8e3   :  { %v2155_v53 = vpop.xlane.xlu1 %2154 }
 0x8e4   :  { %7792 = vpow2.f32 %v2195_v51  ;;  %v2201_v39 = vmul.f32 1.442695, %v2178_v41  ;;  %v2181_v44 = vsub.f32 %v8688_v43, %v2155_v53 }
 0x8e5   :  { %v2152_v50 = vpop.xlane.xlu0 %2151 }
 0x8e6   :  { %7794 = vpow2.f32 %v2201_v39  ;;  %v2207_v29 = vmul.f32 1.442695, %v2181_v44  ;;  %v2180_v48 = vsub.f32 %v8696_v56, %v2152_v50 }
 0x8e7   :  { %7796 = vpow2.f32 %v2197_v52  ;;  %v2149_v45 = vpop.xlane.xlu1 %2148 }
 0x8e8   :  { %7798 = vpow2.f32 %v2207_v29  ;;  %v2179_v40 = vsub.f32 %v8690_v54, %v2149_v45  ;;  %v2205_v57 = vmul.f32 1.442695, %v2180_v48 }
 0x8e9   :  { %v2158_v58 = vpop.xlane.xlu0 %2157 }
 0x8ea   :  { %v8755_v49 = vpop.eup %7790  ;;  %v2203_v26 = vmul.f32 1.442695, %v2179_v40  ;;  %v2182_v38 = vsub.f32 %v8694_v55, %v2158_v58 }
 0x8eb   :  { %v2167_v59 = vpop.xlane.xlu1 %2166  ;;  %v2237_v43 = vsel %vm783_vm3, %v8755_v49, 0.0 }
 0x8ec   :  { %7800 = vpow2.f32 %v2203_v26  ;;  %v2209_v4 = vmul.f32 1.442695, %v2182_v38  ;;  %v2185_v8 = vsub.f32 %v8704_v62, %v2167_v59  ;;  %2238 = vadd.xlane.f32.xlu1 %v2237_v43 }
 0x8ed   :  { %v2164_v56 = vpop.xlane.xlu0 %2163 }
 0x8ee   :  { %v8761_v10 = vpop.eup %7792  ;;  %7802 = vpow2.f32 %v2209_v4  ;;  %v2215_v54 = vmul.f32 1.442695, %v2185_v8  ;;  %v2184_v1 = vsub.f32 %v8712_v60, %v2164_v56 }
 0x8ef   :  { %7804 = vpow2.f32 %v2205_v57  ;;  %v2161_v14 = vpop.xlane.xlu1 %2160  ;;  %v2231_v55 = vsel %vm783_vm3, %v8761_v10, 0.0 }
 0x8f0   :  { %v8765_v16 = vpop.eup %7794  ;;  %7806 = vpow2.f32 %v2215_v54  ;;  %v2183_v6 = vsub.f32 %v8706_v63, %v2161_v14  ;;  %2232 = vadd.xlane.f32.xlu1 %v2231_v55  ;;  %v2213_v9 = vmul.f32 1.442695, %v2184_v1 }
 0x8f1   :  { %v8769_v62 = vpop.eup %7796  ;;  %v2170_v18 = vpop.xlane.xlu0 %2169  ;;  %v2240_v19 = vsel %vm783_vm3, %v8765_v16, 0.0 }
 0x8f2   :  { %v8773_v22 = vpop.eup %7798  ;;  %v2211_v25 = vmul.f32 1.442695, %v2183_v6  ;;  %v2186_v27 = vsub.f32 %v8710_v11, %v2170_v18  ;;  %2241 = vadd.xlane.f32.xlu0 %v2240_v19  ;;  %v2234_v63 = vsel %vm783_vm3, %v8769_v62, 0.0 }
 0x8f3   :  { %v2249_v46 = vsel %vm783_vm3, %v8773_v22, 0.0  ;;  %v1730_v15 = vpop.permute.xlu1 %1729 }
 0x8f4   :  { %7808 = vpow2.f32 %v2211_v25  ;;  %v2217_v60 = vmul.f32 1.442695, %v2186_v27  ;;  %2250 = vadd.xlane.f32.xlu1 %v2249_v46 }
 0x8f5   :  { %v1732_v37 = vpop.permute.xlu0 %1731 }
 0x8f6   :  { %v8780_v28 = vpop.eup %7800  ;;  %7810 = vpow2.f32 %v2217_v60  ;;  %2235 = vadd.xlane.f32.xlu0 %v2234_v63 }
 0x8f7   :  { %v2243_v24 = vsel %vm783_vm3, %v8780_v28, 0.0  ;;  %7812 = vpow2.f32 %v2213_v9  ;;  %v8812_v42 = vpop.permute.xlu1 %1735 }
 0x8f8   :  { %v8784_v21 = vpop.eup %7802  ;;  %2244 = vadd.xlane.f32.xlu1 %v2243_v24 }
 0x8f9   :  { %v8786_v11 = vpop.eup %7804  ;;  %v2252_v3 = vsel %vm783_vm3, %v8784_v21, 0.0 }
 0x8fa   :  { %v8790_v47 = vpop.eup %7806  ;;  %2253 = vadd.xlane.f32.xlu0 %v2252_v3  ;;  %v2246_v23 = vsel %vm783_vm3, %v8786_v11, 0.0 }
 0x8fb   :  { %v2261_v17 = vsel %vm783_vm3, %v8790_v47, 0.0  ;;  %v1738_v35 = vpop.permute.xlu1 %1737 }
 0x8fc   :  { %2262 = vadd.xlane.f32.xlu1 %v2261_v17 }
 0x8fe   :  { %v8796_v30 = vpop.eup %7808  ;;  %2247 = vadd.xlane.f32.xlu0 %v2246_v23 }
 0x8ff   :  { %v2255_v31 = vsel %vm783_vm3, %v8796_v30, 0.0 }
 0x900   :  { %v8800_v7 = vpop.eup %7810  ;;  %2256 = vadd.xlane.f32.xlu1 %v2255_v31 }
 0x901   :  { %v2264_v33 = vsel %vm783_vm3, %v8800_v7, 0.0  ;;  %v8804_v34 = vpop.eup %7812 }
 0x902   :  { %2265 = vadd.xlane.f32.xlu0 %v2264_v33  ;;  %v2258_v36 = vsel %vm783_vm3, %v8804_v34, 0.0 }
 0x906   :  { %2259 = vadd.xlane.f32.xlu0 %v2258_v36 }
 0x911   :  { %1743 = vrot.lane.b32.xlu1 %v8604_v61, %s8120_s11 }
 0x91c   :  { %1741 = vrot.lane.b32.xlu0 %v8606_v13, %s8120_s11 }
 0x926   :  { %v2230_v32 = vpop.xlane.xlu0 %2229 }
 0x927   :  { %7814 = vrcp.f32 %v2230_v32 }
 0x92a   :  { %v2224_v51 = vpop.xlane.xlu0 %2223 }
 0x92c   :  { %v2227_v41 = vpop.xlane.xlu1 %2226 }
 0x92d   :  { %7816 = vrcp.f32 %v2227_v41 }
 0x92e   :  { %7818 = vrcp.f32 %v2224_v51 }
 0x930   :  { %v2221_v52 = vpop.xlane.xlu1 %2220 }
 0x931   :  { %7820 = vrcp.f32 %v2221_v52  ;;  %v7815_v53 = vpop.eup %7814 }
 0x932   :  { %v2286_v61 = vmul.f32 %v7815_v53, %v8732_v20 }
 0x937   :  { %v7817_v39 = vpop.eup %7816 }
 0x938   :  { %v2285_v44 = vmul.f32 %v7817_v39, %v8738_v5  ;;  %v7819_v50 = vpop.eup %7818 }
 0x939   :  { %v2284_v48 = vmul.f32 %v7819_v50, %v8736_v0 }
 0x93a   :  { %v2300_v13 = vpack.c.bf16 %v2286_v61, %v2285_v44 }
 0x93b   :  { %v7821_v29 = vpop.eup %7820 }
 0x93c   :  { %v2283_v45 = vmul.f32 %v7821_v29, %v8744_v2  ;;  %7123 = vmatmul.mubr.msk.bf16.vlgmr.msra.gmra.mrb[64].mxu0 %vm783_vm3, %v2300_v13 }
 0x93d   :  { %7133 = vmatpush3.bf16.msra.mxu0 %v1732_v37  ;;  %7134 = vmatprep.mubr.msk.bf16.mxu0 %vm8117_vm1, %v8116_v12 }
 0x93e   :  { %v2299_v40 = vpack.c.bf16 %v2284_v48, %v2283_v45  ;;  %7144 = vmatprep.subr.bf16.mxu0 %v8116_v12 }
 0x940   :  { %7117 = vmatmul.mubr.msk.bf16.vlgmr.msra.gmra.mrb[60].mxu1 %vm783_vm3, %v2299_v40 }
 0x941   :  { %7127 = vmatpush3.bf16.msra.mxu1 %v1730_v15  ;;  %7128 = vmatprep.mubr.msk.bf16.mxu1 %vm8117_vm1, %v8116_v12 }
 0x942   :  { %7138 = vmatprep.subr.bf16.mxu1 %v8116_v12 }
 0x979   :  { %v2239_v20 = vpop.xlane.xlu1 %2238 }
 0x97a   :  { %7822 = vrcp.f32 %v2239_v20 }
 0x97d   :  { %v2233_v0 = vpop.xlane.xlu1 %2232 }
 0x97f   :  { %v2242_v5 = vpop.xlane.xlu0 %2241 }
 0x980   :  { %7824 = vrcp.f32 %v2242_v5 }
 0x981   :  { %v2251_v2 = vpop.xlane.xlu1 %2250  ;;  %7826 = vrcp.f32 %v2233_v0  ;;  %v7691_v0 = vld [vmem:[#allocation11 + $0x10] sm:$0xff]  }
 0x983   :  { %v2236_v58 = vpop.xlane.xlu0 %2235 }
 0x984   :  { %7828 = vrcp.f32 %v2236_v58  ;;  %v7823_v57 = vpop.eup %7822 }
 0x985   :  { %v2245_v26 = vpop.xlane.xlu1 %2244  ;;  %7830 = vrcp.f32 %v2251_v2  ;;  %v2289_v4 = vmul.f32 %v7823_v57, %v8755_v49  ;;  %v7692_v57 = vld [vmem:[#allocation11 + $0x18] sm:$0xff]  }
 0x987   :  { %v2254_v38 = vpop.xlane.xlu0 %2253 }
 0x988   :  { %7832 = vrcp.f32 %v2254_v38 }
 0x989   :  { %v2263_v59 = vpop.xlane.xlu1 %2262  ;;  %7834 = vrcp.f32 %v2245_v26 }
 0x98a   :  { %v7825_v43 = vpop.eup %7824 }
 0x98b   :  { %v2290_v8 = vmul.f32 %v7825_v43, %v8765_v16  ;;  %v2248_v56 = vpop.xlane.xlu0 %2247  ;;  %v7827_v54 = vpop.eup %7826 }
 0x98c   :  { %7836 = vrcp.f32 %v2248_v56  ;;  %v2287_v1 = vmul.f32 %v7827_v54, %v8761_v10 }
 0x98d   :  { %v2302_v14 = vpack.c.bf16 %v2290_v8, %v2289_v4  ;;  %7838 = vrcp.f32 %v2263_v59  ;;  %v2257_v18 = vpop.xlane.xlu1 %2256 }
 0x98e   :  { %v7829_v55 = vpop.eup %7828 }
 0x98f   :  { %v2288_v6 = vmul.f32 %v7829_v55, %v8769_v62  ;;  %7135 = vmatmul.mubr.msk.bf16.vlgmr.msra.gmra.mrb[68].mxu0 %vm783_vm3, %v2302_v14  ;;  %v2266_v19 = vpop.xlane.xlu0 %2265  ;;  %v7831_v25 = vpop.eup %7830  ;;  %v7693_v14 = vld [vmem:[#allocation7 + $0x20] sm:$0xff]  }
 0x990   :  { %7145 = vmatpush3.bf16.msra.mxu0 %v1738_v35  ;;  %7840 = vrcp.f32 %v2266_v19  ;;  %7146 = vmatprep.mubr.msk.bf16.mxu0 %vm8117_vm1, %v8116_v12  ;;  %v2293_v27 = vmul.f32 %v7831_v25, %v8773_v22 }
 0x991   :  { %v2301_v49 = vpack.c.bf16 %v2288_v6, %v2287_v1  ;;  %7156 = vmatprep.subr.bf16.mxu0 %v8116_v12  ;;  %7842 = vrcp.f32 %v2257_v18  ;;  %v1744_v24 = vpop.permute.xlu1 %1743  ;;  %v7694_v18 = vld [vmem:[#allocation7 + $0x28] sm:$0xff]  }
 0x992   :  { %v7833_v16 = vpop.eup %7832 }
 0x993   :  { %v2294_v10 = vmul.f32 %v7833_v16, %v8784_v21  ;;  %7129 = vmatmul.mubr.msk.bf16.vlgmr.msra.gmra.mrb[64].mxu1 %vm783_vm3, %v2301_v49  ;;  %v2260_v62 = vpop.xlane.xlu0 %2259  ;;  %v7835_v46 = vpop.eup %7834 }
 0x994   :  { %7139 = vmatpush3.bf16.msra.mxu1 %v8812_v42  ;;  %7844 = vrcp.f32 %v2260_v62  ;;  %7140 = vmatprep.mubr.msk.bf16.mxu1 %vm8117_vm1, %v8116_v12  ;;  %v2291_v63 = vmul.f32 %v7835_v46, %v8780_v28 }
 0x995   :  { %v2304_v9 = vpack.c.bf16 %v2294_v10, %v2293_v27  ;;  %7150 = vmatprep.subr.bf16.mxu1 %v8116_v12 }
 0x996   :  { %v7837_v60 = vpop.eup %7836 }
 0x997   :  { %v2292_v22 = vmul.f32 %v7837_v60, %v8786_v11  ;;  %7147 = vmatmul.mubr.msk.bf16.vlgmr.msra.gmra.mrb[72].mxu0 %vm783_vm3, %v2304_v9  ;;  %v7839_v21 = vpop.eup %7838  ;;  %v1742_v33 = vpop.permute.xlu0 %1741 }
 0x998   :  { %7157 = vmatpush3.bf16.msra.mxu0 %v1744_v24  ;;  %7158 = vmatprep.mubr.msk.bf16.mxu0 %vm8117_vm1, %v8116_v12  ;;  %v2297_v23 = vmul.f32 %v7839_v21, %v8790_v47 }
 0x999   :  { %v2303_v3 = vpack.c.bf16 %v2292_v22, %v2291_v63  ;;  %7170 = vmatprep.subr.bf16.mxu0 %v8116_v12 }
 0x99a   :  { %v7841_v17 = vpop.eup %7840 }
 0x99b   :  { %v2298_v31 = vmul.f32 %v7841_v17, %v8800_v7  ;;  %7141 = vmatmul.mubr.msk.bf16.vlgmr.msra.gmra.mrb[68].mxu1 %vm783_vm3, %v2303_v3  ;;  %v7843_v28 = vpop.eup %7842 }
 0x99c   :  { %7151 = vmatpush3.bf16.msra.mxu1 %v1742_v33  ;;  %7152 = vmatprep.mubr.msk.bf16.mxu1 %vm8117_vm1, %v8116_v12  ;;  %v2295_v15 = vmul.f32 %v7843_v28, %v8796_v30 }
 0x99d   :  { %v2306_v11 = vpack.c.bf16 %v2298_v31, %v2297_v23  ;;  %7162 = vmatprep.subr.bf16.mxu1 %v7691_v0 }
 0x99e   :  { %v7845_v36 = vpop.eup %7844 }
 0x99f   :  { %v2296_v37 = vmul.f32 %v7845_v36, %v8804_v34  ;;  %7159 = vmatmul.mubr.msk.bf16.vlgmr.msra.gmra.mrb[76].mxu0 %vm783_vm3, %v2306_v11 }
 0x9a0   :  { %7174 = vmatprep.mubr.msk.bf16.mxu0 %vm8117_vm1, %v8116_v12  ;;  %7171 = vmatpush3.bf16.msra.mxu0 %v7693_v14 }
 0x9a1   :  { %v2305_v47 = vpack.c.bf16 %v2296_v37, %v2295_v15  ;;  %7172 = vmatprep.subr.bf16.mxu0 %v8116_v12 }
 0x9a3   :  { %7153 = vmatmul.mubr.msk.bf16.vlgmr.msra.gmra.mrb[72].mxu1 %vm783_vm3, %v2305_v47 }
 0x9a4   :  { %7163 = vmatpush3.bf16.msra.mxu1 %v7691_v0  ;;  %7173 = vmatpush3.bf16.msra.mxu0 %v7694_v18 }
 0x9a5   :  { %7164 = vmatprep.subr.bf16.mxu1 %v7692_v57 }
 0x9a8   :  { %7165 = vmatpush3.bf16.msra.mxu1 %v7692_v57 }
 0xa0f   :  { %v8858_v7 = vpop.f32.mrb[64].mxu0 }
 0xa10   :  { %v7124_v42 = vpop.f32.mrb[65].mxu0 }
 0xa11   :  { %v2391_v32 = vpop.f32.mrb[66].mxu0 }
 0xa12   :  { %v7125_v35 = vpop.f32.mrb[67].mxu0 }
 0xa13   :  { %v8860_v51 = vpop.f32.mrb[60].mxu1 }
 0xa14   :  { %v7118_v41 = vpop.f32.mrb[61].mxu1 }
 0xa15   :  { %v8862_v52 = vpop.f32.mrb[62].mxu1 }
 0xa16   :  { %v7119_v30 = vpop.f32.mrb[63].mxu1 }
 0xa62   :  { %v2476_v34 = vpop.f32.mrb[68].mxu0 }
 0xa63   :  { %v7136_v53 = vpop.f32.mrb[69].mxu0 }
 0xa64   :  { %v2479_v39 = vpop.f32.mrb[70].mxu0 }
 0xa65   :  { %v7602_v61 = vpack.i.bf16 %v2479_v39, %v2476_v34  ;;  %v7137_v44 = vpop.f32.mrb[71].mxu0 }
 0xa66   :  { %v2432_v50 = vpop.f32.mrb[64].mxu1 }
 0xa67   :  { %7603 = vrot.lane.b32.xlu1 %v7602_v61, %s8112_s26  ;;  %v7130_v13 = vpop.f32.mrb[65].mxu1 }
 0xa68   :  { %v2435_v29 = vpop.f32.mrb[66].mxu1  ;;  %v7697_v13 = vld [vmem:[#allocation10 + $0x20] sm:$0xff]  }
 0xa69   :  { %v7607_v48 = vpack.i.bf16 %v2435_v29, %v2432_v50  ;;  %v7131_v45 = vpop.f32.mrb[67].mxu1  ;;  %v7695_v50 = vld [vmem:[#allocation5] ss:$0 sps:$4 sm:$0xff]   ;;  %7186 = vmatprep.subr.bf16.mxu0 %v7697_v13  ;;  %v7699_v29 = vld [vmem:[#allocation10 + $0x28] sm:$0xff]  }
 0xa6a   :  { %v2564_v40 = vpop.f32.mrb[72].mxu0  ;;  %7175 = vmatmul.mubr.msk.bf16.vlgmr.msra.gmra.mrb[80].mxu0 %vm162_vm0, %v7695_v50  ;;  %v6498_v45 = vld [vmem:[%s9441_s9 + $0x1] ss:$0 sm:$0xff] }
 0xa6b   :  { %v7148_v20 = vpop.f32.mrb[73].mxu0  ;;  %7608 = vrot.lane.b32.xlu0 %v7607_v48, %s8112_s26  ;;  %7187 = vmatpush3.bf16.msra.mxu0 %v7697_v13 }
 0xa6c   :  { %v2567_v5 = vpop.f32.mrb[74].mxu0  ;;  %7188 = vmatprep.subr.bf16.mxu0 %v7699_v29 }
 0xa6d   :  { %v7612_v2 = vpack.i.bf16 %v2567_v5, %v2564_v40  ;;  %v7149_v58 = vpop.f32.mrb[75].mxu0 }
 0xa6e   :  { %v2520_v26 = vpop.f32.mrb[68].mxu1 }
 0xa6f   :  { %7613 = vrot.lane.b32.xlu1 %v7612_v2, %s8121_s1  ;;  %v7142_v38 = vpop.f32.mrb[69].mxu1  ;;  %7189 = vmatpush3.bf16.msra.mxu0 %v7699_v29 }
 0xa70   :  { %v2523_v59 = vpop.f32.mrb[70].mxu1  ;;  %7200 = vmatprep.subr.bf16.mxu0 %v8116_v12 }
 0xa71   :  { %v7617_v43 = vpack.i.bf16 %v2523_v59, %v2520_v26  ;;  %v7143_v4 = vpop.f32.mrb[71].mxu1  ;;  %v6507_v59 = vld [vmem:[%s9435_s3 + $0x2] ss:$0 sm:$0xff] }
 0xa72   :  { %v2652_v8 = vpop.f32.mrb[76].mxu0 }
 0xa73   :  { %v7160_v56 = vpop.f32.mrb[77].mxu0  ;;  %7618 = vrot.lane.b32.xlu0 %v7617_v43, %s8121_s1 }
 0xa74   :  { %v2655_v54 = vpop.f32.mrb[78].mxu0 }
 0xa75   :  { %v7627_v55 = vpack.i.bf16 %v2655_v54, %v2652_v8  ;;  %v7161_v1 = vpop.f32.mrb[79].mxu0 }
 0xa76   :  { %v2608_v6 = vpop.f32.mrb[72].mxu1 }
 0xa77   :  { %7628 = vrot.lane.b32.xlu1 %v7627_v55, %s8122_s2  ;;  %v7154_v19 = vpop.f32.mrb[73].mxu1 }
 0xa78   :  { %v2611_v25 = vpop.f32.mrb[74].mxu1  ;;  %v6517_v19 = vld [vmem:[%s9439_s7 + $0x2] ss:$0 sm:$0xff] }
 0xa79   :  { %v7622_v49 = vpack.i.bf16 %v2611_v25, %v2608_v6  ;;  %v7155_v16 = vpop.f32.mrb[75].mxu1  ;;  %v6512_v6 = vld [vmem:[%s9437_s5 + $0x2] ss:$0 sm:$0xff] }
 0xa7b   :  { %7623 = vrot.lane.b32.xlu0 %v7622_v49, %s8122_s2 }
 0xad9   :  { %v7604_v27 = vpop.permute.xlu1 %7603 }
 0xada   :  { %v7606_v46 = vunpack.i.h.bf16 %v7604_v27  ;;  %v7605_v9 = vunpack.i.l.bf16 %v7604_v27 }
 0xadc   :  { %v2710_v24 = vsel %vm406_vm2, %v2391_v32, %v7606_v46  ;;  %v2709_v21 = vsel %vm406_vm2, %v8858_v7, %v7605_v9 }
 0xadd   :  { %v7609_v10 = vpop.permute.xlu0 %7608 }
 0xade   :  { %v7611_v17 = vunpack.i.h.bf16 %v7609_v10  ;;  %v7610_v23 = vunpack.i.l.bf16 %v7609_v10 }
 0xae0   :  { %v2708_v7 = vsel %vm406_vm2, %v8862_v52, %v7611_v17  ;;  %v2707_v35 = vsel %vm406_vm2, %v8860_v51, %v7610_v23  ;;  %v7696_v52 = vld [vmem:[#allocation8 + $0x20] sm:$0xff]   ;;  %v7698_v51 = vld [vmem:[#allocation8 + $0x28] sm:$0xff]  }
 0xae1   :  { %v7614_v62 = vpop.permute.xlu1 %7613  ;;  %7178 = vmatprep.subr.bf16.mxu1 %v7696_v52 }
 0xae2   :  { %v7616_v60 = vunpack.i.h.bf16 %v7614_v62  ;;  %v7615_v63 = vunpack.i.l.bf16 %v7614_v62 }
 0xae4   :  { %v2714_v28 = vsel %vm783_vm3, %v2710_v24, %v7616_v60  ;;  %v2713_v11 = vsel %vm783_vm3, %v2709_v21, %v7615_v63 }
 0xae5   :  { %v7619_v22 = vpop.permute.xlu0 %7618 }
 0xae6   :  { %v7621_v36 = vunpack.i.h.bf16 %v7619_v22  ;;  %v7620_v15 = vunpack.i.l.bf16 %v7619_v22 }
 0xae8   :  { %v2712_v34 = vsel %vm783_vm3, %v2708_v7, %v7621_v36  ;;  %v2711_v53 = vsel %vm783_vm3, %v2707_v35, %v7620_v15 }
 0xae9   :  { %v7629_v3 = vpop.permute.xlu1 %7628 }
 0xaea   :  { %v7631_v31 = vunpack.i.h.bf16 %v7629_v3  ;;  %v7630_v33 = vunpack.i.l.bf16 %v7629_v3 }
 0xaec   :  { %v2718_v37 = vsel %vm1376_vm4, %v2714_v28, %v7631_v31  ;;  %v2717_v47 = vsel %vm1376_vm4, %v2713_v11, %v7630_v33 }
 0xaed   :  { %v2720_v42 = vpack.c.bf16 %v2718_v37, %v2717_v47  ;;  %v7624_v32 = vpop.permute.xlu0 %7623 }
 0xaee   :  { %v7626_v41 = vunpack.i.h.bf16 %v7624_v32  ;;  %v7625_v30 = vunpack.i.l.bf16 %v7624_v32 }
 0xaf0   :  { %v2716_v39 = vsel %vm1376_vm4, %v2712_v34, %v7626_v41  ;;  %v2715_v61 = vsel %vm1376_vm4, %v2711_v53, %v7625_v30 }
 0xaf1   :  { %v2719_v44 = vpack.c.bf16 %v2716_v39, %v2715_v61 }
 0xaf3   :  { %7166 = vmatprep.mubr.msk.bf16.mxu1 %vm162_vm0, %v2719_v44 }
 0xaf4   :  { %7167 = vmatmul.mubr.msk.bf16.vlgmr.msra.gmra.mrb[76].mxu1 %vm162_vm0, %v2720_v42 }
 0xaf5   :  { %7179 = vmatpush3.bf16.msra.mxu1 %v7696_v52 }
 0xaf6   :  { %7180 = vmatprep.subr.bf16.mxu1 %v7698_v51 }
 0xaf9   :  { %7181 = vmatpush3.bf16.msra.mxu1 %v7698_v51 }
 0xafa   :  { %7194 = vmatprep.subr.bf16.mxu1 %v8116_v12 }
 0xb3d   :  { %v2882_v43 = vpop.f32.mrb[80].mxu0 }
 0xb3e   :  { %v2883_v4 = vadd.f32 %v6507_v59, %v2882_v43  ;;  %v7176_v8 = vpop.f32.mrb[81].mxu0 }
 0xb3f   :  { %v2885_v56 = vpop.f32.mrb[82].mxu0 }
 0xb40   :  { %v2886_v54 = vadd.f32 %v6507_v59, %v2885_v56  ;;  %v7177_v14 = vpop.f32.mrb[83].mxu0  ;;  %v6670_v15 = vpack.c.bf16 %v2883_v4, %v2883_v4 }
 0xb42   :  { %v3029_v55 = vpack.c.bf16 %v2886_v54, %v2883_v4  ;;  %v6671_v36 = vpack.c.bf16 %v2886_v54, %v2886_v54 }
 0xbc7   :  { %v7168_v48 = vpop.f32.mrb[76].mxu1 }
 0xbc8   :  { %v2779_v40 = vpop.f32.mrb[77].mxu1  ;;  %v2788_v0 = vadd.f32 %v7168_v48, %v6498_v45 }
 0xbc9   :  { %v7169_v20 = vpop.f32.mrb[78].mxu1  ;;  %v2780_v58 = vadd.f32 %v6498_v45, %v2779_v40 }
 0xbca   :  { %v2791_v5 = vadd.f32 %v7169_v20, %v6498_v45  ;;  %v2782_v2 = vpop.f32.mrb[79].mxu1 }
 0xbcb   :  { %v2783_v26 = vadd.f32 %v6498_v45, %v2782_v2 }
 0xbcc   :  { %v2823_v38 = vpack.c.bf16 %v2791_v5, %v2788_v0 }
 0xbcd   :  { %v2822_v57 = vpack.c.bf16 %v2783_v26, %v2780_v58 }
 0xbcf   :  { %7182 = vmatprep.mubr.msk.bf16.mxu1 %vm162_vm0, %v2822_v57  ;;  %7190 = vmatprep.mubr.msk.bf16.mxu0 %vm162_vm0, %v2822_v57 }
 0xbd0   :  { %7183 = vmatmul.mubr.msk.bf16.vlgmr.msra.gmra.mrb[80].mxu1 %vm162_vm0, %v2823_v38  ;;  %7191 = vmatmul.mubr.msk.bf16.vlgmr.msra.gmra.mrb[84].mxu0 %vm162_vm0, %v2823_v38 }
 0xbd1   :  { %7202 = vmatprep.mubr.msk.bf16.mxu0 %vm8117_vm1, %v8116_v12  ;;  %7196 = vmatprep.mubr.msk.bf16.mxu1 %vm8117_vm1, %v8116_v12 }
 0xca3   :  { %v7184_v1 = vpop.f32.mrb[80].mxu1  ;;  %v7192_v18 = vpop.f32.mrb[84].mxu0 }
 0xca4   :  { %v2947_v25 = vpop.f32.mrb[81].mxu1  ;;  %v3014_v49 = vpop.f32.mrb[85].mxu0  ;;  %v2956_v10 = vadd.f32 %v7184_v1, %v6512_v6  ;;  %v3023_v62 = vadd.f32 %v7192_v18, %v6517_v19 }
 0xca5   :  { %v7185_v16 = vpop.f32.mrb[82].mxu1  ;;  %v7193_v27 = vpop.f32.mrb[86].mxu0  ;;  %v2948_v22 = vadd.f32 %v6512_v6, %v2947_v25  ;;  %v3015_v24 = vadd.f32 %v6517_v19, %v3014_v49 }
 0xca6   :  { %v2959_v46 = vadd.f32 %v7185_v16, %v6512_v6  ;;  %v3026_v9 = vadd.f32 %v7193_v27, %v6517_v19  ;;  %v2950_v60 = vpop.f32.mrb[83].mxu1  ;;  %v3017_v63 = vpop.f32.mrb[87].mxu0 }
 0xca7   :  { %v2951_v21 = vadd.f32 %v6512_v6, %v2950_v60  ;;  %v3018_v3 = vadd.f32 %v6517_v19, %v3017_v63 }
 0xca8   :  { %v3054_v17 = vpack.c.bf16 %v2959_v46, %v2956_v10  ;;  %v8911_v23 = vpack.c.bf16 %v3026_v9, %v3023_v62 }
 0xca9   :  { %v3053_v31 = vpack.c.bf16 %v2951_v21, %v2948_v22  ;;  %v8913_v33 = vpack.c.bf16 %v3018_v3, %v3015_v24 }
 0xcaa   :  { %3059 = vrot.lane.b32.xlu1 %v3054_v17, %s8118_s29  ;;  %v3141_v28 = vsel %vm406_vm2, %v3054_v17, 0 }
 0xcab   :  { %7201 = vmatpush3.bf16.xpose.msra.mxu0 %v3141_v28  ;;  %3057 = vrot.lane.b32.xlu0 %v3053_v31, %s8118_s29  ;;  %v3095_v11 = vsel %vm406_vm2, %v3053_v31, 0 }
 0xcac   :  { %7195 = vmatpush3.bf16.xpose.msra.mxu1 %v3095_v11  ;;  %7212 = vmatprep.subr.bf16.mxu0 %v8116_v12 }
 0xcad   :  { %7206 = vmatprep.subr.bf16.mxu1 %v8116_v12 }
 0xcae   :  { %3061 = vrot.lane.b32.xlu1 %v3053_v31, %s8119_s30 }
 0xcaf   :  { %3031 = vrot.lane.b32.xlu0 %v3029_v55, %s8118_s29 }
 0xcb2   :  { %7203 = vmatmul.mubr.msk.bf16.vlgmr.msra.gmra.mrb[88].mxu0 %vm406_vm2, %v6671_v36  ;;  %3033 = vrot.lane.b32.xlu1 %v3029_v55, %s8119_s30 }
 0xcb3   :  { %3063 = vrot.lane.b32.xlu0 %v3054_v17, %s8119_s30  ;;  %7197 = vmatmul.mubr.msk.bf16.vlgmr.msra.gmra.mrb[84].mxu1 %vm406_vm2, %v6670_v15 }
 0xcb4   :  { %7214 = vmatprep.mubr.msk.bf16.mxu0 %vm8117_vm1, %v8116_v12  ;;  %7208 = vmatprep.mubr.msk.bf16.mxu1 %vm8117_vm1, %v8116_v12 }
 0xcb6   :  { %3067 = vrot.lane.b32.xlu1 %v3054_v17, %s8120_s11 }
 0xcb7   :  { %3065 = vrot.lane.b32.xlu0 %v3053_v31, %s8120_s11 }
 0xcbb   :  { %3035 = vrot.lane.b32.xlu0 %v3029_v55, %s8120_s11 }
 0xd1c   :  { %v3060_v37 = vpop.permute.xlu1 %3059 }
 0xd1d   :  { %v3233_v47 = vsel %vm406_vm2, %v3060_v37, 0  ;;  %v3058_v42 = vpop.permute.xlu0 %3057 }
 0xd1e   :  { %v3187_v32 = vsel %vm406_vm2, %v3058_v42, 0  ;;  %7213 = vmatpush3.bf16.xpose.msra.mxu0 %v3233_v47 }
 0xd1f   :  { %7207 = vmatpush3.bf16.xpose.msra.mxu1 %v3187_v32  ;;  %7224 = vmatprep.subr.bf16.mxu0 %v8116_v12 }
 0xd20   :  { %v3062_v7 = vpop.permute.xlu1 %3061  ;;  %7218 = vmatprep.subr.bf16.mxu1 %v8116_v12 }
 0xd21   :  { %v3032_v35 = vpop.permute.xlu0 %3031  ;;  %v3279_v39 = vsel %vm406_vm2, %v3062_v7, 0 }
 0xd22   :  { %v6525_v41 = vcombine.high %v3032_v35, %v3032_v35  ;;  %v6524_v30 = vcombine.low %v3032_v35, %v3032_v35 }
 0xd24   :  { %v3034_v34 = vpop.permute.xlu1 %3033 }
 0xd25   :  { %7215 = vmatmul.mubr.msk.bf16.vlgmr.msra.gmra.mrb[92].mxu0 %vm406_vm2, %v6525_v41  ;;  %v3064_v53 = vpop.permute.xlu0 %3063  ;;  %v6526_v52 = vcombine.low %v3034_v34, %v3034_v34  ;;  %v6527_v13 = vcombine.high %v3034_v34, %v3034_v34 }
 0xd26   :  { %v3325_v61 = vsel %vm406_vm2, %v3064_v53, 0  ;;  %7209 = vmatmul.mubr.msk.bf16.vlgmr.msra.gmra.mrb[88].mxu1 %vm406_vm2, %v6524_v30  ;;  %7226 = vmatprep.mubr.msk.bf16.mxu0 %vm8117_vm1, %v8116_v12 }
 0xd27   :  { %7219 = vmatpush3.bf16.xpose.msra.mxu1 %v3279_v39  ;;  %7225 = vmatpush3.bf16.xpose.msra.mxu0 %v3325_v61 }
 0xd28   :  { %7220 = vmatprep.mubr.msk.bf16.mxu1 %vm8117_vm1, %v8116_v12  ;;  %7230 = vmatprep.subr.bf16.mxu1 %v8116_v12  ;;  %v3068_v44 = vpop.permute.xlu1 %3067 }
 0xd29   :  { %7236 = vmatprep.subr.bf16.mxu0 %v8116_v12  ;;  %v3066_v50 = vpop.permute.xlu0 %3065  ;;  %v3417_v51 = vsel %vm406_vm2, %v3068_v44, 0 }
 0xd2a   :  { %v3371_v29 = vsel %vm406_vm2, %v3066_v50, 0 }
 0xd2d   :  { %v3036_v48 = vpop.permute.xlu0 %3035 }
 0xd2e   :  { %7221 = vmatmul.mubr.msk.bf16.vlgmr.msra.gmra.mrb[92].mxu1 %vm406_vm2, %v6526_v52  ;;  %7227 = vmatmul.mubr.msk.bf16.vlgmr.msra.gmra.mrb[96].mxu0 %vm406_vm2, %v6527_v13  ;;  %v6528_v45 = vcombine.low %v3036_v48, %v3036_v48  ;;  %v6529_v40 = vcombine.high %v3036_v48, %v3036_v48 }
 0xd2f   :  { %7231 = vmatpush3.bf16.xpose.msra.mxu1 %v3371_v29  ;;  %7237 = vmatpush3.bf16.xpose.msra.mxu0 %v3417_v51 }
 0xd30   :  { %7232 = vmatprep.mubr.msk.bf16.mxu1 %vm8117_vm1, %v8116_v12  ;;  %7238 = vmatprep.mubr.msk.bf16.mxu0 %vm8117_vm1, %v8116_v12 }
 0xd31   :  { %7242 = vmatprep.subr.bf16.mxu1 %v8116_v12  ;;  %7248 = vmatprep.subr.bf16.mxu0 %v8116_v12 }
 0xd36   :  { %7233 = vmatmul.mubr.msk.bf16.vlgmr.msra.gmra.mrb[96].mxu1 %vm406_vm2, %v6528_v45  ;;  %7239 = vmatmul.mubr.msk.bf16.vlgmr.msra.gmra.mrb[100].mxu0 %vm406_vm2, %v6529_v40 }
 0xd37   :  { %7243 = vmatpush3.bf16.msra.mxu1 %v8913_v33  ;;  %7249 = vmatpush3.bf16.msra.mxu0 %v8911_v23 }
 0xd38   :  { %7244 = vmatprep.mubr.msk.bf16.mxu1 %vm8117_vm1, %v8116_v12  ;;  %7250 = vmatprep.mubr.msk.bf16.mxu0 %vm8117_vm1, %v8116_v12 }
 0xd39   :  { %7254 = vmatprep.subr.bf16.mxu1 %v8116_v12  ;;  %7260 = vmatprep.subr.bf16.mxu0 %v8116_v12 }
 0xd85   :  { %v3177_v20 = vpop.f32.mrb[88].mxu0 }
 0xd86   :  { %v3131_v0 = vpop.f32.mrb[84].mxu1  ;;  %v7204_v5 = vpop.f32.mrb[89].mxu0  ;;  %v3462_v2 = vsel %vm783_vm3, %v3177_v20, -inf }
 0xd87   :  { %v3180_v58 = vpop.f32.mrb[90].mxu0  ;;  %3463 = vmax.xlane.f32.xlu0 %v3462_v2  ;;  %v7198_v26 = vpop.f32.mrb[85].mxu1  ;;  %v3459_v38 = vsel %vm783_vm3, %v3131_v0, -inf }
 0xd88   :  { %v7205_v57 = vpop.f32.mrb[91].mxu0  ;;  %3460 = vmax.xlane.f32.xlu1 %v3459_v38  ;;  %v3134_v59 = vpop.f32.mrb[86].mxu1 }
 0xd89   :  { %v7199_v43 = vpop.f32.mrb[87].mxu1 }
 0xdf8   :  { %v3269_v4 = vpop.f32.mrb[92].mxu0 }
 0xdf9   :  { %v3223_v8 = vpop.f32.mrb[88].mxu1  ;;  %v7216_v56 = vpop.f32.mrb[93].mxu0  ;;  %v3468_v54 = vsel %vm783_vm3, %v3269_v4, -inf }
 0xdfa   :  { %v3272_v14 = vpop.f32.mrb[94].mxu0  ;;  %3469 = vmax.xlane.f32.xlu1 %v3468_v54  ;;  %v7210_v55 = vpop.f32.mrb[89].mxu1  ;;  %v3465_v1 = vsel %vm783_vm3, %v3223_v8, -inf }
 0xdfb   :  { %v7217_v6 = vpop.f32.mrb[95].mxu0  ;;  %3466 = vmax.xlane.f32.xlu0 %v3465_v1  ;;  %v3226_v18 = vpop.f32.mrb[90].mxu1 }
 0xdfc   :  { %v7211_v19 = vpop.f32.mrb[91].mxu1 }
 0xe01   :  { %v8972_v25 = vpop.f32.mrb[92].mxu1  ;;  %v3361_v49 = vpop.f32.mrb[96].mxu0 }
 0xe02   :  { %v7222_v16 = vpop.f32.mrb[93].mxu1  ;;  %v7228_v27 = vpop.f32.mrb[97].mxu0  ;;  %v3474_v10 = vsel %vm783_vm3, %v3361_v49, -inf  ;;  %v3471_v62 = vsel %vm783_vm3, %v8972_v25, -inf }
 0xe03   :  { %v3364_v46 = vpop.f32.mrb[98].mxu0  ;;  %3475 = vmax.xlane.f32.xlu1 %v3474_v10  ;;  %3472 = vmax.xlane.f32.xlu0 %v3471_v62  ;;  %v3318_v9 = vpop.f32.mrb[94].mxu1 }
 0xe04   :  { %v7223_v60 = vpop.f32.mrb[95].mxu1  ;;  %v7229_v63 = vpop.f32.mrb[99].mxu0 }
 0xe09   :  { %v8977_v22 = vpop.f32.mrb[96].mxu1  ;;  %v3453_v24 = vpop.f32.mrb[100].mxu0 }
 0xe0a   :  { %v7234_v21 = vpop.f32.mrb[97].mxu1  ;;  %v7240_v3 = vpop.f32.mrb[101].mxu0  ;;  %v3480_v17 = vsel %vm783_vm3, %v3453_v24, -inf  ;;  %v3477_v31 = vsel %vm783_vm3, %v8977_v22, -inf }
 0xe0b   :  { %v3456_v28 = vpop.f32.mrb[102].mxu0  ;;  %3481 = vmax.xlane.f32.xlu1 %v3480_v17  ;;  %3478 = vmax.xlane.f32.xlu0 %v3477_v31  ;;  %v3410_v11 = vpop.f32.mrb[98].mxu1 }
 0xe0c   :  { %v7235_v36 = vpop.f32.mrb[99].mxu1  ;;  %v7241_v15 = vpop.f32.mrb[103].mxu0 }
 0xe14   :  { %v3464_v37 = vpop.xlane.xlu0 %3463 }
 0xe15   :  { %v3461_v47 = vpop.xlane.xlu1 %3460  ;;  %v3484_v42 = vsub.f32 %v3177_v20, %v3464_v37 }
 0xe16   :  { %v3483_v32 = vsub.f32 %v3131_v0, %v3461_v47 }
 0xe17   :  { %v3493_v7 = vmul.f32 1.442695, %v3484_v42 }
 0xe18   :  { %v3491_v35 = vmul.f32 1.442695, %v3483_v32 }
 0xe19   :  { %7846 = vpow2.f32 %v3493_v7 }
 0xe1a   :  { %7848 = vpow2.f32 %v3491_v35 }
 0xe1c   :  { %3075 = vrot.lane.b32.xlu1 %v8911_v23, %s8118_s29 }
 0xe21   :  { %3073 = vrot.lane.b32.xlu0 %v8913_v33, %s8118_s29 }
 0xe23   :  { %v7847_v41 = vpop.eup %7846 }
 0xe24   :  { %v7849_v30 = vpop.eup %7848  ;;  %v3510_v34 = vsel %vm783_vm3, %v7847_v41, 0.0 }
 0xe25   :  { %v3507_v53 = vsel %vm783_vm3, %v7849_v30, 0.0 }
 0xe40   :  { %3511 = vadd.xlane.f32.xlu1 %v3510_v34  ;;  %3508 = vadd.xlane.f32.xlu0 %v3507_v53 }
 0xe51   :  { %3079 = vrot.lane.b32.xlu1 %v8913_v33, %s8119_s30 }
 0xe87   :  { %v3470_v39 = vpop.xlane.xlu1 %3469 }
 0xe88   :  { %v3486_v61 = vsub.f32 %v3269_v4, %v3470_v39  ;;  %v3467_v44 = vpop.xlane.xlu0 %3466 }
 0xe89   :  { %v3485_v50 = vsub.f32 %v3223_v8, %v3467_v44 }
 0xe8a   :  { %v3497_v52 = vmul.f32 1.442695, %v3486_v61 }
 0xe8b   :  { %v3495_v13 = vmul.f32 1.442695, %v3485_v50 }
 0xe8c   :  { %7850 = vpow2.f32 %v3497_v52 }
 0xe8d   :  { %7852 = vpow2.f32 %v3495_v13 }
 0xe90   :  { %v3476_v51 = vpop.xlane.xlu1 %3475  ;;  %v3473_v43 = vpop.xlane.xlu0 %3472 }
 0xe91   :  { %v3488_v29 = vsub.f32 %v3361_v49, %v3476_v51  ;;  %v3487_v4 = vsub.f32 %v8972_v25, %v3473_v43 }
 0xe93   :  { %v3501_v48 = vmul.f32 1.442695, %v3488_v29  ;;  %v3499_v56 = vmul.f32 1.442695, %v3487_v4 }
 0xe95   :  { %7854 = vpow2.f32 %v3501_v48 }
 0xe96   :  { %v7851_v45 = vpop.eup %7850 }
 0xe97   :  { %v7853_v40 = vpop.eup %7852  ;;  %v3516_v20 = vsel %vm783_vm3, %v7851_v45, 0.0 }
 0xe98   :  { %3517 = vadd.xlane.f32.xlu1 %v3516_v20  ;;  %v3482_v0 = vpop.xlane.xlu1 %3481  ;;  %v3513_v5 = vsel %vm783_vm3, %v7853_v40, 0.0  ;;  %v3479_v8 = vpop.xlane.xlu0 %3478 }
 0xe99   :  { %v3490_v2 = vsub.f32 %v3453_v24, %v3482_v0  ;;  %3514 = vadd.xlane.f32.xlu0 %v3513_v5  ;;  %v3489_v54 = vsub.f32 %v8977_v22, %v3479_v8 }
 0xe9b   :  { %v3505_v58 = vmul.f32 1.442695, %v3490_v2  ;;  %v3503_v14 = vmul.f32 1.442695, %v3489_v54 }
 0xe9c   :  { %v3076_v55 = vpop.permute.xlu1 %3075  ;;  %v3074_v1 = vpop.permute.xlu0 %3073 }
 0xe9d   :  { %7856 = vpow2.f32 %v3505_v58 }
 0xe9e   :  { %7858 = vpow2.f32 %v3499_v56 }
 0xe9f   :  { %v8992_v26 = vpop.eup %7854  ;;  %7860 = vpow2.f32 %v3503_v14 }
 0xea0   :  { %v3522_v38 = vsel %vm783_vm3, %v8992_v26, 0.0 }
 0xea1   :  { %3523 = vadd.xlane.f32.xlu1 %v3522_v38 }
 0xea7   :  { %v8996_v57 = vpop.eup %7856 }
 0xea8   :  { %v3528_v59 = vsel %vm783_vm3, %v8996_v57, 0.0  ;;  %v9006_v6 = vpop.eup %7858 }
 0xea9   :  { %3529 = vadd.xlane.f32.xlu1 %v3528_v59  ;;  %v3519_v49 = vsel %vm783_vm3, %v9006_v6, 0.0  ;;  %v9010_v25 = vpop.eup %7860 }
 0xeaf   :  { %3081 = vrot.lane.b32.xlu0 %v8911_v23, %s8119_s30 }
 0xeba   :  { %3085 = vrot.lane.b32.xlu1 %v8913_v33, %s8120_s11  ;;  %v3525_v33 = vsel %vm783_vm3, %v9010_v25, 0.0 }
 0xecd   :  { %v3512_v18 = vpop.xlane.xlu1 %3511  ;;  %v3509_v19 = vpop.xlane.xlu0 %3508 }
 0xece   :  { %7862 = vrcp.f32 %v3512_v18  ;;  %3520 = vadd.xlane.f32.xlu0 %v3519_v49 }
 0xecf   :  { %7864 = vrcp.f32 %v3509_v19 }
 0xed1   :  { %v3080_v60 = vpop.permute.xlu1 %3079 }
 0xed2   :  { %3526 = vadd.xlane.f32.xlu0 %v3525_v33 }
 0xed8   :  { %v7863_v16 = vpop.eup %7862 }
 0xed9   :  { %v7865_v27 = vpop.eup %7864  ;;  %v3540_v10 = vmul.f32 %v7863_v16, %v7847_v41 }
 0xeda   :  { %v3539_v62 = vmul.f32 %v7865_v27, %v7849_v30 }
 0xedb   :  { %v3548_v46 = vpack.c.bf16 %v3540_v10, %v3540_v10 }
 0xedc   :  { %v3547_v9 = vpack.c.bf16 %v3539_v62, %v3539_v62 }
 0xedd   :  { %7251 = vmatmul.mubr.msk.bf16.vlgmr.msra.gmra.mrb[104].mxu0 %vm783_vm3, %v3548_v46 }
 0xede   :  { %7245 = vmatmul.mubr.msk.bf16.vlgmr.msra.gmra.mrb[100].mxu1 %vm783_vm3, %v3547_v9  ;;  %7261 = vmatpush3.bf16.msra.mxu0 %v3076_v55  ;;  %v7700_v55 = vld [vmem:[#allocation11 + $0x20] sm:$0xff]  }
 0xedf   :  { %7255 = vmatpush3.bf16.msra.mxu1 %v3074_v1  ;;  %7262 = vmatprep.mubr.msk.bf16.mxu0 %vm8117_vm1, %v8116_v12 }
 0xee0   :  { %7272 = vmatprep.subr.bf16.mxu0 %v8116_v12  ;;  %7256 = vmatprep.mubr.msk.bf16.mxu1 %vm8117_vm1, %v8116_v12 }
 0xee1   :  { %7266 = vmatprep.subr.bf16.mxu1 %v8116_v12 }
 0xee8   :  { %3087 = vrot.lane.b32.xlu0 %v8911_v23, %s8120_s11 }
 0xf25   :  { %v3518_v63 = vpop.xlane.xlu1 %3517 }
 0xf26   :  { %7866 = vrcp.f32 %v3518_v63  ;;  %v3515_v22 = vpop.xlane.xlu0 %3514 }
 0xf27   :  { %7868 = vrcp.f32 %v3515_v22 }
 0xf2a   :  { %v3082_v36 = vpop.permute.xlu0 %3081 }
 0xf2e   :  { %v3524_v24 = vpop.xlane.xlu1 %3523 }
 0xf2f   :  { %7870 = vrcp.f32 %v3524_v24 }
 0xf30   :  { %v7867_v21 = vpop.eup %7866 }
 0xf31   :  { %v7869_v3 = vpop.eup %7868  ;;  %v3542_v17 = vmul.f32 %v7867_v21, %v7851_v45 }
 0xf32   :  { %v3541_v31 = vmul.f32 %v7869_v3, %v7853_v40 }
 0xf33   :  { %v3550_v28 = vpack.c.bf16 %v3542_v17, %v3542_v17 }
 0xf34   :  { %v3549_v11 = vpack.c.bf16 %v3541_v31, %v3541_v31 }
 0xf35   :  { %7263 = vmatmul.mubr.msk.bf16.vlgmr.msra.gmra.mrb[108].mxu0 %vm783_vm3, %v3550_v28 }
 0xf36   :  { %7273 = vmatpush3.bf16.msra.mxu0 %v3082_v36  ;;  %7257 = vmatmul.mubr.msk.bf16.vlgmr.msra.gmra.mrb[104].mxu1 %vm783_vm3, %v3549_v11  ;;  %v3530_v47 = vpop.xlane.xlu1 %3529 }
 0xf37   :  { %7267 = vmatpush3.bf16.msra.mxu1 %v3080_v60  ;;  %7274 = vmatprep.mubr.msk.bf16.mxu0 %vm8117_vm1, %v8116_v12  ;;  %7872 = vrcp.f32 %v3530_v47 }
 0xf38   :  { %7284 = vmatprep.subr.bf16.mxu0 %v8116_v12  ;;  %7268 = vmatprep.mubr.msk.bf16.mxu1 %vm8117_vm1, %v8116_v12 }
 0xf39   :  { %v7871_v23 = vpop.eup %7870  ;;  %7278 = vmatprep.subr.bf16.mxu1 %v8116_v12 }
 0xf3a   :  { %v3544_v15 = vmul.f32 %v7871_v23, %v8992_v26  ;;  %v3086_v44 = vpop.permute.xlu1 %3085 }
 0xf3c   :  { %v3552_v37 = vpack.c.bf16 %v3544_v15, %v3544_v15 }
 0xf3e   :  { %7275 = vmatmul.mubr.msk.bf16.vlgmr.msra.gmra.mrb[112].mxu0 %vm783_vm3, %v3552_v37 }
 0xf3f   :  { %7286 = vmatprep.mubr.msk.bf16.mxu0 %vm8117_vm1, %v8116_v12 }
 0xf41   :  { %v7873_v32 = vpop.eup %7872 }
 0xf42   :  { %v3546_v35 = vmul.f32 %v7873_v32, %v8996_v57 }
 0xf44   :  { %v3554_v30 = vpack.c.bf16 %v3546_v35, %v3546_v35  ;;  %v7702_v35 = vld [vmem:[#allocation7 + $0x30] sm:$0xff]  }
 0xf5b   :  { %v3521_v42 = vpop.xlane.xlu0 %3520 }
 0xf5c   :  { %7874 = vrcp.f32 %v3521_v42 }
 0xf5f   :  { %v3527_v7 = vpop.xlane.xlu0 %3526 }
 0xf60   :  { %7876 = vrcp.f32 %v3527_v7 }
 0xf63   :  { %v3088_v41 = vpop.permute.xlu0 %3087 }
 0xf64   :  { %7285 = vmatpush3.bf16.msra.mxu0 %v3088_v41  ;;  %v7703_v41 = vld [vmem:[#allocation8 + $0x30] sm:$0xff]  }
 0xf65   :  { %7298 = vmatprep.subr.bf16.mxu0 %v8116_v12 }
 0xf66   :  { %v7875_v34 = vpop.eup %7874 }
 0xf67   :  { %v3543_v53 = vmul.f32 %v7875_v34, %v9006_v6  ;;  %7287 = vmatmul.mubr.msk.bf16.vlgmr.msra.gmra.mrb[116].mxu0 %vm783_vm3, %v3554_v30  ;;  %v7704_v30 = vld [vmem:[#allocation7 + $0x38] sm:$0xff]   ;;  %v7705_v34 = vld [vmem:[#allocation8 + $0x38] sm:$0xff]  }
 0xf68   :  { %7302 = vmatprep.mubr.msk.bf16.mxu0 %vm8117_vm1, %v8116_v12  ;;  %7299 = vmatpush3.bf16.msra.mxu0 %v7702_v35 }
 0xf69   :  { %v3551_v39 = vpack.c.bf16 %v3543_v53, %v3543_v53  ;;  %7300 = vmatprep.subr.bf16.mxu0 %v8116_v12  ;;  %v6546_v53 = vld [vmem:[%s9441_s9 + $0x2] ss:$0 sm:$0xff] }
 0xf6a   :  { %v7877_v61 = vpop.eup %7876 }
 0xf6b   :  { %7269 = vmatmul.mubr.msk.bf16.vlgmr.msra.gmra.mrb[108].mxu1 %vm783_vm3, %v3551_v39  ;;  %v3545_v50 = vmul.f32 %v7877_v61, %v9010_v25  ;;  %v7701_v25 = vld [vmem:[#allocation11 + $0x28] sm:$0xff]  }
 0xf6c   :  { %7279 = vmatpush3.bf16.msra.mxu1 %v3086_v44  ;;  %7280 = vmatprep.mubr.msk.bf16.mxu1 %vm8117_vm1, %v8116_v12 }
 0xf6d   :  { %7290 = vmatprep.subr.bf16.mxu1 %v8116_v12  ;;  %v3553_v52 = vpack.c.bf16 %v3545_v50, %v3545_v50  ;;  %7301 = vmatpush3.bf16.msra.mxu0 %v7704_v30 }
 0xf6e   :  { %7314 = vmatprep.subr.bf16.mxu0 %v8116_v12 }
 0xf73   :  { %7281 = vmatmul.mubr.msk.bf16.vlgmr.msra.gmra.mrb[112].mxu1 %vm783_vm3, %v3553_v52 }
 0xf74   :  { %7294 = vmatprep.mubr.msk.bf16.mxu1 %vm8117_vm1, %v8116_v12  ;;  %7291 = vmatpush3.bf16.msra.mxu1 %v7700_v55 }
 0xf75   :  { %7292 = vmatprep.subr.bf16.mxu1 %v8116_v12 }
 0xf78   :  { %7293 = vmatpush3.bf16.msra.mxu1 %v7701_v25 }
 0xf79   :  { %7306 = vmatprep.subr.bf16.mxu1 %v8116_v12 }
 0xfb0   :  { %v3635_v13 = vpop.f32.mrb[104].mxu0 }
 0xfb1   :  { %v3592_v51 = vpop.f32.mrb[100].mxu1  ;;  %v7252_v29 = vpop.f32.mrb[105].mxu0 }
 0xfb2   :  { %v7246_v48 = vpop.f32.mrb[101].mxu1  ;;  %v3638_v45 = vpop.f32.mrb[106].mxu0 }
 0xfb3   :  { %v3595_v40 = vpop.f32.mrb[102].mxu1  ;;  %v7253_v20 = vpop.f32.mrb[107].mxu0  ;;  %v7707_v48 = vld [vmem:[#allocation10 + $0x38] sm:$0xff]  }
 0xfb4   :  { %v7247_v0 = vpop.f32.mrb[103].mxu1  ;;  %v6558_v45 = vld [vmem:[%s9437_s5 + $0x3] ss:$0 sm:$0xff] }
 0xfb5   :  { %v6554_v40 = vld [vmem:[%s9435_s3 + $0x3] ss:$0 sm:$0xff] }
0x1008   :  { %v3721_v5 = vpop.f32.mrb[108].mxu0 }
0x1009   :  { %v3678_v2 = vpop.f32.mrb[104].mxu1  ;;  %v7264_v58 = vpop.f32.mrb[109].mxu0 }
0x100a   :  { %v7632_v26 = vpack.i.bf16 %v3721_v5, %v3678_v2  ;;  %v7258_v38 = vpop.f32.mrb[105].mxu1  ;;  %v3724_v57 = vpop.f32.mrb[110].mxu0 }
0x100b   :  { %v3681_v59 = vpop.f32.mrb[106].mxu1  ;;  %v7265_v43 = vpop.f32.mrb[111].mxu0 }
0x100c   :  { %7633 = vrot.lane.b32.xlu1 %v7632_v26, %s8112_s26  ;;  %v7259_v4 = vpop.f32.mrb[107].mxu1 }
0x1011   :  { %v3807_v8 = vpop.f32.mrb[112].mxu0 }
0x1012   :  { %v7276_v56 = vpop.f32.mrb[113].mxu0 }
0x1013   :  { %v3810_v54 = vpop.f32.mrb[114].mxu0 }
0x1014   :  { %v7277_v14 = vpop.f32.mrb[115].mxu0 }
0x103a   :  { %v3893_v1 = vpop.f32.mrb[116].mxu0 }
0x103b   :  { %v7288_v6 = vpop.f32.mrb[117].mxu0 }
0x103c   :  { %v3896_v18 = vpop.f32.mrb[118].mxu0 }
0x103d   :  { %v7289_v19 = vpop.f32.mrb[119].mxu0  ;;  %v6562_v18 = vld [vmem:[%s9439_s7 + $0x3] ss:$0 sm:$0xff] }
0x103e   :  { %v3764_v49 = vpop.f32.mrb[108].mxu1 }
0x103f   :  { %v7637_v33 = vpack.i.bf16 %v3807_v8, %v3764_v49  ;;  %v7270_v16 = vpop.f32.mrb[109].mxu1 }
0x1040   :  { %v3767_v27 = vpop.f32.mrb[110].mxu1 }
0x1041   :  { %7638 = vrot.lane.b32.xlu0 %v7637_v33, %s8121_s1  ;;  %v7271_v10 = vpop.f32.mrb[111].mxu1 }
0x1046   :  { %v3850_v62 = vpop.f32.mrb[112].mxu1 }
0x1047   :  { %v7642_v46 = vpack.i.bf16 %v3893_v1, %v3850_v62  ;;  %v7282_v9 = vpop.f32.mrb[113].mxu1 }
0x1048   :  { %v3853_v60 = vpop.f32.mrb[114].mxu1 }
0x1049   :  { %7643 = vrot.lane.b32.xlu1 %v7642_v46, %s8122_s2  ;;  %v7283_v63 = vpop.f32.mrb[115].mxu1 }
0x107e   :  { %v7634_v22 = vpop.permute.xlu1 %7633 }
0x107f   :  { %v7636_v21 = vunpack.i.h.bf16 %v7634_v22  ;;  %v7635_v3 = vunpack.i.l.bf16 %v7634_v22 }
0x1081   :  { %v3924_v11 = vsel %vm406_vm2, %v3635_v13, %v7636_v21  ;;  %v3923_v36 = vsel %vm406_vm2, %v3592_v51, %v7635_v3  ;;  %v7706_v51 = vld [vmem:[#allocation10 + $0x30] sm:$0xff]  }
0x10b3   :  { %v7639_v24 = vpop.permute.xlu0 %7638 }
0x10b4   :  { %v7641_v17 = vunpack.i.h.bf16 %v7639_v24  ;;  %v7640_v31 = vunpack.i.l.bf16 %v7639_v24 }
0x10b6   :  { %v3926_v37 = vsel %vm783_vm3, %v3924_v11, %v7641_v17  ;;  %v3925_v47 = vsel %vm783_vm3, %v3923_v36, %v7640_v31 }
0x10bb   :  { %v7644_v28 = vpop.permute.xlu1 %7643 }
0x10bc   :  { %v7646_v23 = vunpack.i.h.bf16 %v7644_v28  ;;  %v7645_v15 = vunpack.i.l.bf16 %v7644_v28 }
0x10be   :  { %v3928_v42 = vsel %vm1376_vm4, %v3926_v37, %v7646_v23  ;;  %v3927_v32 = vsel %vm1376_vm4, %v3925_v47, %v7645_v15 }
0x10bf   :  { %v3929_v7 = vpack.c.bf16 %v3928_v42, %v3927_v32 }
0x10c1   :  { %7295 = vmatmul.mubr.msk.bf16.vlgmr.msra.gmra.mrb[116].mxu1 %vm162_vm0, %v3929_v7 }
0x10c2   :  { %7310 = vmatprep.mubr.msk.bf16.mxu1 %vm8117_vm1, %v8116_v12  ;;  %7307 = vmatpush3.bf16.msra.mxu1 %v7703_v41 }
0x10c3   :  { %7308 = vmatprep.subr.bf16.mxu1 %v8116_v12 }
0x10c6   :  { %7309 = vmatpush3.bf16.msra.mxu1 %v7705_v34 }
0x10c7   :  { %7322 = vmatprep.subr.bf16.mxu1 %v8116_v12 }
0x1194   :  { %v3985_v39 = vpop.f32.mrb[116].mxu1 }
0x1195   :  { %v7296_v61 = vpop.f32.mrb[117].mxu1  ;;  %v3986_v50 = vadd.f32 %v6546_v53, %v3985_v39 }
0x1196   :  { %v3988_v44 = vpop.f32.mrb[118].mxu1 }
0x1197   :  { %v3989_v52 = vadd.f32 %v6546_v53, %v3988_v44  ;;  %v7297_v13 = vpop.f32.mrb[119].mxu1 }
0x1199   :  { %v4020_v29 = vpack.c.bf16 %v3989_v52, %v3986_v50 }
0x119b   :  { %7303 = vmatmul.mubr.msk.bf16.vlgmr.msra.gmra.mrb[120].mxu0 %vm162_vm0, %v4020_v29  ;;  %7311 = vmatmul.mubr.msk.bf16.vlgmr.msra.gmra.mrb[120].mxu1 %vm162_vm0, %v4020_v29 }
0x119c   :  { %7315 = vmatpush3.bf16.msra.mxu0 %v7706_v51  ;;  %7318 = vmatprep.mubr.msk.bf16.mxu0 %vm8117_vm1, %v8116_v12 }
0x119d   :  { %7316 = vmatprep.subr.bf16.mxu0 %v8116_v12  ;;  %7324 = vmatprep.mubr.msk.bf16.mxu1 %vm8117_vm1, %v8116_v12 }
0x11a0   :  { %7317 = vmatpush3.bf16.msra.mxu0 %v7707_v48 }
0x11a1   :  { %7328 = vmatprep.subr.bf16.mxu0 %v8116_v12 }
0x11a3   :  { %7319 = vmatmul.mubr.msk.bf16.vlgmr.msra.gmra.mrb[124].mxu0 %vm162_vm0, %v4020_v29 }
0x11a4   :  { %7330 = vmatprep.mubr.msk.bf16.mxu0 %vm8117_vm1, %v8116_v12 }
0x126e   :  { %v4076_v20 = vpop.f32.mrb[120].mxu0  ;;  %v4135_v0 = vpop.f32.mrb[120].mxu1 }
0x126f   :  { %v4136_v5 = vadd.f32 %v6558_v45, %v4135_v0  ;;  %v7304_v2 = vpop.f32.mrb[121].mxu0  ;;  %v7312_v58 = vpop.f32.mrb[121].mxu1  ;;  %v4077_v57 = vadd.f32 %v6554_v40, %v4076_v20 }
0x1270   :  { %v4079_v26 = vpop.f32.mrb[122].mxu0  ;;  %v4138_v38 = vpop.f32.mrb[122].mxu1 }
0x1271   :  { %v6674_v59 = vpack.c.bf16 %v4136_v5, %v4136_v5  ;;  %v4080_v43 = vadd.f32 %v6554_v40, %v4079_v26  ;;  %v4139_v4 = vadd.f32 %v6558_v45, %v4138_v38  ;;  %v7305_v8 = vpop.f32.mrb[123].mxu0  ;;  %v7313_v56 = vpop.f32.mrb[123].mxu1  ;;  %v6672_v10 = vpack.c.bf16 %v4077_v57, %v4077_v57 }
0x1273   :  { %v4201_v54 = vpack.c.bf16 %v4080_v43, %v4077_v57  ;;  %v4225_v14 = vpack.c.bf16 %v4139_v4, %v4136_v5  ;;  %v6675_v55 = vpack.c.bf16 %v4139_v4, %v4139_v4  ;;  %v4277_v1 = vsel %vm406_vm2, %v6674_v59, 0 }
0x1274   :  { %7323 = vmatpush3.bf16.xpose.msra.mxu1 %v4277_v1  ;;  %v6673_v62 = vpack.c.bf16 %v4080_v43, %v4080_v43 }
0x1275   :  { %4203 = vrot.lane.b32.xlu1 %v4201_v54, %s8118_s29  ;;  %v4323_v6 = vsel %vm406_vm2, %v6675_v55, 0  ;;  %4227 = vrot.lane.b32.xlu0 %v4225_v14, %s8118_s29 }
0x1276   :  { %v4194_v19 = vpop.f32.mrb[124].mxu0  ;;  %7329 = vmatpush3.bf16.xpose.msra.mxu0 %v4323_v6  ;;  %7334 = vmatprep.subr.bf16.mxu1 %v8116_v12 }
0x1277   :  { %v7320_v49 = vpop.f32.mrb[125].mxu0  ;;  %7340 = vmatprep.subr.bf16.mxu0 %v8116_v12  ;;  %v9097_v33 = vadd.f32 %v6562_v18, %v4194_v19 }
0x1278   :  { %v4197_v25 = vpop.f32.mrb[126].mxu0 }
0x1279   :  { %v9099_v16 = vadd.f32 %v6562_v18, %v4197_v25  ;;  %4205 = vrot.lane.b32.xlu1 %v4201_v54, %s8119_s30  ;;  %v7321_v27 = vpop.f32.mrb[127].mxu0  ;;  %4229 = vrot.lane.b32.xlu0 %v4225_v14, %s8119_s30  ;;  %v6676_v34 = vpack.c.bf16 %v9097_v33, %v9097_v33 }
0x127b   :  { %v9105_v46 = vpack.c.bf16 %v9099_v16, %v9097_v33  ;;  %7325 = vmatmul.mubr.msk.bf16.vlgmr.msra.gmra.mrb[124].mxu1 %vm406_vm2, %v6672_v10  ;;  %v6677_v53 = vpack.c.bf16 %v9099_v16, %v9099_v16  ;;  %v4742_v44 = vsel %vm4740_vm5, %v6676_v34, 0 }
0x127c   :  { %7336 = vmatprep.mubr.msk.bf16.mxu1 %vm8117_vm1, %v8116_v12 }
0x127d   :  { %4207 = vrot.lane.b32.xlu1 %v4201_v54, %s8120_s11  ;;  %7331 = vmatmul.mubr.msk.bf16.vlgmr.msra.gmra.mrb[128].mxu0 %vm406_vm2, %v6673_v62  ;;  %v4788_v50 = vsel %vm4740_vm5, %v6677_v53, 0 }
0x127e   :  { %4231 = vrot.lane.b32.xlu0 %v4225_v14, %s8120_s11  ;;  %7342 = vmatprep.mubr.msk.bf16.mxu0 %vm8117_vm1, %v8116_v12 }
0x12e7   :  { %v4228_v9 = vpop.permute.xlu0 %4227  ;;  %v4204_v3 = vpop.permute.xlu1 %4203 }
0x12e8   :  { %v6576_v60 = vcombine.low %v4228_v9, %v4228_v9  ;;  %v6577_v63 = vcombine.high %v4228_v9, %v4228_v9  ;;  %v6568_v28 = vcombine.low %v4204_v3, %v4204_v3  ;;  %v6569_v11 = vcombine.high %v4204_v3, %v4204_v3 }
0x12ea   :  { %v4369_v22 = vsel %vm406_vm2, %v6576_v60, 0  ;;  %v4415_v24 = vsel %vm406_vm2, %v6577_v63, 0 }
0x12eb   :  { %7335 = vmatpush3.bf16.xpose.msra.mxu1 %v4369_v22  ;;  %7341 = vmatpush3.bf16.xpose.msra.mxu0 %v4415_v24  ;;  %v4230_v21 = vpop.permute.xlu0 %4229  ;;  %v4206_v37 = vpop.permute.xlu1 %4205 }
0x12ec   :  { %7346 = vmatprep.subr.bf16.mxu1 %v8116_v12  ;;  %7352 = vmatprep.subr.bf16.mxu0 %v8116_v12  ;;  %v6578_v17 = vcombine.low %v4230_v21, %v4230_v21  ;;  %v6579_v31 = vcombine.high %v4230_v21, %v4230_v21  ;;  %v6570_v32 = vcombine.low %v4206_v37, %v4206_v37 }
0x12ed   :  { %v6571_v7 = vcombine.high %v4206_v37, %v4206_v37 }
0x12ee   :  { %v4461_v36 = vsel %vm406_vm2, %v6578_v17, 0  ;;  %v4507_v23 = vsel %vm406_vm2, %v6579_v31, 0 }
0x12ef   :  { %v4208_v30 = vpop.permute.xlu1 %4207 }
0x12f0   :  { %v4232_v15 = vpop.permute.xlu0 %4231  ;;  %v6572_v39 = vcombine.low %v4208_v30, %v4208_v30  ;;  %v6573_v61 = vcombine.high %v4208_v30, %v4208_v30 }
0x12f1   :  { %v6580_v47 = vcombine.low %v4232_v15, %v4232_v15  ;;  %v6581_v42 = vcombine.high %v4232_v15, %v4232_v15 }
0x12f2   :  { %7337 = vmatmul.mubr.msk.bf16.vlgmr.msra.gmra.mrb[128].mxu1 %vm406_vm2, %v6568_v28  ;;  %7343 = vmatmul.mubr.msk.bf16.vlgmr.msra.gmra.mrb[132].mxu0 %vm406_vm2, %v6569_v11 }
0x12f3   :  { %7347 = vmatpush3.bf16.xpose.msra.mxu1 %v4461_v36  ;;  %7353 = vmatpush3.bf16.xpose.msra.mxu0 %v4507_v23  ;;  %v4553_v35 = vsel %vm406_vm2, %v6580_v47, 0  ;;  %v4599_v41 = vsel %vm406_vm2, %v6581_v42, 0 }
0x12f4   :  { %7348 = vmatprep.mubr.msk.bf16.mxu1 %vm8117_vm1, %v8116_v12  ;;  %7354 = vmatprep.mubr.msk.bf16.mxu0 %vm8117_vm1, %v8116_v12 }
0x12f5   :  { %7358 = vmatprep.subr.bf16.mxu1 %v8116_v12  ;;  %7364 = vmatprep.subr.bf16.mxu0 %v8116_v12 }
0x12fa   :  { %7349 = vmatmul.mubr.msk.bf16.vlgmr.msra.gmra.mrb[132].mxu1 %vm406_vm2, %v6570_v32  ;;  %7355 = vmatmul.mubr.msk.bf16.vlgmr.msra.gmra.mrb[136].mxu0 %vm406_vm2, %v6571_v7 }
0x12fb   :  { %7359 = vmatpush3.bf16.xpose.msra.mxu1 %v4553_v35  ;;  %7365 = vmatpush3.bf16.xpose.msra.mxu0 %v4599_v41 }
0x12fc   :  { %7360 = vmatprep.mubr.msk.bf16.mxu1 %vm8117_vm1, %v8116_v12  ;;  %7366 = vmatprep.mubr.msk.bf16.mxu0 %vm8117_vm1, %v8116_v12 }
0x12fd   :  { %7370 = vmatprep.subr.bf16.mxu1 %v8116_v12  ;;  %7376 = vmatprep.subr.bf16.mxu0 %v8116_v12 }
0x1302   :  { %7361 = vmatmul.mubr.msk.bf16.vlgmr.msra.gmra.mrb[136].mxu1 %vm406_vm2, %v6572_v39  ;;  %7367 = vmatmul.mubr.msk.bf16.vlgmr.msra.gmra.mrb[140].mxu0 %vm406_vm2, %v6573_v61 }
0x1303   :  { %7371 = vmatpush3.bf16.msra.mxu1 %v4742_v44  ;;  %7377 = vmatpush3.bf16.msra.mxu0 %v4788_v50 }
0x1304   :  { %7378 = vmatprep.mubr.msk.bf16.mxu0 %vm8117_vm1, %v8116_v12  ;;  %7388 = vmatprep.subr.bf16.mxu0 %v8116_v12 }
0x1305   :  { %7372 = vmatprep.mubr.msk.bf16.mxu1 %vm8117_vm1, %v8116_v12  ;;  %7382 = vmatprep.subr.bf16.mxu1 %v8116_v12 }
0x134e   :  { %v4313_v52 = vpop.f32.mrb[124].mxu1 }
0x134f   :  { %v7326_v13 = vpop.f32.mrb[125].mxu1  ;;  %v4641_v29 = vsel %vm406_vm2, %v4313_v52, -inf }
0x1350   :  { %v4359_v51 = vpop.f32.mrb[128].mxu0  ;;  %4642 = vmax.xlane.f32.xlu0 %v4641_v29  ;;  %v4316_v48 = vpop.f32.mrb[126].mxu1 }
0x1351   :  { %v7332_v45 = vpop.f32.mrb[129].mxu0  ;;  %v4644_v40 = vsel %vm406_vm2, %v4359_v51, -inf  ;;  %v7327_v20 = vpop.f32.mrb[127].mxu1 }
0x1352   :  { %4645 = vmax.xlane.f32.xlu1 %v4644_v40  ;;  %v4362_v0 = vpop.f32.mrb[130].mxu0 }
0x1353   :  { %v7333_v5 = vpop.f32.mrb[131].mxu0 }
0x13c5   :  { %v4405_v2 = vpop.f32.mrb[128].mxu1  ;;  %v4451_v58 = vpop.f32.mrb[132].mxu0 }
0x13c6   :  { %v7338_v26 = vpop.f32.mrb[129].mxu1  ;;  %v7344_v38 = vpop.f32.mrb[133].mxu0  ;;  %v4647_v57 = vsel %vm406_vm2, %v4405_v2, -inf  ;;  %v4650_v56 = vsel %vm406_vm2, %v4451_v58, -inf }
0x13c7   :  { %v4454_v59 = vpop.f32.mrb[134].mxu0  ;;  %4648 = vmax.xlane.f32.xlu0 %v4647_v57  ;;  %v4408_v43 = vpop.f32.mrb[130].mxu1 }
0x13c8   :  { %v7339_v4 = vpop.f32.mrb[131].mxu1  ;;  %v7345_v8 = vpop.f32.mrb[135].mxu0 }
0x13cb   :  { %4651 = vmax.xlane.f32.xlu0 %v4650_v56 }
0x13cd   :  { %v4497_v54 = vpop.f32.mrb[132].mxu1  ;;  %v4543_v14 = vpop.f32.mrb[136].mxu0 }
0x13ce   :  { %v7350_v55 = vpop.f32.mrb[133].mxu1  ;;  %v7356_v1 = vpop.f32.mrb[137].mxu0  ;;  %v4656_v6 = vsel %vm406_vm2, %v4543_v14, -inf  ;;  %v4653_v18 = vsel %vm406_vm2, %v4497_v54, -inf }
0x13cf   :  { %v4546_v19 = vpop.f32.mrb[138].mxu0  ;;  %4657 = vmax.xlane.f32.xlu0 %v4656_v6  ;;  %4654 = vmax.xlane.f32.xlu1 %v4653_v18  ;;  %v4500_v49 = vpop.f32.mrb[134].mxu1 }
0x13d0   :  { %v7351_v25 = vpop.f32.mrb[135].mxu1  ;;  %v7357_v33 = vpop.f32.mrb[139].mxu0 }
0x13d5   :  { %v4589_v16 = vpop.f32.mrb[136].mxu1  ;;  %v4635_v27 = vpop.f32.mrb[140].mxu0 }
0x13d6   :  { %v7362_v10 = vpop.f32.mrb[137].mxu1  ;;  %v7368_v62 = vpop.f32.mrb[141].mxu0  ;;  %v4662_v9 = vsel %vm406_vm2, %v4635_v27, -inf  ;;  %v4659_v60 = vsel %vm406_vm2, %v4589_v16, -inf }
0x13d7   :  { %v4638_v63 = vpop.f32.mrb[142].mxu0  ;;  %4663 = vmax.xlane.f32.xlu0 %v4662_v9  ;;  %4660 = vmax.xlane.f32.xlu1 %v4659_v60  ;;  %v4592_v22 = vpop.f32.mrb[138].mxu1 }
0x13d8   :  { %v7363_v24 = vpop.f32.mrb[139].mxu1  ;;  %v7369_v21 = vpop.f32.mrb[143].mxu0 }
0x13dd   :  { %v4643_v36 = vpop.xlane.xlu0 %4642 }
0x13de   :  { %v4665_v23 = vsub.f32 %v4313_v52, %v4643_v36 }
0x13df   :  { %v4646_v3 = vpop.xlane.xlu1 %4645 }
0x13e0   :  { %v4666_v17 = vsub.f32 %v4359_v51, %v4646_v3  ;;  %v4673_v15 = vmul.f32 1.442695, %v4665_v23 }
0x13e2   :  { %v4675_v31 = vmul.f32 1.442695, %v4666_v17 }
0x13e4   :  { %7878 = vpow2.f32 %v4675_v31 }
0x13e5   :  { %7880 = vpow2.f32 %v4673_v15 }
0x13e8   :  { %4251 = vrot.lane.b32.xlu1 %v9105_v46, %s8118_s29 }
0x13ee   :  { %v7879_v28 = vpop.eup %7878 }
0x13ef   :  { %v4692_v11 = vsel %vm406_vm2, %v7879_v28, 0.0  ;;  %v9164_v37 = vpop.eup %7880 }
0x13f0   :  { %4693 = vadd.xlane.f32.xlu0 %v4692_v11  ;;  %v4689_v47 = vsel %vm406_vm2, %v9164_v37, 0.0 }
0x140c   :  { %4690 = vadd.xlane.f32.xlu1 %v4689_v47 }
0x1454   :  { %v4649_v42 = vpop.xlane.xlu0 %4648 }
0x1455   :  { %v4667_v32 = vsub.f32 %v4405_v2, %v4649_v42 }
0x1457   :  { %v4677_v7 = vmul.f32 1.442695, %v4667_v32 }
0x1458   :  { %v4652_v35 = vpop.xlane.xlu0 %4651 }
0x1459   :  { %7882 = vpow2.f32 %v4677_v7  ;;  %v4668_v41 = vsub.f32 %v4451_v58, %v4652_v35 }
0x145b   :  { %v4679_v30 = vmul.f32 1.442695, %v4668_v41 }
0x145c   :  { %v4658_v34 = vpop.xlane.xlu0 %4657  ;;  %v4655_v53 = vpop.xlane.xlu1 %4654 }
0x145d   :  { %7884 = vpow2.f32 %v4679_v30  ;;  %v4670_v39 = vsub.f32 %v4543_v14, %v4658_v34  ;;  %v4669_v61 = vsub.f32 %v4497_v54, %v4655_v53 }
0x145f   :  { %v4683_v44 = vmul.f32 1.442695, %v4670_v39  ;;  %v4681_v50 = vmul.f32 1.442695, %v4669_v61 }
0x1461   :  { %7886 = vpow2.f32 %v4683_v44 }
0x1462   :  { %7888 = vpow2.f32 %v4681_v50 }
0x1463   :  { %v7883_v52 = vpop.eup %7882 }
0x1464   :  { %v4664_v13 = vpop.xlane.xlu0 %4663  ;;  %v4661_v51 = vpop.xlane.xlu1 %4660  ;;  %v4695_v29 = vsel %vm406_vm2, %v7883_v52, 0.0 }
0x1465   :  { %v4672_v48 = vsub.f32 %v4635_v27, %v4664_v13  ;;  %v4671_v45 = vsub.f32 %v4589_v16, %v4661_v51  ;;  %4696 = vadd.xlane.f32.xlu1 %v4695_v29 }
0x1467   :  { %v7885_v40 = vpop.eup %7884  ;;  %v4687_v20 = vmul.f32 1.442695, %v4672_v48  ;;  %v4685_v0 = vmul.f32 1.442695, %v4671_v45 }
0x1468   :  { %v4698_v5 = vsel %vm406_vm2, %v7885_v40, 0.0  ;;  %v4252_v56 = vpop.permute.xlu1 %4251 }
0x1469   :  { %7890 = vpow2.f32 %v4687_v20  ;;  %4699 = vadd.xlane.f32.xlu0 %v4698_v5  ;;  %v6585_v14 = vcombine.high %v4252_v56, %v4252_v56  ;;  %v6584_v49 = vcombine.low %v4252_v56, %v4252_v56 }
0x146a   :  { %7892 = vpow2.f32 %v4685_v0 }
0x146b   :  { %v9170_v2 = vpop.eup %7886  ;;  %v4880_v6 = vsel %vm4740_vm5, %v6585_v14, 0  ;;  %v7709_v14 = vld [vmem:[#allocation11 + $0x38] sm:$0xff]  }
0x146c   :  { %v7889_v58 = vpop.eup %7888  ;;  %v4704_v26 = vsel %vm406_vm2, %v9170_v2, 0.0 }
0x146d   :  { %4705 = vadd.xlane.f32.xlu0 %v4704_v26  ;;  %v4701_v38 = vsel %vm406_vm2, %v7889_v58, 0.0 }
0x146e   :  { %4702 = vadd.xlane.f32.xlu1 %v4701_v38 }
0x1473   :  { %v9175_v57 = vpop.eup %7890 }
0x1474   :  { %v9177_v59 = vpop.eup %7892  ;;  %v4710_v43 = vsel %vm406_vm2, %v9175_v57, 0.0 }
0x1475   :  { %4711 = vadd.xlane.f32.xlu0 %v4710_v43  ;;  %v4707_v4 = vsel %vm406_vm2, %v9177_v59, 0.0 }
0x1476   :  { %4708 = vadd.xlane.f32.xlu1 %v4707_v4 }
0x147d   :  { %v4694_v8 = vpop.xlane.xlu0 %4693 }
0x147e   :  { %7894 = vrcp.f32 %v4694_v8 }
0x1487   :  { %4255 = vrot.lane.b32.xlu1 %v9105_v46, %s8120_s11 }
0x1488   :  { %v7895_v54 = vpop.eup %7894 }
0x1489   :  { %v4722_v55 = vmul.f32 %v7895_v54, %v7879_v28 }
0x148b   :  { %v4730_v1 = vpack.c.bf16 %v4722_v55, %v4722_v55  ;;  %4253 = vrot.lane.b32.xlu0 %v9105_v46, %s8119_s30  ;;  %v4834_v46 = vsel %vm4740_vm5, %v6584_v49, 0 }
0x148d   :  { %7379 = vmatmul.mubr.msk.bf16.vlgmr.msra.gmra.mrb[144].mxu0 %vm406_vm2, %v4730_v1 }
0x148e   :  { %7389 = vmatpush3.bf16.msra.mxu0 %v4880_v6  ;;  %7390 = vmatprep.mubr.msk.bf16.mxu0 %vm8117_vm1, %v8116_v12 }
0x148f   :  { %7400 = vmatprep.subr.bf16.mxu0 %v8116_v12 }
0x1499   :  { %v4691_v18 = vpop.xlane.xlu1 %4690 }
0x149a   :  { %7896 = vrcp.f32 %v4691_v18 }
0x14a4   :  { %v7897_v19 = vpop.eup %7896 }
0x14a5   :  { %v4721_v25 = vmul.f32 %v7897_v19, %v9164_v37 }
0x14a7   :  { %v4729_v33 = vpack.c.bf16 %v4721_v25, %v4721_v25 }
0x14a9   :  { %7373 = vmatmul.mubr.msk.bf16.vlgmr.msra.gmra.mrb[140].mxu1 %vm406_vm2, %v4729_v33 }
0x14aa   :  { %7383 = vmatpush3.bf16.msra.mxu1 %v4834_v46  ;;  %7384 = vmatprep.mubr.msk.bf16.mxu1 %vm8117_vm1, %v8116_v12 }
0x14ab   :  { %7394 = vmatprep.subr.bf16.mxu1 %v8116_v12 }
0x14f2   :  { %v4697_v16 = vpop.xlane.xlu1 %4696 }
0x14f3   :  { %7898 = vrcp.f32 %v4697_v16 }
0x14f6   :  { %v4700_v27 = vpop.xlane.xlu0 %4699 }
0x14f7   :  { %7900 = vrcp.f32 %v4700_v27 }
0x14fa   :  { %v4706_v10 = vpop.xlane.xlu0 %4705 }
0x14fb   :  { %7902 = vrcp.f32 %v4706_v10  ;;  %v4703_v62 = vpop.xlane.xlu1 %4702 }
0x14fc   :  { %7904 = vrcp.f32 %v4703_v62 }
0x14fd   :  { %v7899_v9 = vpop.eup %7898 }
0x14fe   :  { %v4723_v60 = vmul.f32 %v7899_v9, %v7883_v52 }
0x1500   :  { %v4731_v63 = vpack.c.bf16 %v4723_v60, %v4723_v60 }
0x1501   :  { %v7901_v22 = vpop.eup %7900 }
0x1502   :  { %v4724_v24 = vmul.f32 %v7901_v22, %v7885_v40  ;;  %v4712_v21 = vpop.xlane.xlu0 %4711  ;;  %7385 = vmatmul.mubr.msk.bf16.vlgmr.msra.gmra.mrb[144].mxu1 %vm406_vm2, %v4731_v63 }
0x1503   :  { %7906 = vrcp.f32 %v4712_v21  ;;  %v4709_v3 = vpop.xlane.xlu1 %4708  ;;  %7396 = vmatprep.mubr.msk.bf16.mxu1 %vm8117_vm1, %v8116_v12 }
0x1504   :  { %7908 = vrcp.f32 %v4709_v3  ;;  %v4732_v17 = vpack.c.bf16 %v4724_v24, %v4724_v24 }
0x1505   :  { %v7903_v31 = vpop.eup %7902 }
0x1506   :  { %v7905_v28 = vpop.eup %7904  ;;  %v4254_v11 = vpop.permute.xlu0 %4253  ;;  %7391 = vmatmul.mubr.msk.bf16.vlgmr.msra.gmra.mrb[148].mxu0 %vm406_vm2, %v4732_v17  ;;  %v4726_v47 = vmul.f32 %v7903_v31, %v9170_v2 }
0x1507   :  { %v4725_v36 = vmul.f32 %v7905_v28, %v7889_v58  ;;  %v6586_v23 = vcombine.low %v4254_v11, %v4254_v11  ;;  %v6587_v15 = vcombine.high %v4254_v11, %v4254_v11  ;;  %v4256_v37 = vpop.permute.xlu1 %4255  ;;  %7402 = vmatprep.mubr.msk.bf16.mxu0 %vm8117_vm1, %v8116_v12 }
0x1508   :  { %v6588_v42 = vcombine.low %v4256_v37, %v4256_v37  ;;  %v6589_v35 = vcombine.high %v4256_v37, %v4256_v37  ;;  %v4734_v30 = vpack.c.bf16 %v4726_v47, %v4726_v47 }
0x1509   :  { %v4926_v32 = vsel %vm4740_vm5, %v6586_v23, 0  ;;  %v4972_v7 = vsel %vm4740_vm5, %v6587_v15, 0  ;;  %v4733_v41 = vpack.c.bf16 %v4725_v36, %v4725_v36 }
0x150a   :  { %7395 = vmatpush3.bf16.msra.mxu1 %v4926_v32  ;;  %7401 = vmatpush3.bf16.msra.mxu0 %v4972_v7  ;;  %v5018_v53 = vsel %vm4740_vm5, %v6588_v42, 0  ;;  %v5064_v61 = vsel %vm4740_vm5, %v6589_v35, 0 }
0x150b   :  { %7406 = vmatprep.subr.bf16.mxu1 %v8116_v12  ;;  %7412 = vmatprep.subr.bf16.mxu0 %v8116_v12 }
0x150d   :  { %v7907_v34 = vpop.eup %7906  ;;  %7397 = vmatmul.mubr.msk.bf16.vlgmr.msra.gmra.mrb[148].mxu1 %vm406_vm2, %v4733_v41  ;;  %v7710_v41 = vld [vmem:[#allocation7 + $0x40] sm:$0xff]  }
0x150e   :  { %v7909_v39 = vpop.eup %7908  ;;  %7403 = vmatmul.mubr.msk.bf16.vlgmr.msra.gmra.mrb[152].mxu0 %vm406_vm2, %v4734_v30  ;;  %7407 = vmatpush3.bf16.msra.mxu1 %v5018_v53  ;;  %v4728_v50 = vmul.f32 %v7907_v34, %v9175_v57  ;;  %v7711_v30 = vld [vmem:[#allocation8 + $0x40] sm:$0xff]   ;;  %v7712_v34 = vld [vmem:[#allocation7 + $0x48] sm:$0xff]   ;;  %v7713_v53 = vld [vmem:[#allocation8 + $0x48] sm:$0xff]  }
0x150f   :  { %v4727_v44 = vmul.f32 %v7909_v39, %v9177_v59  ;;  %7413 = vmatpush3.bf16.msra.mxu0 %v5064_v61  ;;  %7408 = vmatprep.mubr.msk.bf16.mxu1 %vm8117_vm1, %v8116_v12  ;;  %v7708_v59 = vld [vmem:[#allocation11 + $0x30] sm:$0xff]   ;;  %v6606_v39 = vld [vmem:[%s9441_s9 + $0x3] ss:$0 sm:$0xff] }
0x1510   :  { %7414 = vmatprep.mubr.msk.bf16.mxu0 %vm8117_vm1, %v8116_v12  ;;  %7418 = vmatprep.subr.bf16.mxu1 %v8116_v12  ;;  %v4736_v13 = vpack.c.bf16 %v4728_v50, %v4728_v50 }
0x1511   :  { %7426 = vmatprep.subr.bf16.mxu0 %v8116_v12  ;;  %v4735_v52 = vpack.c.bf16 %v4727_v44, %v4727_v44 }
0x1515   :  { %7409 = vmatmul.mubr.msk.bf16.vlgmr.msra.gmra.mrb[152].mxu1 %vm406_vm2, %v4735_v52 }
0x1516   :  { %7415 = vmatmul.mubr.msk.bf16.vlgmr.msra.gmra.mrb[156].mxu0 %vm406_vm2, %v4736_v13  ;;  %7422 = vmatprep.mubr.msk.bf16.mxu1 %vm8117_vm1, %v8116_v12 }
0x1517   :  { %7430 = vmatprep.mubr.msk.bf16.mxu0 %vm8117_vm1, %v8116_v12  ;;  %7419 = vmatpush3.bf16.msra.mxu1 %v7708_v59 }
0x1518   :  { %7420 = vmatprep.subr.bf16.mxu1 %v8116_v12  ;;  %7427 = vmatpush3.bf16.msra.mxu0 %v7710_v41 }
0x1519   :  { %7428 = vmatprep.subr.bf16.mxu0 %v8116_v12 }
0x151b   :  { %7421 = vmatpush3.bf16.msra.mxu1 %v7709_v14 }
0x151c   :  { %7434 = vmatprep.subr.bf16.mxu1 %v8116_v12  ;;  %7429 = vmatpush3.bf16.msra.mxu0 %v7712_v34 }
0x151d   :  { %7442 = vmatprep.subr.bf16.mxu0 %v8116_v12 }
0x1560   :  { %v4824_v51 = vpop.f32.mrb[144].mxu0 }
0x1561   :  { %v7380_v29 = vpop.f32.mrb[145].mxu0 }
0x1562   :  { %v4827_v48 = vpop.f32.mrb[146].mxu0  ;;  %v7714_v29 = vld [vmem:[#allocation10 + $0x40] sm:$0xff]  }
0x1563   :  { %v7381_v45 = vpop.f32.mrb[147].mxu0 }
0x1564   :  { %v7715_v45 = vld [vmem:[#allocation10 + $0x48] sm:$0xff]  }
0x157c   :  { %v4778_v40 = vpop.f32.mrb[140].mxu1 }
0x157d   :  { %v7374_v20 = vpop.f32.mrb[141].mxu1 }
0x157e   :  { %v4781_v0 = vpop.f32.mrb[142].mxu1  ;;  %v6614_v20 = vld [vmem:[%s9435_s3 + $0x4] ss:$0 sm:$0xff] }
0x157f   :  { %v7375_v5 = vpop.f32.mrb[143].mxu1 }
0x15d5   :  { %v4870_v2 = vpop.f32.mrb[144].mxu1 }
0x15d6   :  { %v7386_v58 = vpop.f32.mrb[145].mxu1 }
0x15d7   :  { %v4873_v26 = vpop.f32.mrb[146].mxu1 }
0x15d8   :  { %v7387_v38 = vpop.f32.mrb[147].mxu1 }
0x15d9   :  { %v4916_v57 = vpop.f32.mrb[148].mxu0 }
0x15da   :  { %v7647_v43 = vpack.i.bf16 %v4916_v57, %v4870_v2  ;;  %v7392_v4 = vpop.f32.mrb[149].mxu0 }
0x15db   :  { %v4919_v8 = vpop.f32.mrb[150].mxu0 }
0x15dc   :  { %v7393_v56 = vpop.f32.mrb[151].mxu0  ;;  %7648 = vrot.lane.b32.xlu1 %v7647_v43, %s8112_s26 }
0x15e0   :  { %v4962_v54 = vpop.f32.mrb[148].mxu1 }
0x15e1   :  { %v7398_v55 = vpop.f32.mrb[149].mxu1  ;;  %v5008_v1 = vpop.f32.mrb[152].mxu0 }
0x15e2   :  { %v7652_v6 = vpack.i.bf16 %v5008_v1, %v4962_v54  ;;  %v4965_v18 = vpop.f32.mrb[150].mxu1  ;;  %v7404_v19 = vpop.f32.mrb[153].mxu0 }
0x15e3   :  { %v7399_v49 = vpop.f32.mrb[151].mxu1  ;;  %v5011_v25 = vpop.f32.mrb[154].mxu0  ;;  %v6622_v19 = vld [vmem:[%s9439_s7 + $0x4] ss:$0 sm:$0xff] }
0x15e4   :  { %v7405_v33 = vpop.f32.mrb[155].mxu0  ;;  %7653 = vrot.lane.b32.xlu0 %v7652_v6, %s8121_s1 }
0x15e8   :  { %v5054_v46 = vpop.f32.mrb[152].mxu1 }
0x15e9   :  { %v7410_v16 = vpop.f32.mrb[153].mxu1  ;;  %v5100_v27 = vpop.f32.mrb[156].mxu0 }
0x15ea   :  { %v7657_v10 = vpack.i.bf16 %v5100_v27, %v5054_v46  ;;  %v5057_v62 = vpop.f32.mrb[154].mxu1  ;;  %v7416_v9 = vpop.f32.mrb[157].mxu0 }
0x15eb   :  { %v7411_v60 = vpop.f32.mrb[155].mxu1  ;;  %v5103_v63 = vpop.f32.mrb[158].mxu0 }
0x15ec   :  { %v7417_v22 = vpop.f32.mrb[159].mxu0  ;;  %7658 = vrot.lane.b32.xlu1 %v7657_v10, %s8122_s2 }
0x164e   :  { %v7649_v24 = vpop.permute.xlu1 %7648 }
0x164f   :  { %v7651_v3 = vunpack.i.h.bf16 %v7649_v24  ;;  %v7650_v17 = vunpack.i.l.bf16 %v7649_v24 }
0x1651   :  { %v5131_v36 = vsel %vm406_vm2, %v4824_v51, %v7651_v3  ;;  %v5130_v23 = vsel %vm406_vm2, %v4778_v40, %v7650_v17  ;;  %v6618_v40 = vld [vmem:[%s9437_s5 + $0x4] ss:$0 sm:$0xff] }
0x1656   :  { %v7654_v21 = vpop.permute.xlu0 %7653 }
0x1657   :  { %v7656_v31 = vunpack.i.h.bf16 %v7654_v21  ;;  %v7655_v28 = vunpack.i.l.bf16 %v7654_v21 }
0x1659   :  { %v5133_v47 = vsel %vm783_vm3, %v5131_v36, %v7656_v31  ;;  %v5132_v42 = vsel %vm783_vm3, %v5130_v23, %v7655_v28 }
0x165e   :  { %v7659_v11 = vpop.permute.xlu1 %7658 }
0x165f   :  { %v7661_v15 = vunpack.i.h.bf16 %v7659_v11  ;;  %v7660_v37 = vunpack.i.l.bf16 %v7659_v11 }
0x1661   :  { %v5135_v32 = vsel %vm1376_vm4, %v5133_v47, %v7661_v15  ;;  %v5134_v7 = vsel %vm1376_vm4, %v5132_v42, %v7660_v37 }
0x1662   :  { %v5136_v35 = vpack.c.bf16 %v5135_v32, %v5134_v7 }
0x1664   :  { %7423 = vmatmul.mubr.msk.bf16.vlgmr.msra.gmra.mrb[156].mxu1 %vm162_vm0, %v5136_v35 }
0x1665   :  { %7438 = vmatprep.mubr.msk.bf16.mxu1 %vm8117_vm1, %v8116_v12  ;;  %7435 = vmatpush3.bf16.msra.mxu1 %v7711_v30 }
0x1666   :  { %7436 = vmatprep.subr.bf16.mxu1 %v8116_v12 }
0x1669   :  { %7437 = vmatpush3.bf16.msra.mxu1 %v7713_v53 }
0x166a   :  { %7450 = vmatprep.subr.bf16.mxu1 %v8116_v12 }
0x1737   :  { %v5192_v61 = vpop.f32.mrb[156].mxu1 }
0x1738   :  { %v7424_v44 = vpop.f32.mrb[157].mxu1  ;;  %v5193_v52 = vadd.f32 %v6606_v39, %v5192_v61 }
0x1739   :  { %v5195_v50 = vpop.f32.mrb[158].mxu1 }
0x173a   :  { %v5196_v13 = vadd.f32 %v6606_v39, %v5195_v50  ;;  %v7425_v51 = vpop.f32.mrb[159].mxu1 }
0x173c   :  { %v5227_v48 = vpack.c.bf16 %v5196_v13, %v5193_v52 }
0x173e   :  { %7431 = vmatmul.mubr.msk.bf16.vlgmr.msra.gmra.mrb[160].mxu0 %vm162_vm0, %v5227_v48  ;;  %7439 = vmatmul.mubr.msk.bf16.vlgmr.msra.gmra.mrb[160].mxu1 %vm162_vm0, %v5227_v48 }
0x173f   :  { %7443 = vmatpush3.bf16.msra.mxu0 %v7714_v29  ;;  %7446 = vmatprep.mubr.msk.bf16.mxu0 %vm8117_vm1, %v8116_v12 }
0x1740   :  { %7444 = vmatprep.subr.bf16.mxu0 %v8116_v12  ;;  %7452 = vmatprep.mubr.msk.bf16.mxu1 %vm8117_vm1, %v8116_v12 }
0x1743   :  { %7445 = vmatpush3.bf16.msra.mxu0 %v7715_v45 }
0x1744   :  { %7456 = vmatprep.subr.bf16.mxu0 %v8116_v12 }
0x1746   :  { %7447 = vmatmul.mubr.msk.bf16.vlgmr.msra.gmra.mrb[164].mxu0 %vm162_vm0, %v5227_v48 }
0x1747   :  { %7458 = vmatprep.mubr.msk.bf16.mxu0 %vm8117_vm1, %v8116_v12 }
0x1811   :  { %v5283_v0 = vpop.f32.mrb[160].mxu0  ;;  %v5342_v5 = vpop.f32.mrb[160].mxu1 }
0x1812   :  { %v5343_v2 = vadd.f32 %v6618_v40, %v5342_v5  ;;  %v7432_v58 = vpop.f32.mrb[161].mxu0  ;;  %v7440_v26 = vpop.f32.mrb[161].mxu1  ;;  %v5284_v59 = vadd.f32 %v6614_v20, %v5283_v0 }
0x1813   :  { %v5286_v38 = vpop.f32.mrb[162].mxu0  ;;  %v5345_v57 = vpop.f32.mrb[162].mxu1 }
0x1814   :  { %v6680_v43 = vpack.c.bf16 %v5343_v2, %v5343_v2  ;;  %v5287_v4 = vadd.f32 %v6614_v20, %v5286_v38  ;;  %v5346_v8 = vadd.f32 %v6618_v40, %v5345_v57  ;;  %v7433_v56 = vpop.f32.mrb[163].mxu0  ;;  %v7441_v54 = vpop.f32.mrb[163].mxu1  ;;  %v6678_v10 = vpack.c.bf16 %v5284_v59, %v5284_v59 }
0x1816   :  { %v5408_v14 = vpack.c.bf16 %v5287_v4, %v5284_v59  ;;  %v5432_v55 = vpack.c.bf16 %v5346_v8, %v5343_v2  ;;  %v6681_v1 = vpack.c.bf16 %v5346_v8, %v5346_v8  ;;  %v5484_v6 = vsel %vm406_vm2, %v6680_v43, 0 }
0x1817   :  { %7451 = vmatpush3.bf16.xpose.msra.mxu1 %v5484_v6  ;;  %v6679_v62 = vpack.c.bf16 %v5287_v4, %v5287_v4 }
0x1818   :  { %5410 = vrot.lane.b32.xlu1 %v5408_v14, %s8118_s29  ;;  %v5530_v18 = vsel %vm406_vm2, %v6681_v1, 0  ;;  %5434 = vrot.lane.b32.xlu0 %v5432_v55, %s8118_s29 }
0x1819   :  { %v5401_v49 = vpop.f32.mrb[164].mxu0  ;;  %7457 = vmatpush3.bf16.xpose.msra.mxu0 %v5530_v18  ;;  %7462 = vmatprep.subr.bf16.mxu1 %v8116_v12 }
0x181a   :  { %v7448_v25 = vpop.f32.mrb[165].mxu0  ;;  %7468 = vmatprep.subr.bf16.mxu0 %v8116_v12  ;;  %v9274_v46 = vadd.f32 %v6622_v19, %v5401_v49 }
0x181b   :  { %v5404_v33 = vpop.f32.mrb[166].mxu0 }
0x181c   :  { %v9276_v16 = vadd.f32 %v6622_v19, %v5404_v33  ;;  %5412 = vrot.lane.b32.xlu1 %v5408_v14, %s8119_s30  ;;  %v7449_v27 = vpop.f32.mrb[167].mxu0  ;;  %5436 = vrot.lane.b32.xlu0 %v5432_v55, %s8119_s30  ;;  %v6682_v53 = vpack.c.bf16 %v9274_v46, %v9274_v46 }
0x181e   :  { %v9282_v9 = vpack.c.bf16 %v9276_v16, %v9274_v46  ;;  %7453 = vmatmul.mubr.msk.bf16.vlgmr.msra.gmra.mrb[164].mxu1 %vm406_vm2, %v6678_v10  ;;  %v6683_v39 = vpack.c.bf16 %v9276_v16, %v9276_v16  ;;  %v5948_v50 = vsel %vm4740_vm5, %v6682_v53, 0 }
0x181f   :  { %7464 = vmatprep.mubr.msk.bf16.mxu1 %vm8117_vm1, %v8116_v12 }
0x1820   :  { %5414 = vrot.lane.b32.xlu1 %v5408_v14, %s8120_s11  ;;  %7459 = vmatmul.mubr.msk.bf16.vlgmr.msra.gmra.mrb[168].mxu0 %vm406_vm2, %v6679_v62  ;;  %v5994_v52 = vsel %vm4740_vm5, %v6683_v39, 0 }
0x1821   :  { %5438 = vrot.lane.b32.xlu0 %v5432_v55, %s8120_s11  ;;  %7470 = vmatprep.mubr.msk.bf16.mxu0 %vm8117_vm1, %v8116_v12 }
0x188a   :  { %v5435_v60 = vpop.permute.xlu0 %5434  ;;  %v5411_v17 = vpop.permute.xlu1 %5410 }
0x188b   :  { %v6636_v63 = vcombine.low %v5435_v60, %v5435_v60  ;;  %v6637_v22 = vcombine.high %v5435_v60, %v5435_v60  ;;  %v6628_v11 = vcombine.low %v5411_v17, %v5411_v17  ;;  %v6629_v36 = vcombine.high %v5411_v17, %v5411_v17 }
0x188d   :  { %v5576_v24 = vsel %vm406_vm2, %v6636_v63, 0  ;;  %v5622_v21 = vsel %vm406_vm2, %v6637_v22, 0 }
0x188e   :  { %7463 = vmatpush3.bf16.xpose.msra.mxu1 %v5576_v24  ;;  %7469 = vmatpush3.bf16.xpose.msra.mxu0 %v5622_v21  ;;  %v5437_v3 = vpop.permute.xlu0 %5436  ;;  %v5413_v47 = vpop.permute.xlu1 %5412 }
0x188f   :  { %7474 = vmatprep.subr.bf16.mxu1 %v8116_v12  ;;  %7480 = vmatprep.subr.bf16.mxu0 %v8116_v12  ;;  %v6638_v31 = vcombine.low %v5437_v3, %v5437_v3  ;;  %v6639_v28 = vcombine.high %v5437_v3, %v5437_v3  ;;  %v6630_v7 = vcombine.low %v5413_v47, %v5413_v47 }
0x1890   :  { %v6631_v35 = vcombine.high %v5413_v47, %v5413_v47 }
0x1891   :  { %v5668_v23 = vsel %vm406_vm2, %v6638_v31, 0  ;;  %v5714_v15 = vsel %vm406_vm2, %v6639_v28, 0 }
0x1892   :  { %v5415_v34 = vpop.permute.xlu1 %5414 }
0x1893   :  { %v5439_v37 = vpop.permute.xlu0 %5438  ;;  %v6632_v61 = vcombine.low %v5415_v34, %v5415_v34  ;;  %v6633_v44 = vcombine.high %v5415_v34, %v5415_v34 }
0x1894   :  { %v6640_v42 = vcombine.low %v5439_v37, %v5439_v37  ;;  %v6641_v32 = vcombine.high %v5439_v37, %v5439_v37 }
0x1895   :  { %7465 = vmatmul.mubr.msk.bf16.vlgmr.msra.gmra.mrb[168].mxu1 %vm406_vm2, %v6628_v11  ;;  %7471 = vmatmul.mubr.msk.bf16.vlgmr.msra.gmra.mrb[172].mxu0 %vm406_vm2, %v6629_v36 }
0x1896   :  { %7475 = vmatpush3.bf16.xpose.msra.mxu1 %v5668_v23  ;;  %7481 = vmatpush3.bf16.xpose.msra.mxu0 %v5714_v15  ;;  %v5760_v41 = vsel %vm406_vm2, %v6640_v42, 0  ;;  %v5806_v30 = vsel %vm406_vm2, %v6641_v32, 0 }
0x1897   :  { %7476 = vmatprep.mubr.msk.bf16.mxu1 %vm8117_vm1, %v8116_v12  ;;  %7482 = vmatprep.mubr.msk.bf16.mxu0 %vm8117_vm1, %v8116_v12 }
0x1898   :  { %7486 = vmatprep.subr.bf16.mxu1 %v8116_v12  ;;  %7492 = vmatprep.subr.bf16.mxu0 %v8116_v12 }
0x189d   :  { %7477 = vmatmul.mubr.msk.bf16.vlgmr.msra.gmra.mrb[172].mxu1 %vm406_vm2, %v6630_v7  ;;  %7483 = vmatmul.mubr.msk.bf16.vlgmr.msra.gmra.mrb[176].mxu0 %vm406_vm2, %v6631_v35 }
0x189e   :  { %7487 = vmatpush3.bf16.xpose.msra.mxu1 %v5760_v41  ;;  %7493 = vmatpush3.bf16.xpose.msra.mxu0 %v5806_v30 }
0x189f   :  { %7488 = vmatprep.mubr.msk.bf16.mxu1 %vm8117_vm1, %v8116_v12  ;;  %7494 = vmatprep.mubr.msk.bf16.mxu0 %vm8117_vm1, %v8116_v12 }
0x18a0   :  { %7498 = vmatprep.subr.bf16.mxu1 %v8116_v12  ;;  %7504 = vmatprep.subr.bf16.mxu0 %v8116_v12 }
0x18a5   :  { %7489 = vmatmul.mubr.msk.bf16.vlgmr.msra.gmra.mrb[176].mxu1 %vm406_vm2, %v6632_v61  ;;  %7495 = vmatmul.mubr.msk.bf16.vlgmr.msra.gmra.mrb[180].mxu0 %vm406_vm2, %v6633_v44 }
0x18a6   :  { %7499 = vmatpush3.bf16.msra.mxu1 %v5948_v50  ;;  %7505 = vmatpush3.bf16.msra.mxu0 %v5994_v52 }
0x18a7   :  { %7506 = vmatprep.mubr.msk.bf16.mxu0 %vm8117_vm1, %v8116_v12  ;;  %7516 = vmatprep.subr.bf16.mxu0 %v8116_v12 }
0x18a8   :  { %7500 = vmatprep.mubr.msk.bf16.mxu1 %vm8117_vm1, %v8116_v12  ;;  %7510 = vmatprep.subr.bf16.mxu1 %v8116_v12 }
0x18f1   :  { %v5520_v13 = vpop.f32.mrb[164].mxu1 }
0x18f2   :  { %v7454_v51 = vpop.f32.mrb[165].mxu1  ;;  %v5848_v48 = vsel %vm406_vm2, %v5520_v13, -inf }
0x18f3   :  { %v5566_v29 = vpop.f32.mrb[168].mxu0  ;;  %5849 = vmax.xlane.f32.xlu0 %v5848_v48  ;;  %v5523_v45 = vpop.f32.mrb[166].mxu1 }
0x18f4   :  { %v7460_v40 = vpop.f32.mrb[169].mxu0  ;;  %v5851_v20 = vsel %vm406_vm2, %v5566_v29, -inf  ;;  %v7455_v0 = vpop.f32.mrb[167].mxu1 }
0x18f5   :  { %5852 = vmax.xlane.f32.xlu1 %v5851_v20  ;;  %v5569_v5 = vpop.f32.mrb[170].mxu0 }
0x18f6   :  { %v7461_v2 = vpop.f32.mrb[171].mxu0 }
0x1968   :  { %v5612_v58 = vpop.f32.mrb[168].mxu1  ;;  %v5658_v26 = vpop.f32.mrb[172].mxu0 }
0x1969   :  { %v7466_v38 = vpop.f32.mrb[169].mxu1  ;;  %v7472_v57 = vpop.f32.mrb[173].mxu0  ;;  %v5854_v59 = vsel %vm406_vm2, %v5612_v58, -inf  ;;  %v5857_v54 = vsel %vm406_vm2, %v5658_v26, -inf }
0x196a   :  { %v5661_v43 = vpop.f32.mrb[174].mxu0  ;;  %5855 = vmax.xlane.f32.xlu0 %v5854_v59  ;;  %v5615_v4 = vpop.f32.mrb[170].mxu1 }
0x196b   :  { %v7467_v8 = vpop.f32.mrb[171].mxu1  ;;  %v7473_v56 = vpop.f32.mrb[175].mxu0 }
0x196e   :  { %5858 = vmax.xlane.f32.xlu0 %v5857_v54 }
0x1970   :  { %v5704_v14 = vpop.f32.mrb[172].mxu1  ;;  %v5750_v55 = vpop.f32.mrb[176].mxu0 }
0x1971   :  { %v7478_v1 = vpop.f32.mrb[173].mxu1  ;;  %v7484_v6 = vpop.f32.mrb[177].mxu0  ;;  %v5863_v18 = vsel %vm406_vm2, %v5750_v55, -inf  ;;  %v5860_v19 = vsel %vm406_vm2, %v5704_v14, -inf }
0x1972   :  { %v5753_v49 = vpop.f32.mrb[178].mxu0  ;;  %5864 = vmax.xlane.f32.xlu0 %v5863_v18  ;;  %5861 = vmax.xlane.f32.xlu1 %v5860_v19  ;;  %v5707_v25 = vpop.f32.mrb[174].mxu1 }
0x1973   :  { %v7479_v33 = vpop.f32.mrb[175].mxu1  ;;  %v7485_v46 = vpop.f32.mrb[179].mxu0 }
0x1978   :  { %v5796_v16 = vpop.f32.mrb[176].mxu1  ;;  %v5842_v27 = vpop.f32.mrb[180].mxu0 }
0x1979   :  { %v7490_v10 = vpop.f32.mrb[177].mxu1  ;;  %v7496_v62 = vpop.f32.mrb[181].mxu0  ;;  %v5869_v60 = vsel %vm406_vm2, %v5842_v27, -inf  ;;  %v5866_v63 = vsel %vm406_vm2, %v5796_v16, -inf }
0x197a   :  { %v5845_v22 = vpop.f32.mrb[182].mxu0  ;;  %5870 = vmax.xlane.f32.xlu0 %v5869_v60  ;;  %5867 = vmax.xlane.f32.xlu1 %v5866_v63  ;;  %v5799_v24 = vpop.f32.mrb[178].mxu1 }
0x197b   :  { %v7491_v21 = vpop.f32.mrb[179].mxu1  ;;  %v7497_v3 = vpop.f32.mrb[183].mxu0 }
0x1980   :  { %v5850_v23 = vpop.xlane.xlu0 %5849 }
0x1981   :  { %v5872_v15 = vsub.f32 %v5520_v13, %v5850_v23 }
0x1982   :  { %v5853_v17 = vpop.xlane.xlu1 %5852 }
0x1983   :  { %v5873_v31 = vsub.f32 %v5566_v29, %v5853_v17  ;;  %v5880_v37 = vmul.f32 1.442695, %v5872_v15 }
0x1985   :  { %v5882_v28 = vmul.f32 1.442695, %v5873_v31 }
0x1987   :  { %7910 = vpow2.f32 %v5882_v28 }
0x1988   :  { %7912 = vpow2.f32 %v5880_v37 }
0x198b   :  { %5458 = vrot.lane.b32.xlu1 %v9282_v9, %s8118_s29 }
0x1991   :  { %v7911_v11 = vpop.eup %7910 }
0x1992   :  { %v5899_v36 = vsel %vm406_vm2, %v7911_v11, 0.0  ;;  %v9341_v47 = vpop.eup %7912 }
0x1993   :  { %5900 = vadd.xlane.f32.xlu0 %v5899_v36  ;;  %v5896_v42 = vsel %vm406_vm2, %v9341_v47, 0.0 }
0x19af   :  { %5897 = vadd.xlane.f32.xlu1 %v5896_v42 }
0x19f7   :  { %v5856_v32 = vpop.xlane.xlu0 %5855 }
0x19f8   :  { %v5874_v7 = vsub.f32 %v5612_v58, %v5856_v32 }
0x19fa   :  { %v5884_v35 = vmul.f32 1.442695, %v5874_v7 }
0x19fb   :  { %v5859_v41 = vpop.xlane.xlu0 %5858 }
0x19fc   :  { %7914 = vpow2.f32 %v5884_v35  ;;  %v5875_v30 = vsub.f32 %v5658_v26, %v5859_v41 }
0x19fe   :  { %v5886_v34 = vmul.f32 1.442695, %v5875_v30 }
0x19ff   :  { %v5865_v53 = vpop.xlane.xlu0 %5864  ;;  %v5862_v39 = vpop.xlane.xlu1 %5861 }
0x1a00   :  { %7916 = vpow2.f32 %v5886_v34  ;;  %v5877_v61 = vsub.f32 %v5750_v55, %v5865_v53  ;;  %v5876_v44 = vsub.f32 %v5704_v14, %v5862_v39 }
0x1a02   :  { %v5890_v50 = vmul.f32 1.442695, %v5877_v61  ;;  %v5888_v52 = vmul.f32 1.442695, %v5876_v44 }
0x1a04   :  { %7918 = vpow2.f32 %v5890_v50 }
0x1a05   :  { %7920 = vpow2.f32 %v5888_v52 }
0x1a06   :  { %v7915_v13 = vpop.eup %7914 }
0x1a07   :  { %v5871_v51 = vpop.xlane.xlu0 %5870  ;;  %v5868_v29 = vpop.xlane.xlu1 %5867  ;;  %v5902_v48 = vsel %vm406_vm2, %v7915_v13, 0.0 }
0x1a08   :  { %v5879_v45 = vsub.f32 %v5842_v27, %v5871_v51  ;;  %v5878_v40 = vsub.f32 %v5796_v16, %v5868_v29  ;;  %5903 = vadd.xlane.f32.xlu1 %v5902_v48 }
0x1a0a   :  { %v7917_v20 = vpop.eup %7916  ;;  %v5894_v0 = vmul.f32 1.442695, %v5879_v45  ;;  %v5892_v5 = vmul.f32 1.442695, %v5878_v40 }
0x1a0b   :  { %v5905_v2 = vsel %vm406_vm2, %v7917_v20, 0.0  ;;  %v5459_v54 = vpop.permute.xlu1 %5458 }
0x1a0c   :  { %7922 = vpow2.f32 %v5894_v0  ;;  %5906 = vadd.xlane.f32.xlu0 %v5905_v2  ;;  %v6645_v55 = vcombine.high %v5459_v54, %v5459_v54  ;;  %v6644_v25 = vcombine.low %v5459_v54, %v5459_v54 }
0x1a0d   :  { %7924 = vpow2.f32 %v5892_v5 }
0x1a0e   :  { %v9347_v58 = vpop.eup %7918  ;;  %v6086_v18 = vsel %vm4740_vm5, %v6645_v55, 0  ;;  %v7717_v55 = vld [vmem:[#allocation11 + $0x48] sm:$0xff]  }
0x1a0f   :  { %v7921_v26 = vpop.eup %7920  ;;  %v5911_v38 = vsel %vm406_vm2, %v9347_v58, 0.0 }
0x1a10   :  { %5912 = vadd.xlane.f32.xlu0 %v5911_v38  ;;  %v5908_v57 = vsel %vm406_vm2, %v7921_v26, 0.0 }
0x1a11   :  { %5909 = vadd.xlane.f32.xlu1 %v5908_v57 }
0x1a16   :  { %v9352_v59 = vpop.eup %7922 }
0x1a17   :  { %v9354_v43 = vpop.eup %7924  ;;  %v5917_v4 = vsel %vm406_vm2, %v9352_v59, 0.0 }
0x1a18   :  { %5918 = vadd.xlane.f32.xlu0 %v5917_v4  ;;  %v5914_v8 = vsel %vm406_vm2, %v9354_v43, 0.0 }
0x1a19   :  { %5915 = vadd.xlane.f32.xlu1 %v5914_v8 }
0x1a20   :  { %v5901_v56 = vpop.xlane.xlu0 %5900 }
0x1a21   :  { %7926 = vrcp.f32 %v5901_v56 }
0x1a2a   :  { %5462 = vrot.lane.b32.xlu1 %v9282_v9, %s8120_s11 }
0x1a2b   :  { %v7927_v14 = vpop.eup %7926 }
0x1a2c   :  { %v5929_v1 = vmul.f32 %v7927_v14, %v7911_v11 }
0x1a2e   :  { %v5937_v6 = vpack.c.bf16 %v5929_v1, %v5929_v1  ;;  %5460 = vrot.lane.b32.xlu0 %v9282_v9, %s8119_s30  ;;  %v6040_v9 = vsel %vm4740_vm5, %v6644_v25, 0  ;;  %s8123_s30 = smov [#allocation13]  }
0x1a2f   :  { %s6412_s11 = sshll.u32 %s8123_s30, 4  ;;  %s6413_s11 = int_to_ptr.vmem [resolvable:$true] %s6412_s11 }
0x1a30   :  { %7507 = vmatmul.mubr.msk.bf16.vlgmr.msra.gmra.mrb[184].mxu0 %vm406_vm2, %v5937_v6  ;;  %p8079_p7 = scmp.lt.s32.totalorder %s6413_s11, %s6413_s11 }
0x1a31   :  { %7517 = vmatpush3.bf16.msra.mxu0 %v6086_v18  ;;  %7518 = vmatprep.mubr.msk.bf16.mxu0 %vm8117_vm1, %v8116_v12 }
0x1a32   :  { %7528 = vmatprep.subr.bf16.mxu0 %v8116_v12 }
0x1a3c   :  { %v5898_v19 = vpop.xlane.xlu1 %5897 }
0x1a3d   :  { %7928 = vrcp.f32 %v5898_v19 }
0x1a47   :  { %v7929_v49 = vpop.eup %7928 }
0x1a48   :  { %v5928_v33 = vmul.f32 %v7929_v49, %v9341_v47 }
0x1a4a   :  { %v5936_v46 = vpack.c.bf16 %v5928_v33, %v5928_v33 }
0x1a4c   :  { %7501 = vmatmul.mubr.msk.bf16.vlgmr.msra.gmra.mrb[180].mxu1 %vm406_vm2, %v5936_v46 }
0x1a4d   :  { %7511 = vmatpush3.bf16.msra.mxu1 %v6040_v9  ;;  %7512 = vmatprep.mubr.msk.bf16.mxu1 %vm8117_vm1, %v8116_v12 }
0x1a4e   :  { %7522 = vmatprep.subr.bf16.mxu1 %v8116_v12 }
0x1a95   :  { %v5904_v16 = vpop.xlane.xlu1 %5903 }
0x1a96   :  { %7930 = vrcp.f32 %v5904_v16 }
0x1a99   :  { %v5907_v27 = vpop.xlane.xlu0 %5906 }
0x1a9a   :  { %7932 = vrcp.f32 %v5907_v27 }
0x1a9d   :  { %v5913_v10 = vpop.xlane.xlu0 %5912 }
0x1a9e   :  { %7934 = vrcp.f32 %v5913_v10  ;;  %v5910_v62 = vpop.xlane.xlu1 %5909 }
0x1a9f   :  { %7936 = vrcp.f32 %v5910_v62 }
0x1aa0   :  { %v7931_v60 = vpop.eup %7930 }
0x1aa1   :  { %v5930_v63 = vmul.f32 %v7931_v60, %v7915_v13 }
0x1aa3   :  { %v5938_v22 = vpack.c.bf16 %v5930_v63, %v5930_v63 }
0x1aa4   :  { %v7933_v24 = vpop.eup %7932 }
0x1aa5   :  { %v5931_v21 = vmul.f32 %v7933_v24, %v7917_v20  ;;  %v5919_v3 = vpop.xlane.xlu0 %5918  ;;  %7513 = vmatmul.mubr.msk.bf16.vlgmr.msra.gmra.mrb[184].mxu1 %vm406_vm2, %v5938_v22 }
0x1aa6   :  { %7938 = vrcp.f32 %v5919_v3  ;;  %v5916_v17 = vpop.xlane.xlu1 %5915  ;;  %7524 = vmatprep.mubr.msk.bf16.mxu1 %vm8117_vm1, %v8116_v12 }
0x1aa7   :  { %7940 = vrcp.f32 %v5916_v17  ;;  %v5939_v31 = vpack.c.bf16 %v5931_v21, %v5931_v21 }
0x1aa8   :  { %v7935_v28 = vpop.eup %7934 }
0x1aa9   :  { %v7937_v11 = vpop.eup %7936  ;;  %v5461_v36 = vpop.permute.xlu0 %5460  ;;  %7519 = vmatmul.mubr.msk.bf16.vlgmr.msra.gmra.mrb[188].mxu0 %vm406_vm2, %v5939_v31  ;;  %v5933_v42 = vmul.f32 %v7935_v28, %v9347_v58 }
0x1aaa   :  { %v5932_v23 = vmul.f32 %v7937_v11, %v7921_v26  ;;  %v6646_v15 = vcombine.low %v5461_v36, %v5461_v36  ;;  %v6647_v37 = vcombine.high %v5461_v36, %v5461_v36  ;;  %v5463_v47 = vpop.permute.xlu1 %5462  ;;  %7530 = vmatprep.mubr.msk.bf16.mxu0 %vm8117_vm1, %v8116_v12 }
0x1aab   :  { %v6648_v32 = vcombine.low %v5463_v47, %v5463_v47  ;;  %v6649_v41 = vcombine.high %v5463_v47, %v5463_v47  ;;  %v5941_v34 = vpack.c.bf16 %v5933_v42, %v5933_v42 }
0x1aac   :  { %v6132_v7 = vsel %vm4740_vm5, %v6646_v15, 0  ;;  %v6178_v35 = vsel %vm4740_vm5, %v6647_v37, 0  ;;  %v5940_v30 = vpack.c.bf16 %v5932_v23, %v5932_v23 }
0x1aad   :  { %7523 = vmatpush3.bf16.msra.mxu1 %v6132_v7  ;;  %7529 = vmatpush3.bf16.msra.mxu0 %v6178_v35  ;;  %v6224_v39 = vsel %vm4740_vm5, %v6648_v32, 0  ;;  %v6270_v44 = vsel %vm4740_vm5, %v6649_v41, 0  ;;  %v6666_v41 = vld [vmem:[%s9441_s9 + $0x4] ss:$0 sm:$0xff] }
0x1aae   :  { %7534 = vmatprep.subr.bf16.mxu1 %v8116_v12  ;;  %7540 = vmatprep.subr.bf16.mxu0 %v8116_v12 }
0x1ab0   :  { %v7939_v53 = vpop.eup %7938  ;;  %7525 = vmatmul.mubr.msk.bf16.vlgmr.msra.gmra.mrb[188].mxu1 %vm406_vm2, %v5940_v30 }
0x1ab1   :  { %v7941_v61 = vpop.eup %7940  ;;  %7531 = vmatmul.mubr.msk.bf16.vlgmr.msra.gmra.mrb[192].mxu0 %vm406_vm2, %v5941_v34  ;;  %7535 = vmatpush3.bf16.msra.mxu1 %v6224_v39  ;;  %v5935_v52 = vmul.f32 %v7939_v53, %v9352_v59 }
0x1ab2   :  { %v5934_v50 = vmul.f32 %v7941_v61, %v9354_v43  ;;  %7541 = vmatpush3.bf16.msra.mxu0 %v6270_v44  ;;  %7536 = vmatprep.mubr.msk.bf16.mxu1 %vm8117_vm1, %v8116_v12  ;;  %v7716_v43 = vld [vmem:[#allocation11 + $0x40] sm:$0xff]  }
0x1ab3   :  { %7542 = vmatprep.mubr.msk.bf16.mxu0 %vm8117_vm1, %v8116_v12  ;;  %7546 = vmatprep.subr.bf16.mxu1 %v8116_v12  ;;  %v5943_v51 = vpack.c.bf16 %v5935_v52, %v5935_v52 }
0x1ab4   :  { %v5942_v13 = vpack.c.bf16 %v5934_v50, %v5934_v50 }
0x1ab8   :  { %7537 = vmatmul.mubr.msk.bf16.vlgmr.msra.gmra.mrb[192].mxu1 %vm406_vm2, %v5942_v13 }
0x1ab9   :  { %7543 = vmatmul.mubr.msk.bf16.vlgmr.msra.gmra.mrb[196].mxu0 %vm406_vm2, %v5943_v51  ;;  %7550 = vmatprep.mubr.msk.bf16.mxu1 %vm8117_vm1, %v8116_v12 }
0x1aba   :  { %7547 = vmatpush3.bf16.msra.mxu1 %v7716_v43 }
0x1abb   :  { %7548 = vmatprep.subr.bf16.mxu1 %v8116_v12 }
0x1abe   :  { %7549 = vmatpush3.bf16.msra.mxu1 %v7717_v55 }
0x1b03   :  { %v6030_v29 = vpop.f32.mrb[184].mxu0 }
0x1b04   :  { %v7508_v48 = vpop.f32.mrb[185].mxu0 }
0x1b05   :  { %v6033_v45 = vpop.f32.mrb[186].mxu0 }
0x1b06   :  { %v7509_v40 = vpop.f32.mrb[187].mxu0 }
0x1b1f   :  { %v5984_v20 = vpop.f32.mrb[180].mxu1 }
0x1b20   :  { %v7502_v0 = vpop.f32.mrb[181].mxu1 }
0x1b21   :  { %v5987_v5 = vpop.f32.mrb[182].mxu1 }
0x1b22   :  { %v7503_v2 = vpop.f32.mrb[183].mxu1 }
0x1b78   :  { %v6076_v58 = vpop.f32.mrb[184].mxu1 }
0x1b79   :  { %v7514_v26 = vpop.f32.mrb[185].mxu1 }
0x1b7a   :  { %v6079_v38 = vpop.f32.mrb[186].mxu1 }
0x1b7b   :  { %v7515_v57 = vpop.f32.mrb[187].mxu1 }
0x1b7c   :  { %v6122_v59 = vpop.f32.mrb[188].mxu0 }
0x1b7d   :  { %v7662_v4 = vpack.i.bf16 %v6122_v59, %v6076_v58  ;;  %v7520_v8 = vpop.f32.mrb[189].mxu0 }
0x1b7e   :  { %v6125_v56 = vpop.f32.mrb[190].mxu0 }
0x1b7f   :  { %v7521_v54 = vpop.f32.mrb[191].mxu0  ;;  %7663 = vrot.lane.b32.xlu1 %v7662_v4, %s8112_s26 }
0x1b83   :  { %v6168_v14 = vpop.f32.mrb[188].mxu1 }
0x1b84   :  { %v7526_v1 = vpop.f32.mrb[189].mxu1  ;;  %v6214_v6 = vpop.f32.mrb[192].mxu0 }
0x1b85   :  { %v7667_v18 = vpack.i.bf16 %v6214_v6, %v6168_v14  ;;  %v6171_v19 = vpop.f32.mrb[190].mxu1  ;;  %v7532_v49 = vpop.f32.mrb[193].mxu0 }
0x1b86   :  { %v7527_v25 = vpop.f32.mrb[191].mxu1  ;;  %v6217_v33 = vpop.f32.mrb[194].mxu0 }
0x1b87   :  { %v7533_v46 = vpop.f32.mrb[195].mxu0  ;;  %7668 = vrot.lane.b32.xlu0 %v7667_v18, %s8121_s1  ;;  %s8074_s1 = scalar_lea.vmem %s6413_s11, 256 }
0x1b88   :  { %p8075_p6 = scmp.ne.s32.totalorder %s6413_s11, %s8074_s1  ;;  %p8080_p8 = scmp.lt.s32.totalorder %s8074_s1, %s8074_s1 }
0x1b8a   :  { %p8081_p9 = por %p8080_p8, %p8079_p7 }
0x1b8b   :  { %v6260_v9 = vpop.f32.mrb[192].mxu1 }
0x1b8c   :  { %v7538_v16 = vpop.f32.mrb[193].mxu1  ;;  %v6306_v27 = vpop.f32.mrb[196].mxu0  ;;  %p8082_p10 = pnand %p8081_p9, %p8075_p6 }
0x1b8d   :  { %v7672_v10 = vpack.i.bf16 %v6306_v27, %v6260_v9  ;;  %v6263_v62 = vpop.f32.mrb[194].mxu1  ;;  %v7544_v60 = vpop.f32.mrb[197].mxu0 }
0x1b8e   :  { %v7539_v12 = vpop.f32.mrb[195].mxu1  ;;  %v6309_v63 = vpop.f32.mrb[198].mxu0 }
0x1b8f   :  { %v7545_v22 = vpop.f32.mrb[199].mxu0  ;;  %7673 = vrot.lane.b32.xlu1 %v7672_v10, %s8122_s2 }
0x1bf1   :  { %v7664_v24 = vpop.permute.xlu1 %7663 }
0x1bf2   :  { %v7666_v3 = vunpack.i.h.bf16 %v7664_v24  ;;  %v7665_v17 = vunpack.i.l.bf16 %v7664_v24 }
0x1bf4   :  { %v6337_v36 = vsel %vm406_vm2, %v6030_v29, %v7666_v3  ;;  %v6336_v23 = vsel %vm406_vm2, %v5984_v20, %v7665_v17 }
0x1bf9   :  { %v7669_v21 = vpop.permute.xlu0 %7668 }
0x1bfa   :  { %v7671_v31 = vunpack.i.h.bf16 %v7669_v21  ;;  %v7670_v28 = vunpack.i.l.bf16 %v7669_v21 }
0x1bfc   :  { %v6339_v47 = vsel %vm783_vm3, %v6337_v36, %v7671_v31  ;;  %v6338_v42 = vsel %vm783_vm3, %v6336_v23, %v7670_v28 }
0x1c01   :  { %v7674_v11 = vpop.permute.xlu1 %7673 }
0x1c02   :  { %v7676_v15 = vunpack.i.h.bf16 %v7674_v11  ;;  %v7675_v37 = vunpack.i.l.bf16 %v7674_v11 }
0x1c04   :  { %v6341_v32 = vsel %vm1376_vm4, %v6339_v47, %v7676_v15  ;;  %v6340_v7 = vsel %vm1376_vm4, %v6338_v42, %v7675_v37 }
0x1c05   :  { %v6342_v35 = vpack.c.bf16 %v6341_v32, %v6340_v7 }
0x1c07   :  { %7551 = vmatmul.mubr.msk.bf16.vlgmr.msra.gmra.mrb[196].mxu1 %vm162_vm0, %v6342_v35 }
0x1cda   :  { %v6398_v30 = vpop.f32.mrb[196].mxu1 }
0x1cdb   :  { %v6399_v34 = vadd.f32 %v6666_v41, %v6398_v30  ;;  %v7552_v53 = vpop.f32.mrb[197].mxu1 }
0x1cdc   :  { %v6401_v39 = vpop.f32.mrb[198].mxu1 }
0x1cdd   :  { %6405 = vst.msk [vmem:[#allocation13] sm:$0xff] %vm162_vm0, %v6399_v34  ;;  %v6402_v61 = vadd.f32 %v6666_v41, %v6401_v39  ;;  %v7553_v44 = vpop.f32.mrb[199].mxu1 }
0x1cdf   :  { %6406 = vst.msk [vmem:[#allocation13 + $0x8] sm:$0xff] %vm162_vm0, %v6402_v61 }
0x1ce0   :  { %8085 = shalt.err (!%p8082_p10)
}
0x1ce1   :  { %s8086_s6 = scalar_lea.hbm %s9442_s10, 256 }
0x1ce2   :  { %p8087_p11 = scmp.ne.s32.totalorder %s9442_s10, %s8086_s6  ;;  %p8090_p12 = scmp.lt.u32.totalorder %s8086_s6, %s9442_s10 }
0x1ce4   :  { %p8092_p13 = pnand %p8090_p12, %p8087_p11 }
0x1ce6   :  { %8095 = shalt.err (!%p8092_p13)
}
0x1ce7   :  { %6418 = dma.vmem_to_hbm [thread:$0]  %s6413_s11, 256, %s9442_s10, [#allocation4], %s8111_s4, %s8111_s4, %s8112_s26  }
0x1ce8   :  { %8104 = dma.done.wait [#allocation4], 256  }
0x1ce9   :  { %8105 = vsyncadd [#allocation4], 4294967040 }
0x1cea   :  { %6422 = vsyncpa [#allocation3], 1 }
0x1ceb   :  { %6423 = vsyncpa [#allocation6], 1 }
0x1cec   :  { %6424 = vsyncpa [#allocation9], 1 }
0x1ced   :  { %6425 = vsyncpa [#allocation12], 1 }
0x1cee   :  { %6426 = vsyncpa [#allocation4], 1 }

</bundles_post_ra>
